<compile_context>
chip_gen: v6e
topology: v6e:2x2x1
jax: 0.10.0
libtpu: 0.0.40
codegen_flags: <defaults>
</compile_context>

<pallas_src>
import jax
import jax.numpy as jnp
from jax import lax
from jax.experimental import pallas as pl
from jax.experimental.pallas import tpu as pltpu

# ---- small, module-consistent hyperparameters ----
B = 2          # batch
S = 8          # encoder sequence length
T = 4          # decoding steps (target mel length)
N_MEL = 16     # n_mel
EMB = 32       # embedding_dim (encoder output feature dim)
ATT = 16       # attention_dim
HID = 32       # hidden_dim
PRE = 16       # prenet_dim
FILT = 8       # attention_filter_size
KSZ = 7        # attention_kernel_size (odd)
PAD = (KSZ - 1) // 2

SA = S * ATT            # flattened (seq, attention) lane width (= 128)
NOUT = N_MEL + 1        # fused feature+stop width
LW = 128                # staging-row / output lane width (one vreg row)

# staging-row lane layout
AW0, CW0, CW1 = 0, 8, 16          # attention weights | cumulative weights
CTX0, CTX1 = 16, 48               # context
HATT0, HATT1 = 48, 80             # attention-RNN hidden
HDEC0, HDEC1 = 80, 112            # decoder-RNN hidden
ONE_LANE = 112                    # constant-1 lane (bias folding)

# output-slab lane layout
OUT_FEAT0, OUT_FEAT1 = 0, N_MEL   # mel features
OUT_STOP = N_MEL                  # stop token
OUT_ATT0, OUT_ATT1 = 32, 32 + S   # attention weights

PARAM_ORDER = [
    "pre_w1", "pre_b1", "pre_w2", "pre_b2",
    "arnn_wih", "arnn_whh", "arnn_b",
    "drnn_wih", "drnn_whh", "drnn_b",
    "wq", "wmem", "conv_w0", "conv_w1", "wloc", "v",
    "wfeat", "bfeat", "wstop", "bstop",
]


# --------------------------------------------------------------------------- #
#                                   kernel                                    #
# --------------------------------------------------------------------------- #
def decoder_kernel(
    x_ref,        # (T*B, N_MEL)  time-major decoder inputs (go-frame + targets)
    enc_ref,      # (B, S, EMB)   encoder outputs ("memory")
    pm_ref,       # (B, S*ATT)    processed memory, flat lane layout
    w_pre_ref,    # (N_MEL+PRE, PRE)   [pre_w1 ; pre_w2]
    w_gpre_ref,   # (PRE, 4*HID)       prenet -> attention-RNN gate contribution
    b_ref,        # (3, 4*HID)         [pre_b1 | pre_b2 | arnn_b]
    w1_ref,       # (LW, 4*HID)        attention-RNN recurrent part (ctx, h_att lanes)
    w2_ref,       # (LW, S*ATT)        fused location(Toeplitz)+loc-proj+query-proj
    vmat_ref,     # (S*ATT, S)         block-diagonal score vector
    w3_ref,       # (LW, 4*HID)        decoder-RNN (h_att, ctx, h_dec, bias lanes)
    w_out_ref,    # (LW, LW)           fused feature|stop|attn-routing|biases
    out_ref,      # (T*B, LW)          lane-dense packed output slab
    row,          # (B, LW)     persistent staging row (recurrent state)
    c0,           # (B, HID)    attention-RNN cell state
    c1,           # (B, HID)    decoder-RNN   cell state
    hist,         # (T*B, LW)   per-step row history (for hoisted output proj)
):
    # ---------------- one-time setup (single grid step) ----------------
    b_pre1 = b_ref[0:1, :PRE]
    b_pre2 = b_ref[1:2, :PRE]
    b_arnn = b_ref[2:3, :]

    # PreNet over all T frames at once (two Linear + ReLU; dropout = identity),
    # then the prenet+bias contribution to the attention-RNN gates for every
    # frame -- all batched, off the serial per-step chain.
    p = jnp.maximum(
        jnp.dot(x_ref[...], w_pre_ref[:N_MEL, :],
                preferred_element_type=jnp.float32) + b_pre1, 0.0)
    p = jnp.maximum(
        jnp.dot(p, w_pre_ref[N_MEL:, :],
                preferred_element_type=jnp.float32) + b_pre2, 0.0)
    gpre = jnp.dot(p, w_gpre_ref[...],
                   preferred_element_type=jnp.float32) + b_arnn      # (T*B, 4H)

    enc = enc_ref[...]          # loop-invariant
    pm = pm_ref[...]            # loop-invariant

    # init recurrent state: zeros everywhere, constant 1 in the bias lane
    lane = lax.broadcasted_iota(jnp.int32, (B, LW), 1)
    row[...] = (lane == ONE_LANE).astype(jnp.float32)
    c0[...] = jnp.zeros_like(c0)
    c1[...] = jnp.zeros_like(c1)

    # -------- fully-unrolled autoregressive time loop (static indices) --------
    for t in range(T):
        r_prev = row[...]                                  # state from step t-1

        # attention RNN: gates = prenet/bias part (precomputed) + [ctx,h_att]@W1
        gates = gpre[t * B:(t + 1) * B, :] + jnp.dot(
            r_prev, w1_ref[...], preferred_element_type=jnp.float32)
        sg = jax.nn.sigmoid(gates)                         # one EUP push
        th = jnp.tanh(gates)                               # one EUP push
        c0_new = sg[:, HID:2 * HID] * c0[...] + sg[:, :HID] * th[:, 2 * HID:3 * HID]
        h0_new = sg[:, 3 * HID:] * jnp.tanh(c0_new)
        c0[...] = c0_new
        row[:, HATT0:HATT1] = h0_new

        # location-sensitive attention: ONE fused (location | query) matmul
        # (aw/cw lanes hold step t-1 weights, h_att lanes hold the new query)
        proc = jnp.dot(row[...], w2_ref[...],
                       preferred_element_type=jnp.float32)           # (B, S*ATT)
        e = jnp.tanh(pm + proc)
        scores = jnp.dot(e, vmat_ref[...],
                         preferred_element_type=jnp.float32)         # (B, S)
        m = jnp.max(scores, axis=-1, keepdims=True)
        ex = jnp.exp(scores - m)
        align = ex / jnp.sum(ex, axis=-1, keepdims=True)             # exact softmax
        # context via VPU/XLU broadcast-multiply + sublane reduce (no MXU pass)
        ctx_new = jnp.sum(align[:, :, None] * enc, axis=1)           # (B, EMB)
        row[:, AW0:CW0] = align
        row[:, CW0:CW1] = r_prev[:, CW0:CW1] + align
        row[:, CTX0:CTX1] = ctx_new

        # decoder RNN: gates2 = [h_att(new), ctx(new), h_dec(prev), 1] @ W3
        gates2 = jnp.dot(row[...], w3_ref[...],
                         preferred_element_type=jnp.float32)
        sg2 = jax.nn.sigmoid(gates2)
        th2 = jnp.tanh(gates2)
        c1_new = sg2[:, HID:2 * HID] * c1[...] + sg2[:, :HID] * th2[:, 2 * HID:3 * HID]
        h1_new = sg2[:, 3 * HID:] * jnp.tanh(c1_new)
        c1[...] = c1_new
        row[:, HDEC0:HDEC1] = h1_new

        # capture [align | cw | ctx | h_att | h_dec | 1] with ONE unmasked store
        hist[t * B:(t + 1) * B, :] = row[...]

    # hoisted fused feature + stop projection (+ attention-weight routing and
    # biases baked into w_out); single lane-dense (8,128) write-back.
    out_ref[...] = jnp.dot(hist[...], w_out_ref[...],
                           preferred_element_type=jnp.float32)


# --------------------------------------------------------------------------- #
#                            host-side packing / call                          #
# --------------------------------------------------------------------------- #
def _full_spec(shape):
    nd = len(shape)
    return pl.BlockSpec(shape, lambda i, _nd=nd: (0,) * _nd)


def pack_params(p):
    """Fuse / pack the natural parameters onto the kernel's lane layout."""
    # PreNet weights (two layers stacked)
    w_pre = jnp.concatenate([p["pre_w1"], p["pre_w2"]], axis=0)       # (N_MEL+PRE, PRE)

    # prenet -> attention-RNN gate contribution (applied to all frames pre-loop)
    w_gpre = p["arnn_wih"][:PRE, :]                                   # (PRE, 4H)

    # W1: attention-RNN recurrent part, laid out on the staging-row lanes
    w1 = jnp.zeros((LW, 4 * HID), jnp.float32)
    w1 = w1.at[CTX0:CTX1, :].set(p["arnn_wih"][PRE:, :])
    w1 = w1.at[HATT0:HATT1, :].set(p["arnn_whh"])

    # W2: location conv (Toeplitz, zero padding folded in) fused with the
    # location projection AND the query projection (pre-summed single matmul):
    #   proc[b, s*ATT+a] = sum_j aw[b,j]*M0[j-s+PAD,a] + cw[b,j]*M1[j-s+PAD,a]
    #                      + sum_h h_att[b,h]*wq[h,a]
    m0 = p["conv_w0"] @ p["wloc"]                                     # (KSZ, ATT)
    m1 = p["conv_w1"] @ p["wloc"]
    w2 = jnp.zeros((LW, SA), jnp.float32)
    for s in range(S):
        for j in range(S):
            k = j - s + PAD
            if 0 <= k < KSZ:
                w2 = w2.at[AW0 + j, s * ATT:(s + 1) * ATT].set(m0[k])
                w2 = w2.at[CW0 + j, s * ATT:(s + 1) * ATT].set(m1[k])
    w2 = w2.at[HATT0:HATT1, :].set(jnp.tile(p["wq"], (1, S)))

    # block-diagonal score vector: scores[b, s] = sum_a e[b, s*ATT+a] * v[a]
    vmat = jnp.zeros((SA, S), jnp.float32)
    for s in range(S):
        vmat = vmat.at[s * ATT:(s + 1) * ATT, s].set(p["v"][0])

    # W3: decoder RNN; bias folded via the constant-1 lane
    w3 = jnp.zeros((LW, 4 * HID), jnp.float32)
    w3 = w3.at[HATT0:HATT1, :].set(p["drnn_wih"][:HID, :])
    w3 = w3.at[CTX0:CTX1, :].set(p["drnn_wih"][HID:, :])
    w3 = w3.at[HDEC0:HDEC1, :].set(p["drnn_whh"])
    w3 = w3.at[ONE_LANE, :].set(p["drnn_b"][0])
    # NOTE: for real PyTorch LSTMCell weights, use b_ih + b_hh here and for arnn_b.

    # W_out: fused feature + stop generators + bias + identity routing of the
    # captured attention weights (hist lanes 0:8 -> output lanes 32:40)
    w_out = jnp.zeros((LW, LW), jnp.float32)
    w_out = w_out.at[HDEC0:HDEC1, OUT_FEAT0:OUT_FEAT1].set(p["wfeat"][:HID, :])
    w_out = w_out.at[CTX0:CTX1, OUT_FEAT0:OUT_FEAT1].set(p["wfeat"][HID:, :])
    w_out = w_out.at[HDEC0:HDEC1, OUT_STOP].set(p["wstop"][:HID, 0])
    w_out = w_out.at[CTX0:CTX1, OUT_STOP].set(p["wstop"][HID:, 0])
    w_out = w_out.at[ONE_LANE, OUT_FEAT0:OUT_FEAT1].set(p["bfeat"][0])
    w_out = w_out.at[ONE_LANE, OUT_STOP].set(p["bstop"][0, 0])
    for j in range(S):
        w_out = w_out.at[AW0 + j, OUT_ATT0 + j].set(1.0)

    # small packed biases (prenet layers + attention-RNN, used before the loop)
    b_pack = jnp.zeros((3, 4 * HID), jnp.float32)
    b_pack = b_pack.at[0, :PRE].set(p["pre_b1"][0])
    b_pack = b_pack.at[1, :PRE].set(p["pre_b2"][0])
    b_pack = b_pack.at[2, :].set(p["arnn_b"][0])

    return (w_pre, w_gpre, b_pack, w1, w2, vmat, w3, w_out)


def decoder_forward(params, encoder_outputs, mel_targets):
    """Teacher-forcing forward; returns the same dict as Decoder.forward."""
    go = jnp.zeros((B, 1, N_MEL), jnp.float32)
    dec_in = jnp.concatenate([go, mel_targets], axis=1)[:, :T, :]          # (B, T, N_MEL)
    dec_in_flat = jnp.transpose(dec_in, (1, 0, 2)).reshape(T * B, N_MEL)   # time-major rows

    # memory_layer(encoder_outputs): loop-invariant, computed once per call and
    # flattened to the (B, S*ATT) lane layout used by the in-kernel attention.
    pm_flat = (encoder_outputs.reshape(B * S, EMB) @ params["wmem"]).reshape(B, SA)

    weights = pack_params(params)
    inputs = (dec_in_flat, encoder_outputs, pm_flat) + weights

    in_specs = [_full_spec(x.shape) for x in inputs]
    out_specs = _full_spec((T * B, LW))
    out_shape = jax.ShapeDtypeStruct((T * B, LW), jnp.float32)

    scratch_shapes = [
        pltpu.VMEM((B, LW), jnp.float32),      # persistent staging row
        pltpu.VMEM((B, HID), jnp.float32),     # c_att
        pltpu.VMEM((B, HID), jnp.float32),     # c_dec
        pltpu.VMEM((T * B, LW), jnp.float32),  # per-step row history
    ]

    out = pl.pallas_call(
        decoder_kernel,
        out_shape=out_shape,
        grid_spec=pltpu.PrefetchScalarGridSpec(
            num_scalar_prefetch=0,
            grid=(1,),                          # whole decode in one grid step
            in_specs=in_specs,
            out_specs=out_specs,
            scratch_shapes=scratch_shapes,
        ),
        compiler_params=pltpu.CompilerParams(
            dimension_semantics=("arbitrary",),
        ),
    )(*inputs)

    # unpack the lane-dense slab; _parse_outputs: torch stacks on dim 0 then
    # does a raw .view(batch, -1, dim) -- a row-major reshape of the time-major
    # rows reproduces that exactly.
    feature_outputs = out[:, OUT_FEAT0:OUT_FEAT1].reshape(B, -1, N_MEL)
    attention_weights = out[:, OUT_ATT0:OUT_ATT1].reshape(B, -1, S)
    stop_tokens = out[:, OUT_STOP].reshape(T, B).T                          # (B, T)
    return {
        "feature_outputs": feature_outputs,
        "stop_tokens": stop_tokens,
        "attention_weights": attention_weights,
    }


# --------------------------------------------------------------------------- #
#                     pure-JAX reference (unfused formulation)                 #
# --------------------------------------------------------------------------- #
def reference_forward(params, encoder_outputs, mel_targets):
    """Pure-JAX mirror of the PyTorch forward (teacher forcing, eval-mode dropout)."""
    go = jnp.zeros((B, 1, N_MEL), jnp.float32)
    dec_in = jnp.concatenate([go, mel_targets], axis=1)[:, :T, :]
    h0 = jnp.zeros((B, HID)); c0 = jnp.zeros((B, HID))
    h1 = jnp.zeros((B, HID)); c1 = jnp.zeros((B, HID))
    aw = jnp.zeros((B, S)); cw = jnp.zeros((B, S)); ctx = jnp.zeros((B, EMB))
    pm = (encoder_outputs.reshape(B * S, EMB) @ params["wmem"]).reshape(B, S, ATT)
    feats, stops, atts = [], [], []
    for t in range(T):
        x = dec_in[:, t, :]
        p = jnp.maximum(x @ params["pre_w1"] + params["pre_b1"], 0.0)
        p = jnp.maximum(p @ params["pre_w2"] + params["pre_b2"], 0.0)
        step = jnp.concatenate([p, ctx], axis=1)
        g = step @ params["arnn_wih"] + h0 @ params["arnn_whh"] + params["arnn_b"]
        i = jax.nn.sigmoid(g[:, :HID]); f = jax.nn.sigmoid(g[:, HID:2 * HID])
        gg = jnp.tanh(g[:, 2 * HID:3 * HID]); o = jax.nn.sigmoid(g[:, 3 * HID:])
        c0 = f * c0 + i * gg; h0 = o * jnp.tanh(c0)
        pad = jnp.zeros((B, PAD))
        awp = jnp.concatenate([pad, aw, pad], axis=1)
        cwp = jnp.concatenate([pad, cw, pad], axis=1)
        loc = jnp.zeros((B, S, FILT))
        for k in range(KSZ):
            loc = (loc
                   + awp[:, k:k + S, None] * params["conv_w0"][k][None, None, :]
                   + cwp[:, k:k + S, None] * params["conv_w1"][k][None, None, :])
        ploc = (loc.reshape(B * S, FILT) @ params["wloc"]).reshape(B, S, ATT)
        pq = h0 @ params["wq"]
        e = jnp.tanh(pq[:, None, :] + pm + ploc)
        scores = jnp.sum(e * params["v"][0][None, None, :], axis=-1)
        align = jax.nn.softmax(scores, axis=-1)
        ctx = jnp.sum(align[:, :, None] * encoder_outputs, axis=1)
        aw = align; cw = cw + align
        step2 = jnp.concatenate([h0, ctx], axis=1)
        g2 = step2 @ params["drnn_wih"] + h1 @ params["drnn_whh"] + params["drnn_b"]
        i2 = jax.nn.sigmoid(g2[:, :HID]); f2 = jax.nn.sigmoid(g2[:, HID:2 * HID])
        gg2 = jnp.tanh(g2[:, 2 * HID:3 * HID]); o2 = jax.nn.sigmoid(g2[:, 3 * HID:])
        c1 = f2 * c1 + i2 * gg2; h1 = o2 * jnp.tanh(c1)
        out = jnp.concatenate([h1, ctx], axis=1)
        feats.append(out @ params["wfeat"] + params["bfeat"])
        stops.append((out @ params["wstop"] + params["bstop"])[:, 0])
        atts.append(align)
    return {
        "feature_outputs": jnp.stack(feats, 0).reshape(B, -1, N_MEL),
        "stop_tokens": jnp.stack(stops, 1),
        "attention_weights": jnp.stack(atts, 0).reshape(B, -1, S),
    }


def init_params(key):
    ks = jax.random.split(key, len(PARAM_ORDER))
    shapes = {
        # PyTorch Linear weights (out, in) are stored pre-transposed to (in, out).
        "pre_w1": (N_MEL, PRE), "pre_b1": (1, PRE),
        "pre_w2": (PRE, PRE), "pre_b2": (1, PRE),
        "arnn_wih": (PRE + EMB, 4 * HID), "arnn_whh": (HID, 4 * HID), "arnn_b": (1, 4 * HID),
        "drnn_wih": (HID + EMB, 4 * HID), "drnn_whh": (HID, 4 * HID), "drnn_b": (1, 4 * HID),
        "wq": (HID, ATT), "wmem": (EMB, ATT),
        # Conv1d(2, FILT, KSZ) weight (FILT, 2, KSZ) split per channel as (KSZ, FILT).
        "conv_w0": (KSZ, FILT), "conv_w1": (KSZ, FILT),
        "wloc": (FILT, ATT), "v": (1, ATT),
        "wfeat": (HID + EMB, N_MEL), "bfeat": (1, N_MEL),
        "wstop": (HID + EMB, 1), "bstop": (1, 1),
    }
    return {name: 0.1 * jax.random.normal(k, shapes[name], jnp.float32)
            for name, k in zip(PARAM_ORDER, ks)}


if __name__ == "__main__":
    key = jax.random.PRNGKey(0)
    k_enc, k_mel, k_par = jax.random.split(key, 3)
    encoder_outputs = jax.random.normal(k_enc, (B, S, EMB), jnp.float32)
    mel_targets = jax.random.normal(k_mel, (B, T, N_MEL), jnp.float32)
    params = init_params(k_par)

    outputs = decoder_forward(params, encoder_outputs, mel_targets)
    outputs = jax.block_until_ready(outputs)

    ref = reference_forward(params, encoder_outputs, mel_targets)
    # Exact softmax divide is used now; remaining differences are only FP
    # reassociation from the fused/bias-folded matmuls over the T-step recurrence.
    for name in ("feature_outputs", "stop_tokens", "attention_weights"):
        assert outputs[name].shape == ref[name].shape, name
        assert jnp.allclose(outputs[name], ref[name], rtol=1e-3, atol=1e-3), name

    print("KERNEL_OK")
</pallas_src>

<mosaic_0001>
module attributes {stable_mosaic.version = 11 : i64} {
  func.func @decoder_kernel(%arg0: i32, %arg1: memref<8x16xf32, #tpu.memory_space<vmem>>, %arg2: memref<2x8x32xf32, #tpu.memory_space<vmem>>, %arg3: memref<2x128xf32, #tpu.memory_space<vmem>>, %arg4: memref<32x16xf32, #tpu.memory_space<vmem>>, %arg5: memref<16x128xf32, #tpu.memory_space<vmem>>, %arg6: memref<3x128xf32, #tpu.memory_space<vmem>>, %arg7: memref<128x128xf32, #tpu.memory_space<vmem>>, %arg8: memref<128x128xf32, #tpu.memory_space<vmem>>, %arg9: memref<128x8xf32, #tpu.memory_space<vmem>>, %arg10: memref<128x128xf32, #tpu.memory_space<vmem>>, %arg11: memref<128x128xf32, #tpu.memory_space<vmem>>, %arg12: memref<8x128xf32, #tpu.memory_space<vmem>>, %arg13: memref<2x128xf32, #tpu.memory_space<vmem>>, %arg14: memref<2x32xf32, #tpu.memory_space<vmem>>, %arg15: memref<2x32xf32, #tpu.memory_space<vmem>>, %arg16: memref<8x128xf32, #tpu.memory_space<vmem>>) attributes {dimension_semantics = [#tpu.dimension_semantics<arbitrary>], iteration_bounds = array<i64: 1>, scalar_prefetch = 0 : i64, scratch_operands = 4 : i64, tpu.core_type = #tpu.core_type<tc>, window_params = [{pipeline_mode = #tpu.pipeline_mode<synchronous>, transform_indices = @transform_0, window_bounds = array<i64: 8, 16>}, {pipeline_mode = #tpu.pipeline_mode<synchronous>, transform_indices = @transform_1, window_bounds = array<i64: 2, 8, 32>}, {pipeline_mode = #tpu.pipeline_mode<synchronous>, transform_indices = @transform_2, window_bounds = array<i64: 2, 128>}, {pipeline_mode = #tpu.pipeline_mode<synchronous>, transform_indices = @transform_3, window_bounds = array<i64: 32, 16>}, {pipeline_mode = #tpu.pipeline_mode<synchronous>, transform_indices = @transform_4, window_bounds = array<i64: 16, 128>}, {pipeline_mode = #tpu.pipeline_mode<synchronous>, transform_indices = @transform_5, window_bounds = array<i64: 3, 128>}, {pipeline_mode = #tpu.pipeline_mode<synchronous>, transform_indices = @transform_6, window_bounds = array<i64: 128, 128>}, {pipeline_mode = #tpu.pipeline_mode<synchronous>, transform_indices = @transform_7, window_bounds = array<i64: 128, 128>}, {pipeline_mode = #tpu.pipeline_mode<synchronous>, transform_indices = @transform_8, window_bounds = array<i64: 128, 8>}, {pipeline_mode = #tpu.pipeline_mode<synchronous>, transform_indices = @transform_9, window_bounds = array<i64: 128, 128>}, {pipeline_mode = #tpu.pipeline_mode<synchronous>, transform_indices = @transform_10, window_bounds = array<i64: 128, 128>}, {pipeline_mode = #tpu.pipeline_mode<synchronous>, transform_indices = @transform_11, window_bounds = array<i64: 8, 128>}]} {
    %c0 = arith.constant 0 : index
    %c0_0 = arith.constant 0 : index
    %0 = vector.load %arg6[%c0, %c0_0] : memref<3x128xf32, #tpu.memory_space<vmem>>, vector<1x16xf32>
    %c1 = arith.constant 1 : index
    %c0_1 = arith.constant 0 : index
    %1 = vector.load %arg6[%c1, %c0_1] : memref<3x128xf32, #tpu.memory_space<vmem>>, vector<1x16xf32>
    %c2 = arith.constant 2 : index
    %c0_2 = arith.constant 0 : index
    %2 = vector.load %arg6[%c2, %c0_2] : memref<3x128xf32, #tpu.memory_space<vmem>>, vector<1x128xf32>
    %c0_3 = arith.constant 0 : index
    %c0_4 = arith.constant 0 : index
    %3 = vector.load %arg1[%c0_3, %c0_4] : memref<8x16xf32, #tpu.memory_space<vmem>>, vector<8x16xf32>
    %c0_5 = arith.constant 0 : index
    %c0_6 = arith.constant 0 : index
    %4 = vector.load %arg4[%c0_5, %c0_6] : memref<32x16xf32, #tpu.memory_space<vmem>>, vector<16x16xf32>
    %cst = arith.constant dense<0.000000e+00> : vector<8x16xf32>
    %5 = tpu.matmul %3, %4, %cst {dimension_numbers = #tpu.dot_dimension_numbers<[1], [0], [0], [1], [0, 0, 1, 1], [], []>} : vector<8x16xf32>, vector<16x16xf32>, vector<8x16xf32> -> vector<8x16xf32>
    %6 = vector.broadcast %0 : vector<1x16xf32> to vector<8x16xf32>
    %7 = arith.addf %5, %6 : vector<8x16xf32>
    %cst_7 = arith.constant 0.000000e+00 : f32
    %8 = vector.broadcast %cst_7 : f32 to vector<8x16xf32>
    %9 = arith.maximumf %7, %8 : vector<8x16xf32>
    %c16 = arith.constant 16 : index
    %c0_8 = arith.constant 0 : index
    %10 = vector.load %arg4[%c16, %c0_8] : memref<32x16xf32, #tpu.memory_space<vmem>>, vector<16x16xf32>
    %cst_9 = arith.constant dense<0.000000e+00> : vector<8x16xf32>
    %11 = tpu.matmul %9, %10, %cst_9 {dimension_numbers = #tpu.dot_dimension_numbers<[1], [0], [0], [1], [0, 0, 1, 1], [], []>} : vector<8x16xf32>, vector<16x16xf32>, vector<8x16xf32> -> vector<8x16xf32>
    %12 = vector.broadcast %1 : vector<1x16xf32> to vector<8x16xf32>
    %13 = arith.addf %11, %12 : vector<8x16xf32>
    %cst_10 = arith.constant 0.000000e+00 : f32
    %14 = vector.broadcast %cst_10 : f32 to vector<8x16xf32>
    %15 = arith.maximumf %13, %14 : vector<8x16xf32>
    %c0_11 = arith.constant 0 : index
    %c0_12 = arith.constant 0 : index
    %16 = vector.load %arg5[%c0_11, %c0_12] : memref<16x128xf32, #tpu.memory_space<vmem>>, vector<16x128xf32>
    %cst_13 = arith.constant dense<0.000000e+00> : vector<8x128xf32>
    %17 = tpu.matmul %15, %16, %cst_13 {dimension_numbers = #tpu.dot_dimension_numbers<[1], [0], [0], [1], [0, 0, 1, 1], [], []>} : vector<8x16xf32>, vector<16x128xf32>, vector<8x128xf32> -> vector<8x128xf32>
    %18 = vector.broadcast %2 : vector<1x128xf32> to vector<8x128xf32>
    %19 = arith.addf %17, %18 : vector<8x128xf32>
    %c0_14 = arith.constant 0 : index
    %c0_15 = arith.constant 0 : index
    %c0_16 = arith.constant 0 : index
    %20 = vector.load %arg2[%c0_14, %c0_15, %c0_16] : memref<2x8x32xf32, #tpu.memory_space<vmem>>, vector<2x8x32xf32>
    %c0_17 = arith.constant 0 : index
    %c0_18 = arith.constant 0 : index
    %21 = vector.load %arg3[%c0_17, %c0_18] : memref<2x128xf32, #tpu.memory_space<vmem>>, vector<2x128xf32>
    %22 = tpu.iota {dimensions = array<i32: 1>} : vector<2x128xi32>
    %c112_i32 = arith.constant 112 : i32
    %23 = vector.broadcast %c112_i32 : i32 to vector<2x128xi32>
    %24 = arith.cmpi eq, %22, %23 : vector<2x128xi32>
    %25 = arith.extui %24 : vector<2x128xi1> to vector<2x128xi32>
    %26 = arith.sitofp %25 : vector<2x128xi32> to vector<2x128xf32>
    %c0_19 = arith.constant 0 : index
    %c0_20 = arith.constant 0 : index
    %27 = vector.load %arg13[%c0_19, %c0_20] : memref<2x128xf32, #tpu.memory_space<vmem>>, vector<2x128xf32>
    tpu.vector_store %arg13[%c0_19, %c0_20], %26 {strides = array<i32>} : memref<2x128xf32, #tpu.memory_space<vmem>>, vector<2x128xf32>,
    %cst_21 = arith.constant 0.000000e+00 : f32
    %28 = vector.broadcast %cst_21 : f32 to vector<2x32xf32>
    %c0_22 = arith.constant 0 : index
    %c0_23 = arith.constant 0 : index
    %29 = vector.load %arg14[%c0_22, %c0_23] : memref<2x32xf32, #tpu.memory_space<vmem>>, vector<2x32xf32>
    tpu.vector_store %arg14[%c0_22, %c0_23], %28 {strides = array<i32>} : memref<2x32xf32, #tpu.memory_space<vmem>>, vector<2x32xf32>,
    %cst_24 = arith.constant 0.000000e+00 : f32
    %30 = vector.broadcast %cst_24 : f32 to vector<2x32xf32>
    %c0_25 = arith.constant 0 : index
    %c0_26 = arith.constant 0 : index
    %31 = vector.load %arg15[%c0_25, %c0_26] : memref<2x32xf32, #tpu.memory_space<vmem>>, vector<2x32xf32>
    tpu.vector_store %arg15[%c0_25, %c0_26], %30 {strides = array<i32>} : memref<2x32xf32, #tpu.memory_space<vmem>>, vector<2x32xf32>,
    %c0_27 = arith.constant 0 : index
    %c0_28 = arith.constant 0 : index
    %32 = vector.load %arg13[%c0_27, %c0_28] : memref<2x128xf32, #tpu.memory_space<vmem>>, vector<2x128xf32>
    %33 = vector.extract_strided_slice %19 {offsets = [0, 0], sizes = [2, 128], strides = [1, 1]} : vector<8x128xf32> to vector<2x128xf32>
    %c0_29 = arith.constant 0 : index
    %c0_30 = arith.constant 0 : index
    %34 = vector.load %arg7[%c0_29, %c0_30] : memref<128x128xf32, #tpu.memory_space<vmem>>, vector<128x128xf32>
    %cst_31 = arith.constant dense<0.000000e+00> : vector<2x128xf32>
    %35 = tpu.matmul %32, %34, %cst_31 {dimension_numbers = #tpu.dot_dimension_numbers<[1], [0], [0], [1], [0, 0, 1, 1], [], []>} : vector<2x128xf32>, vector<128x128xf32>, vector<2x128xf32> -> vector<2x128xf32>
    %36 = arith.addf %33, %35 : vector<2x128xf32>
    %37 = arith.negf %36 : vector<2x128xf32>
    %38 = math.exp %37 : vector<2x128xf32>
    %cst_32 = arith.constant 1.000000e+00 : f32
    %39 = vector.broadcast %cst_32 : f32 to vector<2x128xf32>
    %40 = arith.addf %39, %38 : vector<2x128xf32>
    %41 = arith.divf %39, %40 : vector<2x128xf32>
    %42 = math.tanh %36 : vector<2x128xf32>
    %43 = vector.extract_strided_slice %41 {offsets = [0, 32], sizes = [2, 32], strides = [1, 1]} : vector<2x128xf32> to vector<2x32xf32>
    %c0_33 = arith.constant 0 : index
    %c0_34 = arith.constant 0 : index
    %44 = vector.load %arg14[%c0_33, %c0_34] : memref<2x32xf32, #tpu.memory_space<vmem>>, vector<2x32xf32>
    %45 = arith.mulf %43, %44 : vector<2x32xf32>
    %46 = vector.extract_strided_slice %41 {offsets = [0, 0], sizes = [2, 32], strides = [1, 1]} : vector<2x128xf32> to vector<2x32xf32>
    %47 = vector.extract_strided_slice %42 {offsets = [0, 64], sizes = [2, 32], strides = [1, 1]} : vector<2x128xf32> to vector<2x32xf32>
    %48 = arith.mulf %46, %47 : vector<2x32xf32>
    %49 = arith.addf %45, %48 : vector<2x32xf32>
    %50 = vector.extract_strided_slice %41 {offsets = [0, 96], sizes = [2, 32], strides = [1, 1]} : vector<2x128xf32> to vector<2x32xf32>
    %51 = math.tanh %49 : vector<2x32xf32>
    %52 = arith.mulf %50, %51 : vector<2x32xf32>
    %c0_35 = arith.constant 0 : index
    %c0_36 = arith.constant 0 : index
    %53 = vector.load %arg14[%c0_35, %c0_36] : memref<2x32xf32, #tpu.memory_space<vmem>>, vector<2x32xf32>
    tpu.vector_store %arg14[%c0_35, %c0_36], %49 {strides = array<i32>} : memref<2x32xf32, #tpu.memory_space<vmem>>, vector<2x32xf32>,
    %c0_37 = arith.constant 0 : index
    %c48 = arith.constant 48 : index
    %54 = vector.load %arg13[%c0_37, %c48] : memref<2x128xf32, #tpu.memory_space<vmem>>, vector<2x32xf32>
    tpu.vector_store %arg13[%c0_37, %c48], %52 {strides = array<i32>} : memref<2x128xf32, #tpu.memory_space<vmem>>, vector<2x32xf32>,
    %c0_38 = arith.constant 0 : index
    %c0_39 = arith.constant 0 : index
    %55 = vector.load %arg13[%c0_38, %c0_39] : memref<2x128xf32, #tpu.memory_space<vmem>>, vector<2x128xf32>
    %c0_40 = arith.constant 0 : index
    %c0_41 = arith.constant 0 : index
    %56 = vector.load %arg8[%c0_40, %c0_41] : memref<128x128xf32, #tpu.memory_space<vmem>>, vector<128x128xf32>
    %cst_42 = arith.constant dense<0.000000e+00> : vector<2x128xf32>
    %57 = tpu.matmul %55, %56, %cst_42 {dimension_numbers = #tpu.dot_dimension_numbers<[1], [0], [0], [1], [0, 0, 1, 1], [], []>} : vector<2x128xf32>, vector<128x128xf32>, vector<2x128xf32> -> vector<2x128xf32>
    %58 = arith.addf %21, %57 : vector<2x128xf32>
    %59 = math.tanh %58 : vector<2x128xf32>
    %c0_43 = arith.constant 0 : index
    %c0_44 = arith.constant 0 : index
    %60 = vector.load %arg9[%c0_43, %c0_44] : memref<128x8xf32, #tpu.memory_space<vmem>>, vector<128x8xf32>
    %cst_45 = arith.constant dense<0.000000e+00> : vector<2x8xf32>
    %61 = tpu.matmul %59, %60, %cst_45 {dimension_numbers = #tpu.dot_dimension_numbers<[1], [0], [0], [1], [0, 0, 1, 1], [], []>} : vector<2x128xf32>, vector<128x8xf32>, vector<2x8xf32> -> vector<2x8xf32>
    %cst_46 = arith.constant dense<0xFF800000> : vector<2xf32>
    %62 = vector.multi_reduction <maximumf>, %61, %cst_46 [1] : vector<2x8xf32> to vector<2xf32>
    %63 = vector.shape_cast %62 : vector<2xf32> to vector<2x1xf32>
    %64 = vector.broadcast %63 : vector<2x1xf32> to vector<2x8xf32>
    %65 = arith.subf %61, %64 : vector<2x8xf32>
    %66 = math.exp %65 : vector<2x8xf32>
    %cst_47 = arith.constant dense<0.000000e+00> : vector<2xf32>
    %67 = vector.multi_reduction <add>, %66, %cst_47 [1] : vector<2x8xf32> to vector<2xf32>
    %68 = vector.shape_cast %67 : vector<2xf32> to vector<2x1xf32>
    %69 = vector.broadcast %68 : vector<2x1xf32> to vector<2x8xf32>
    %70 = arith.divf %66, %69 : vector<2x8xf32>
    %71 = vector.shape_cast %70 : vector<2x8xf32> to vector<2x8x1xf32>
    %72 = vector.broadcast %71 : vector<2x8x1xf32> to vector<2x8x32xf32>
    %73 = arith.mulf %72, %20 : vector<2x8x32xf32>
    %cst_48 = arith.constant dense<0.000000e+00> : vector<2x32xf32>
    %74 = vector.multi_reduction <add>, %73, %cst_48 [1] : vector<2x8x32xf32> to vector<2x32xf32>
    %c0_49 = arith.constant 0 : index
    %c0_50 = arith.constant 0 : index
    %75 = vector.load %arg13[%c0_49, %c0_50] : memref<2x128xf32, #tpu.memory_space<vmem>>, vector<2x8xf32>
    tpu.vector_store %arg13[%c0_49, %c0_50], %70 {strides = array<i32>} : memref<2x128xf32, #tpu.memory_space<vmem>>, vector<2x8xf32>,
    %76 = vector.extract_strided_slice %32 {offsets = [0, 8], sizes = [2, 8], strides = [1, 1]} : vector<2x128xf32> to vector<2x8xf32>
    %77 = arith.addf %76, %70 : vector<2x8xf32>
    %c0_51 = arith.constant 0 : index
    %c8 = arith.constant 8 : index
    %78 = vector.load %arg13[%c0_51, %c8] : memref<2x128xf32, #tpu.memory_space<vmem>>, vector<2x8xf32>
    tpu.vector_store %arg13[%c0_51, %c8], %77 {strides = array<i32>} : memref<2x128xf32, #tpu.memory_space<vmem>>, vector<2x8xf32>,
    %c0_52 = arith.constant 0 : index
    %c16_53 = arith.constant 16 : index
    %79 = vector.load %arg13[%c0_52, %c16_53] : memref<2x128xf32, #tpu.memory_space<vmem>>, vector<2x32xf32>
    tpu.vector_store %arg13[%c0_52, %c16_53], %74 {strides = array<i32>} : memref<2x128xf32, #tpu.memory_space<vmem>>, vector<2x32xf32>,
    %c0_54 = arith.constant 0 : index
    %c0_55 = arith.constant 0 : index
    %80 = vector.load %arg13[%c0_54, %c0_55] : memref<2x128xf32, #tpu.memory_space<vmem>>, vector<2x128xf32>
    %c0_56 = arith.constant 0 : index
    %c0_57 = arith.constant 0 : index
    %81 = vector.load %arg10[%c0_56, %c0_57] : memref<128x128xf32, #tpu.memory_space<vmem>>, vector<128x128xf32>
    %cst_58 = arith.constant dense<0.000000e+00> : vector<2x128xf32>
    %82 = tpu.matmul %80, %81, %cst_58 {dimension_numbers = #tpu.dot_dimension_numbers<[1], [0], [0], [1], [0, 0, 1, 1], [], []>} : vector<2x128xf32>, vector<128x128xf32>, vector<2x128xf32> -> vector<2x128xf32>
    %83 = arith.negf %82 : vector<2x128xf32>
    %84 = math.exp %83 : vector<2x128xf32>
    %cst_59 = arith.constant 1.000000e+00 : f32
    %85 = vector.broadcast %cst_59 : f32 to vector<2x128xf32>
    %86 = arith.addf %85, %84 : vector<2x128xf32>
    %87 = arith.divf %85, %86 : vector<2x128xf32>
    %88 = math.tanh %82 : vector<2x128xf32>
    %89 = vector.extract_strided_slice %87 {offsets = [0, 32], sizes = [2, 32], strides = [1, 1]} : vector<2x128xf32> to vector<2x32xf32>
    %c0_60 = arith.constant 0 : index
    %c0_61 = arith.constant 0 : index
    %90 = vector.load %arg15[%c0_60, %c0_61] : memref<2x32xf32, #tpu.memory_space<vmem>>, vector<2x32xf32>
    %91 = arith.mulf %89, %90 : vector<2x32xf32>
    %92 = vector.extract_strided_slice %87 {offsets = [0, 0], sizes = [2, 32], strides = [1, 1]} : vector<2x128xf32> to vector<2x32xf32>
    %93 = vector.extract_strided_slice %88 {offsets = [0, 64], sizes = [2, 32], strides = [1, 1]} : vector<2x128xf32> to vector<2x32xf32>
    %94 = arith.mulf %92, %93 : vector<2x32xf32>
    %95 = arith.addf %91, %94 : vector<2x32xf32>
    %96 = vector.extract_strided_slice %87 {offsets = [0, 96], sizes = [2, 32], strides = [1, 1]} : vector<2x128xf32> to vector<2x32xf32>
    %97 = math.tanh %95 : vector<2x32xf32>
    %98 = arith.mulf %96, %97 : vector<2x32xf32>
    %c0_62 = arith.constant 0 : index
    %c0_63 = arith.constant 0 : index
    %99 = vector.load %arg15[%c0_62, %c0_63] : memref<2x32xf32, #tpu.memory_space<vmem>>, vector<2x32xf32>
    tpu.vector_store %arg15[%c0_62, %c0_63], %95 {strides = array<i32>} : memref<2x32xf32, #tpu.memory_space<vmem>>, vector<2x32xf32>,
    %c0_64 = arith.constant 0 : index
    %c80 = arith.constant 80 : index
    %100 = vector.load %arg13[%c0_64, %c80] : memref<2x128xf32, #tpu.memory_space<vmem>>, vector<2x32xf32>
    tpu.vector_store %arg13[%c0_64, %c80], %98 {strides = array<i32>} : memref<2x128xf32, #tpu.memory_space<vmem>>, vector<2x32xf32>,
    %c0_65 = arith.constant 0 : index
    %c0_66 = arith.constant 0 : index
    %101 = vector.load %arg13[%c0_65, %c0_66] : memref<2x128xf32, #tpu.memory_space<vmem>>, vector<2x128xf32>
    %c0_67 = arith.constant 0 : index
    %c0_68 = arith.constant 0 : index
    %102 = vector.load %arg16[%c0_67, %c0_68] : memref<8x128xf32, #tpu.memory_space<vmem>>, vector<2x128xf32>
    tpu.vector_store %arg16[%c0_67, %c0_68], %101 {strides = array<i32>} : memref<8x128xf32, #tpu.memory_space<vmem>>, vector<2x128xf32>,
    %c0_69 = arith.constant 0 : index
    %c0_70 = arith.constant 0 : index
    %103 = vector.load %arg13[%c0_69, %c0_70] : memref<2x128xf32, #tpu.memory_space<vmem>>, vector<2x128xf32>
    %104 = vector.extract_strided_slice %19 {offsets = [2, 0], sizes = [2, 128], strides = [1, 1]} : vector<8x128xf32> to vector<2x128xf32>
    %c0_71 = arith.constant 0 : index
    %c0_72 = arith.constant 0 : index
    %105 = vector.load %arg7[%c0_71, %c0_72] : memref<128x128xf32, #tpu.memory_space<vmem>>, vector<128x128xf32>
    %cst_73 = arith.constant dense<0.000000e+00> : vector<2x128xf32>
    %106 = tpu.matmul %103, %105, %cst_73 {dimension_numbers = #tpu.dot_dimension_numbers<[1], [0], [0], [1], [0, 0, 1, 1], [], []>} : vector<2x128xf32>, vector<128x128xf32>, vector<2x128xf32> -> vector<2x128xf32>
    %107 = arith.addf %104, %106 : vector<2x128xf32>
    %108 = arith.negf %107 : vector<2x128xf32>
    %109 = math.exp %108 : vector<2x128xf32>
    %cst_74 = arith.constant 1.000000e+00 : f32
    %110 = vector.broadcast %cst_74 : f32 to vector<2x128xf32>
    %111 = arith.addf %110, %109 : vector<2x128xf32>
    %112 = arith.divf %110, %111 : vector<2x128xf32>
    %113 = math.tanh %107 : vector<2x128xf32>
    %114 = vector.extract_strided_slice %112 {offsets = [0, 32], sizes = [2, 32], strides = [1, 1]} : vector<2x128xf32> to vector<2x32xf32>
    %c0_75 = arith.constant 0 : index
    %c0_76 = arith.constant 0 : index
    %115 = vector.load %arg14[%c0_75, %c0_76] : memref<2x32xf32, #tpu.memory_space<vmem>>, vector<2x32xf32>
    %116 = arith.mulf %114, %115 : vector<2x32xf32>
    %117 = vector.extract_strided_slice %112 {offsets = [0, 0], sizes = [2, 32], strides = [1, 1]} : vector<2x128xf32> to vector<2x32xf32>
    %118 = vector.extract_strided_slice %113 {offsets = [0, 64], sizes = [2, 32], strides = [1, 1]} : vector<2x128xf32> to vector<2x32xf32>
    %119 = arith.mulf %117, %118 : vector<2x32xf32>
    %120 = arith.addf %116, %119 : vector<2x32xf32>
    %121 = vector.extract_strided_slice %112 {offsets = [0, 96], sizes = [2, 32], strides = [1, 1]} : vector<2x128xf32> to vector<2x32xf32>
    %122 = math.tanh %120 : vector<2x32xf32>
    %123 = arith.mulf %121, %122 : vector<2x32xf32>
    %c0_77 = arith.constant 0 : index
    %c0_78 = arith.constant 0 : index
    %124 = vector.load %arg14[%c0_77, %c0_78] : memref<2x32xf32, #tpu.memory_space<vmem>>, vector<2x32xf32>
    tpu.vector_store %arg14[%c0_77, %c0_78], %120 {strides = array<i32>} : memref<2x32xf32, #tpu.memory_space<vmem>>, vector<2x32xf32>,
    %c0_79 = arith.constant 0 : index
    %c48_80 = arith.constant 48 : index
    %125 = vector.load %arg13[%c0_79, %c48_80] : memref<2x128xf32, #tpu.memory_space<vmem>>, vector<2x32xf32>
    tpu.vector_store %arg13[%c0_79, %c48_80], %123 {strides = array<i32>} : memref<2x128xf32, #tpu.memory_space<vmem>>, vector<2x32xf32>,
    %c0_81 = arith.constant 0 : index
    %c0_82 = arith.constant 0 : index
    %126 = vector.load %arg13[%c0_81, %c0_82] : memref<2x128xf32, #tpu.memory_space<vmem>>, vector<2x128xf32>
    %c0_83 = arith.constant 0 : index
    %c0_84 = arith.constant 0 : index
    %127 = vector.load %arg8[%c0_83, %c0_84] : memref<128x128xf32, #tpu.memory_space<vmem>>, vector<128x128xf32>
    %cst_85 = arith.constant dense<0.000000e+00> : vector<2x128xf32>
    %128 = tpu.matmul %126, %127, %cst_85 {dimension_numbers = #tpu.dot_dimension_numbers<[1], [0], [0], [1], [0, 0, 1, 1], [], []>} : vector<2x128xf32>, vector<128x128xf32>, vector<2x128xf32> -> vector<2x128xf32>
    %129 = arith.addf %21, %128 : vector<2x128xf32>
    %130 = math.tanh %129 : vector<2x128xf32>
    %c0_86 = arith.constant 0 : index
    %c0_87 = arith.constant 0 : index
    %131 = vector.load %arg9[%c0_86, %c0_87] : memref<128x8xf32, #tpu.memory_space<vmem>>, vector<128x8xf32>
    %cst_88 = arith.constant dense<0.000000e+00> : vector<2x8xf32>
    %132 = tpu.matmul %130, %131, %cst_88 {dimension_numbers = #tpu.dot_dimension_numbers<[1], [0], [0], [1], [0, 0, 1, 1], [], []>} : vector<2x128xf32>, vector<128x8xf32>, vector<2x8xf32> -> vector<2x8xf32>
    %cst_89 = arith.constant dense<0xFF800000> : vector<2xf32>
    %133 = vector.multi_reduction <maximumf>, %132, %cst_89 [1] : vector<2x8xf32> to vector<2xf32>
    %134 = vector.shape_cast %133 : vector<2xf32> to vector<2x1xf32>
    %135 = vector.broadcast %134 : vector<2x1xf32> to vector<2x8xf32>
    %136 = arith.subf %132, %135 : vector<2x8xf32>
    %137 = math.exp %136 : vector<2x8xf32>
    %cst_90 = arith.constant dense<0.000000e+00> : vector<2xf32>
    %138 = vector.multi_reduction <add>, %137, %cst_90 [1] : vector<2x8xf32> to vector<2xf32>
    %139 = vector.shape_cast %138 : vector<2xf32> to vector<2x1xf32>
    %140 = vector.broadcast %139 : vector<2x1xf32> to vector<2x8xf32>
    %141 = arith.divf %137, %140 : vector<2x8xf32>
    %142 = vector.shape_cast %141 : vector<2x8xf32> to vector<2x8x1xf32>
    %143 = vector.broadcast %142 : vector<2x8x1xf32> to vector<2x8x32xf32>
    %144 = arith.mulf %143, %20 : vector<2x8x32xf32>
    %cst_91 = arith.constant dense<0.000000e+00> : vector<2x32xf32>
    %145 = vector.multi_reduction <add>, %144, %cst_91 [1] : vector<2x8x32xf32> to vector<2x32xf32>
    %c0_92 = arith.constant 0 : index
    %c0_93 = arith.constant 0 : index
    %146 = vector.load %arg13[%c0_92, %c0_93] : memref<2x128xf32, #tpu.memory_space<vmem>>, vector<2x8xf32>
    tpu.vector_store %arg13[%c0_92, %c0_93], %141 {strides = array<i32>} : memref<2x128xf32, #tpu.memory_space<vmem>>, vector<2x8xf32>,
    %147 = vector.extract_strided_slice %103 {offsets = [0, 8], sizes = [2, 8], strides = [1, 1]} : vector<2x128xf32> to vector<2x8xf32>
    %148 = arith.addf %147, %141 : vector<2x8xf32>
    %c0_94 = arith.constant 0 : index
    %c8_95 = arith.constant 8 : index
    %149 = vector.load %arg13[%c0_94, %c8_95] : memref<2x128xf32, #tpu.memory_space<vmem>>, vector<2x8xf32>
    tpu.vector_store %arg13[%c0_94, %c8_95], %148 {strides = array<i32>} : memref<2x128xf32, #tpu.memory_space<vmem>>, vector<2x8xf32>,
    %c0_96 = arith.constant 0 : index
    %c16_97 = arith.constant 16 : index
    %150 = vector.load %arg13[%c0_96, %c16_97] : memref<2x128xf32, #tpu.memory_space<vmem>>, vector<2x32xf32>
    tpu.vector_store %arg13[%c0_96, %c16_97], %145 {strides = array<i32>} : memref<2x128xf32, #tpu.memory_space<vmem>>, vector<2x32xf32>,
    %c0_98 = arith.constant 0 : index
    %c0_99 = arith.constant 0 : index
    %151 = vector.load %arg13[%c0_98, %c0_99] : memref<2x128xf32, #tpu.memory_space<vmem>>, vector<2x128xf32>
    %c0_100 = arith.constant 0 : index
    %c0_101 = arith.constant 0 : index
    %152 = vector.load %arg10[%c0_100, %c0_101] : memref<128x128xf32, #tpu.memory_space<vmem>>, vector<128x128xf32>
    %cst_102 = arith.constant dense<0.000000e+00> : vector<2x128xf32>
    %153 = tpu.matmul %151, %152, %cst_102 {dimension_numbers = #tpu.dot_dimension_numbers<[1], [0], [0], [1], [0, 0, 1, 1], [], []>} : vector<2x128xf32>, vector<128x128xf32>, vector<2x128xf32> -> vector<2x128xf32>
    %154 = arith.negf %153 : vector<2x128xf32>
    %155 = math.exp %154 : vector<2x128xf32>
    %cst_103 = arith.constant 1.000000e+00 : f32
    %156 = vector.broadcast %cst_103 : f32 to vector<2x128xf32>
    %157 = arith.addf %156, %155 : vector<2x128xf32>
    %158 = arith.divf %156, %157 : vector<2x128xf32>
    %159 = math.tanh %153 : vector<2x128xf32>
    %160 = vector.extract_strided_slice %158 {offsets = [0, 32], sizes = [2, 32], strides = [1, 1]} : vector<2x128xf32> to vector<2x32xf32>
    %c0_104 = arith.constant 0 : index
    %c0_105 = arith.constant 0 : index
    %161 = vector.load %arg15[%c0_104, %c0_105] : memref<2x32xf32, #tpu.memory_space<vmem>>, vector<2x32xf32>
    %162 = arith.mulf %160, %161 : vector<2x32xf32>
    %163 = vector.extract_strided_slice %158 {offsets = [0, 0], sizes = [2, 32], strides = [1, 1]} : vector<2x128xf32> to vector<2x32xf32>
    %164 = vector.extract_strided_slice %159 {offsets = [0, 64], sizes = [2, 32], strides = [1, 1]} : vector<2x128xf32> to vector<2x32xf32>
    %165 = arith.mulf %163, %164 : vector<2x32xf32>
    %166 = arith.addf %162, %165 : vector<2x32xf32>
    %167 = vector.extract_strided_slice %158 {offsets = [0, 96], sizes = [2, 32], strides = [1, 1]} : vector<2x128xf32> to vector<2x32xf32>
    %168 = math.tanh %166 : vector<2x32xf32>
    %169 = arith.mulf %167, %168 : vector<2x32xf32>
    %c0_106 = arith.constant 0 : index
    %c0_107 = arith.constant 0 : index
    %170 = vector.load %arg15[%c0_106, %c0_107] : memref<2x32xf32, #tpu.memory_space<vmem>>, vector<2x32xf32>
    tpu.vector_store %arg15[%c0_106, %c0_107], %166 {strides = array<i32>} : memref<2x32xf32, #tpu.memory_space<vmem>>, vector<2x32xf32>,
    %c0_108 = arith.constant 0 : index
    %c80_109 = arith.constant 80 : index
    %171 = vector.load %arg13[%c0_108, %c80_109] : memref<2x128xf32, #tpu.memory_space<vmem>>, vector<2x32xf32>
    tpu.vector_store %arg13[%c0_108, %c80_109], %169 {strides = array<i32>} : memref<2x128xf32, #tpu.memory_space<vmem>>, vector<2x32xf32>,
    %c0_110 = arith.constant 0 : index
    %c0_111 = arith.constant 0 : index
    %172 = vector.load %arg13[%c0_110, %c0_111] : memref<2x128xf32, #tpu.memory_space<vmem>>, vector<2x128xf32>
    %c2_112 = arith.constant 2 : index
    %c0_113 = arith.constant 0 : index
    %173 = vector.load %arg16[%c2_112, %c0_113] : memref<8x128xf32, #tpu.memory_space<vmem>>, vector<2x128xf32>
    tpu.vector_store %arg16[%c2_112, %c0_113], %172 {strides = array<i32>} : memref<8x128xf32, #tpu.memory_space<vmem>>, vector<2x128xf32>,
    %c0_114 = arith.constant 0 : index
    %c0_115 = arith.constant 0 : index
    %174 = vector.load %arg13[%c0_114, %c0_115] : memref<2x128xf32, #tpu.memory_space<vmem>>, vector<2x128xf32>
    %175 = vector.extract_strided_slice %19 {offsets = [4, 0], sizes = [2, 128], strides = [1, 1]} : vector<8x128xf32> to vector<2x128xf32>
    %c0_116 = arith.constant 0 : index
    %c0_117 = arith.constant 0 : index
    %176 = vector.load %arg7[%c0_116, %c0_117] : memref<128x128xf32, #tpu.memory_space<vmem>>, vector<128x128xf32>
    %cst_118 = arith.constant dense<0.000000e+00> : vector<2x128xf32>
    %177 = tpu.matmul %174, %176, %cst_118 {dimension_numbers = #tpu.dot_dimension_numbers<[1], [0], [0], [1], [0, 0, 1, 1], [], []>} : vector<2x128xf32>, vector<128x128xf32>, vector<2x128xf32> -> vector<2x128xf32>
    %178 = arith.addf %175, %177 : vector<2x128xf32>
    %179 = arith.negf %178 : vector<2x128xf32>
    %180 = math.exp %179 : vector<2x128xf32>
    %cst_119 = arith.constant 1.000000e+00 : f32
    %181 = vector.broadcast %cst_119 : f32 to vector<2x128xf32>
    %182 = arith.addf %181, %180 : vector<2x128xf32>
    %183 = arith.divf %181, %182 : vector<2x128xf32>
    %184 = math.tanh %178 : vector<2x128xf32>
    %185 = vector.extract_strided_slice %183 {offsets = [0, 32], sizes = [2, 32], strides = [1, 1]} : vector<2x128xf32> to vector<2x32xf32>
    %c0_120 = arith.constant 0 : index
    %c0_121 = arith.constant 0 : index
    %186 = vector.load %arg14[%c0_120, %c0_121] : memref<2x32xf32, #tpu.memory_space<vmem>>, vector<2x32xf32>
    %187 = arith.mulf %185, %186 : vector<2x32xf32>
    %188 = vector.extract_strided_slice %183 {offsets = [0, 0], sizes = [2, 32], strides = [1, 1]} : vector<2x128xf32> to vector<2x32xf32>
    %189 = vector.extract_strided_slice %184 {offsets = [0, 64], sizes = [2, 32], strides = [1, 1]} : vector<2x128xf32> to vector<2x32xf32>
    %190 = arith.mulf %188, %189 : vector<2x32xf32>
    %191 = arith.addf %187, %190 : vector<2x32xf32>
    %192 = vector.extract_strided_slice %183 {offsets = [0, 96], sizes = [2, 32], strides = [1, 1]} : vector<2x128xf32> to vector<2x32xf32>
    %193 = math.tanh %191 : vector<2x32xf32>
    %194 = arith.mulf %192, %193 : vector<2x32xf32>
    %c0_122 = arith.constant 0 : index
    %c0_123 = arith.constant 0 : index
    %195 = vector.load %arg14[%c0_122, %c0_123] : memref<2x32xf32, #tpu.memory_space<vmem>>, vector<2x32xf32>
    tpu.vector_store %arg14[%c0_122, %c0_123], %191 {strides = array<i32>} : memref<2x32xf32, #tpu.memory_space<vmem>>, vector<2x32xf32>,
    %c0_124 = arith.constant 0 : index
    %c48_125 = arith.constant 48 : index
    %196 = vector.load %arg13[%c0_124, %c48_125] : memref<2x128xf32, #tpu.memory_space<vmem>>, vector<2x32xf32>
    tpu.vector_store %arg13[%c0_124, %c48_125], %194 {strides = array<i32>} : memref<2x128xf32, #tpu.memory_space<vmem>>, vector<2x32xf32>,
    %c0_126 = arith.constant 0 : index
    %c0_127 = arith.constant 0 : index
    %197 = vector.load %arg13[%c0_126, %c0_127] : memref<2x128xf32, #tpu.memory_space<vmem>>, vector<2x128xf32>
    %c0_128 = arith.constant 0 : index
    %c0_129 = arith.constant 0 : index
    %198 = vector.load %arg8[%c0_128, %c0_129] : memref<128x128xf32, #tpu.memory_space<vmem>>, vector<128x128xf32>
    %cst_130 = arith.constant dense<0.000000e+00> : vector<2x128xf32>
    %199 = tpu.matmul %197, %198, %cst_130 {dimension_numbers = #tpu.dot_dimension_numbers<[1], [0], [0], [1], [0, 0, 1, 1], [], []>} : vector<2x128xf32>, vector<128x128xf32>, vector<2x128xf32> -> vector<2x128xf32>
    %200 = arith.addf %21, %199 : vector<2x128xf32>
    %201 = math.tanh %200 : vector<2x128xf32>
    %c0_131 = arith.constant 0 : index
    %c0_132 = arith.constant 0 : index
    %202 = vector.load %arg9[%c0_131, %c0_132] : memref<128x8xf32, #tpu.memory_space<vmem>>, vector<128x8xf32>
    %cst_133 = arith.constant dense<0.000000e+00> : vector<2x8xf32>
    %203 = tpu.matmul %201, %202, %cst_133 {dimension_numbers = #tpu.dot_dimension_numbers<[1], [0], [0], [1], [0, 0, 1, 1], [], []>} : vector<2x128xf32>, vector<128x8xf32>, vector<2x8xf32> -> vector<2x8xf32>
    %cst_134 = arith.constant dense<0xFF800000> : vector<2xf32>
    %204 = vector.multi_reduction <maximumf>, %203, %cst_134 [1] : vector<2x8xf32> to vector<2xf32>
    %205 = vector.shape_cast %204 : vector<2xf32> to vector<2x1xf32>
    %206 = vector.broadcast %205 : vector<2x1xf32> to vector<2x8xf32>
    %207 = arith.subf %203, %206 : vector<2x8xf32>
    %208 = math.exp %207 : vector<2x8xf32>
    %cst_135 = arith.constant dense<0.000000e+00> : vector<2xf32>
    %209 = vector.multi_reduction <add>, %208, %cst_135 [1] : vector<2x8xf32> to vector<2xf32>
    %210 = vector.shape_cast %209 : vector<2xf32> to vector<2x1xf32>
    %211 = vector.broadcast %210 : vector<2x1xf32> to vector<2x8xf32>
    %212 = arith.divf %208, %211 : vector<2x8xf32>
    %213 = vector.shape_cast %212 : vector<2x8xf32> to vector<2x8x1xf32>
    %214 = vector.broadcast %213 : vector<2x8x1xf32> to vector<2x8x32xf32>
    %215 = arith.mulf %214, %20 : vector<2x8x32xf32>
    %cst_136 = arith.constant dense<0.000000e+00> : vector<2x32xf32>
    %216 = vector.multi_reduction <add>, %215, %cst_136 [1] : vector<2x8x32xf32> to vector<2x32xf32>
    %c0_137 = arith.constant 0 : index
    %c0_138 = arith.constant 0 : index
    %217 = vector.load %arg13[%c0_137, %c0_138] : memref<2x128xf32, #tpu.memory_space<vmem>>, vector<2x8xf32>
    tpu.vector_store %arg13[%c0_137, %c0_138], %212 {strides = array<i32>} : memref<2x128xf32, #tpu.memory_space<vmem>>, vector<2x8xf32>,
    %218 = vector.extract_strided_slice %174 {offsets = [0, 8], sizes = [2, 8], strides = [1, 1]} : vector<2x128xf32> to vector<2x8xf32>
    %219 = arith.addf %218, %212 : vector<2x8xf32>
    %c0_139 = arith.constant 0 : index
    %c8_140 = arith.constant 8 : index
    %220 = vector.load %arg13[%c0_139, %c8_140] : memref<2x128xf32, #tpu.memory_space<vmem>>, vector<2x8xf32>
    tpu.vector_store %arg13[%c0_139, %c8_140], %219 {strides = array<i32>} : memref<2x128xf32, #tpu.memory_space<vmem>>, vector<2x8xf32>,
    %c0_141 = arith.constant 0 : index
    %c16_142 = arith.constant 16 : index
    %221 = vector.load %arg13[%c0_141, %c16_142] : memref<2x128xf32, #tpu.memory_space<vmem>>, vector<2x32xf32>
    tpu.vector_store %arg13[%c0_141, %c16_142], %216 {strides = array<i32>} : memref<2x128xf32, #tpu.memory_space<vmem>>, vector<2x32xf32>,
    %c0_143 = arith.constant 0 : index
    %c0_144 = arith.constant 0 : index
    %222 = vector.load %arg13[%c0_143, %c0_144] : memref<2x128xf32, #tpu.memory_space<vmem>>, vector<2x128xf32>
    %c0_145 = arith.constant 0 : index
    %c0_146 = arith.constant 0 : index
    %223 = vector.load %arg10[%c0_145, %c0_146] : memref<128x128xf32, #tpu.memory_space<vmem>>, vector<128x128xf32>
    %cst_147 = arith.constant dense<0.000000e+00> : vector<2x128xf32>
    %224 = tpu.matmul %222, %223, %cst_147 {dimension_numbers = #tpu.dot_dimension_numbers<[1], [0], [0], [1], [0, 0, 1, 1], [], []>} : vector<2x128xf32>, vector<128x128xf32>, vector<2x128xf32> -> vector<2x128xf32>
    %225 = arith.negf %224 : vector<2x128xf32>
    %226 = math.exp %225 : vector<2x128xf32>
    %cst_148 = arith.constant 1.000000e+00 : f32
    %227 = vector.broadcast %cst_148 : f32 to vector<2x128xf32>
    %228 = arith.addf %227, %226 : vector<2x128xf32>
    %229 = arith.divf %227, %228 : vector<2x128xf32>
    %230 = math.tanh %224 : vector<2x128xf32>
    %231 = vector.extract_strided_slice %229 {offsets = [0, 32], sizes = [2, 32], strides = [1, 1]} : vector<2x128xf32> to vector<2x32xf32>
    %c0_149 = arith.constant 0 : index
    %c0_150 = arith.constant 0 : index
    %232 = vector.load %arg15[%c0_149, %c0_150] : memref<2x32xf32, #tpu.memory_space<vmem>>, vector<2x32xf32>
    %233 = arith.mulf %231, %232 : vector<2x32xf32>
    %234 = vector.extract_strided_slice %229 {offsets = [0, 0], sizes = [2, 32], strides = [1, 1]} : vector<2x128xf32> to vector<2x32xf32>
    %235 = vector.extract_strided_slice %230 {offsets = [0, 64], sizes = [2, 32], strides = [1, 1]} : vector<2x128xf32> to vector<2x32xf32>
    %236 = arith.mulf %234, %235 : vector<2x32xf32>
    %237 = arith.addf %233, %236 : vector<2x32xf32>
    %238 = vector.extract_strided_slice %229 {offsets = [0, 96], sizes = [2, 32], strides = [1, 1]} : vector<2x128xf32> to vector<2x32xf32>
    %239 = math.tanh %237 : vector<2x32xf32>
    %240 = arith.mulf %238, %239 : vector<2x32xf32>
    %c0_151 = arith.constant 0 : index
    %c0_152 = arith.constant 0 : index
    %241 = vector.load %arg15[%c0_151, %c0_152] : memref<2x32xf32, #tpu.memory_space<vmem>>, vector<2x32xf32>
    tpu.vector_store %arg15[%c0_151, %c0_152], %237 {strides = array<i32>} : memref<2x32xf32, #tpu.memory_space<vmem>>, vector<2x32xf32>,
    %c0_153 = arith.constant 0 : index
    %c80_154 = arith.constant 80 : index
    %242 = vector.load %arg13[%c0_153, %c80_154] : memref<2x128xf32, #tpu.memory_space<vmem>>, vector<2x32xf32>
    tpu.vector_store %arg13[%c0_153, %c80_154], %240 {strides = array<i32>} : memref<2x128xf32, #tpu.memory_space<vmem>>, vector<2x32xf32>,
    %c0_155 = arith.constant 0 : index
    %c0_156 = arith.constant 0 : index
    %243 = vector.load %arg13[%c0_155, %c0_156] : memref<2x128xf32, #tpu.memory_space<vmem>>, vector<2x128xf32>
    %c4 = arith.constant 4 : index
    %c0_157 = arith.constant 0 : index
    %244 = vector.load %arg16[%c4, %c0_157] : memref<8x128xf32, #tpu.memory_space<vmem>>, vector<2x128xf32>
    tpu.vector_store %arg16[%c4, %c0_157], %243 {strides = array<i32>} : memref<8x128xf32, #tpu.memory_space<vmem>>, vector<2x128xf32>,
    %c0_158 = arith.constant 0 : index
    %c0_159 = arith.constant 0 : index
    %245 = vector.load %arg13[%c0_158, %c0_159] : memref<2x128xf32, #tpu.memory_space<vmem>>, vector<2x128xf32>
    %246 = vector.extract_strided_slice %19 {offsets = [6, 0], sizes = [2, 128], strides = [1, 1]} : vector<8x128xf32> to vector<2x128xf32>
    %c0_160 = arith.constant 0 : index
    %c0_161 = arith.constant 0 : index
    %247 = vector.load %arg7[%c0_160, %c0_161] : memref<128x128xf32, #tpu.memory_space<vmem>>, vector<128x128xf32>
    %cst_162 = arith.constant dense<0.000000e+00> : vector<2x128xf32>
    %248 = tpu.matmul %245, %247, %cst_162 {dimension_numbers = #tpu.dot_dimension_numbers<[1], [0], [0], [1], [0, 0, 1, 1], [], []>} : vector<2x128xf32>, vector<128x128xf32>, vector<2x128xf32> -> vector<2x128xf32>
    %249 = arith.addf %246, %248 : vector<2x128xf32>
    %250 = arith.negf %249 : vector<2x128xf32>
    %251 = math.exp %250 : vector<2x128xf32>
    %cst_163 = arith.constant 1.000000e+00 : f32
    %252 = vector.broadcast %cst_163 : f32 to vector<2x128xf32>
    %253 = arith.addf %252, %251 : vector<2x128xf32>
    %254 = arith.divf %252, %253 : vector<2x128xf32>
    %255 = math.tanh %249 : vector<2x128xf32>
    %256 = vector.extract_strided_slice %254 {offsets = [0, 32], sizes = [2, 32], strides = [1, 1]} : vector<2x128xf32> to vector<2x32xf32>
    %c0_164 = arith.constant 0 : index
    %c0_165 = arith.constant 0 : index
    %257 = vector.load %arg14[%c0_164, %c0_165] : memref<2x32xf32, #tpu.memory_space<vmem>>, vector<2x32xf32>
    %258 = arith.mulf %256, %257 : vector<2x32xf32>
    %259 = vector.extract_strided_slice %254 {offsets = [0, 0], sizes = [2, 32], strides = [1, 1]} : vector<2x128xf32> to vector<2x32xf32>
    %260 = vector.extract_strided_slice %255 {offsets = [0, 64], sizes = [2, 32], strides = [1, 1]} : vector<2x128xf32> to vector<2x32xf32>
    %261 = arith.mulf %259, %260 : vector<2x32xf32>
    %262 = arith.addf %258, %261 : vector<2x32xf32>
    %263 = vector.extract_strided_slice %254 {offsets = [0, 96], sizes = [2, 32], strides = [1, 1]} : vector<2x128xf32> to vector<2x32xf32>
    %264 = math.tanh %262 : vector<2x32xf32>
    %265 = arith.mulf %263, %264 : vector<2x32xf32>
    %c0_166 = arith.constant 0 : index
    %c0_167 = arith.constant 0 : index
    %266 = vector.load %arg14[%c0_166, %c0_167] : memref<2x32xf32, #tpu.memory_space<vmem>>, vector<2x32xf32>
    tpu.vector_store %arg14[%c0_166, %c0_167], %262 {strides = array<i32>} : memref<2x32xf32, #tpu.memory_space<vmem>>, vector<2x32xf32>,
    %c0_168 = arith.constant 0 : index
    %c48_169 = arith.constant 48 : index
    %267 = vector.load %arg13[%c0_168, %c48_169] : memref<2x128xf32, #tpu.memory_space<vmem>>, vector<2x32xf32>
    tpu.vector_store %arg13[%c0_168, %c48_169], %265 {strides = array<i32>} : memref<2x128xf32, #tpu.memory_space<vmem>>, vector<2x32xf32>,
    %c0_170 = arith.constant 0 : index
    %c0_171 = arith.constant 0 : index
    %268 = vector.load %arg13[%c0_170, %c0_171] : memref<2x128xf32, #tpu.memory_space<vmem>>, vector<2x128xf32>
    %c0_172 = arith.constant 0 : index
    %c0_173 = arith.constant 0 : index
    %269 = vector.load %arg8[%c0_172, %c0_173] : memref<128x128xf32, #tpu.memory_space<vmem>>, vector<128x128xf32>
    %cst_174 = arith.constant dense<0.000000e+00> : vector<2x128xf32>
    %270 = tpu.matmul %268, %269, %cst_174 {dimension_numbers = #tpu.dot_dimension_numbers<[1], [0], [0], [1], [0, 0, 1, 1], [], []>} : vector<2x128xf32>, vector<128x128xf32>, vector<2x128xf32> -> vector<2x128xf32>
    %271 = arith.addf %21, %270 : vector<2x128xf32>
    %272 = math.tanh %271 : vector<2x128xf32>
    %c0_175 = arith.constant 0 : index
    %c0_176 = arith.constant 0 : index
    %273 = vector.load %arg9[%c0_175, %c0_176] : memref<128x8xf32, #tpu.memory_space<vmem>>, vector<128x8xf32>
    %cst_177 = arith.constant dense<0.000000e+00> : vector<2x8xf32>
    %274 = tpu.matmul %272, %273, %cst_177 {dimension_numbers = #tpu.dot_dimension_numbers<[1], [0], [0], [1], [0, 0, 1, 1], [], []>} : vector<2x128xf32>, vector<128x8xf32>, vector<2x8xf32> -> vector<2x8xf32>
    %cst_178 = arith.constant dense<0xFF800000> : vector<2xf32>
    %275 = vector.multi_reduction <maximumf>, %274, %cst_178 [1] : vector<2x8xf32> to vector<2xf32>
    %276 = vector.shape_cast %275 : vector<2xf32> to vector<2x1xf32>
    %277 = vector.broadcast %276 : vector<2x1xf32> to vector<2x8xf32>
    %278 = arith.subf %274, %277 : vector<2x8xf32>
    %279 = math.exp %278 : vector<2x8xf32>
    %cst_179 = arith.constant dense<0.000000e+00> : vector<2xf32>
    %280 = vector.multi_reduction <add>, %279, %cst_179 [1] : vector<2x8xf32> to vector<2xf32>
    %281 = vector.shape_cast %280 : vector<2xf32> to vector<2x1xf32>
    %282 = vector.broadcast %281 : vector<2x1xf32> to vector<2x8xf32>
    %283 = arith.divf %279, %282 : vector<2x8xf32>
    %284 = vector.shape_cast %283 : vector<2x8xf32> to vector<2x8x1xf32>
    %285 = vector.broadcast %284 : vector<2x8x1xf32> to vector<2x8x32xf32>
    %286 = arith.mulf %285, %20 : vector<2x8x32xf32>
    %cst_180 = arith.constant dense<0.000000e+00> : vector<2x32xf32>
    %287 = vector.multi_reduction <add>, %286, %cst_180 [1] : vector<2x8x32xf32> to vector<2x32xf32>
    %c0_181 = arith.constant 0 : index
    %c0_182 = arith.constant 0 : index
    %288 = vector.load %arg13[%c0_181, %c0_182] : memref<2x128xf32, #tpu.memory_space<vmem>>, vector<2x8xf32>
    tpu.vector_store %arg13[%c0_181, %c0_182], %283 {strides = array<i32>} : memref<2x128xf32, #tpu.memory_space<vmem>>, vector<2x8xf32>,
    %289 = vector.extract_strided_slice %245 {offsets = [0, 8], sizes = [2, 8], strides = [1, 1]} : vector<2x128xf32> to vector<2x8xf32>
    %290 = arith.addf %289, %283 : vector<2x8xf32>
    %c0_183 = arith.constant 0 : index
    %c8_184 = arith.constant 8 : index
    %291 = vector.load %arg13[%c0_183, %c8_184] : memref<2x128xf32, #tpu.memory_space<vmem>>, vector<2x8xf32>
    tpu.vector_store %arg13[%c0_183, %c8_184], %290 {strides = array<i32>} : memref<2x128xf32, #tpu.memory_space<vmem>>, vector<2x8xf32>,
    %c0_185 = arith.constant 0 : index
    %c16_186 = arith.constant 16 : index
    %292 = vector.load %arg13[%c0_185, %c16_186] : memref<2x128xf32, #tpu.memory_space<vmem>>, vector<2x32xf32>
    tpu.vector_store %arg13[%c0_185, %c16_186], %287 {strides = array<i32>} : memref<2x128xf32, #tpu.memory_space<vmem>>, vector<2x32xf32>,
    %c0_187 = arith.constant 0 : index
    %c0_188 = arith.constant 0 : index
    %293 = vector.load %arg13[%c0_187, %c0_188] : memref<2x128xf32, #tpu.memory_space<vmem>>, vector<2x128xf32>
    %c0_189 = arith.constant 0 : index
    %c0_190 = arith.constant 0 : index
    %294 = vector.load %arg10[%c0_189, %c0_190] : memref<128x128xf32, #tpu.memory_space<vmem>>, vector<128x128xf32>
    %cst_191 = arith.constant dense<0.000000e+00> : vector<2x128xf32>
    %295 = tpu.matmul %293, %294, %cst_191 {dimension_numbers = #tpu.dot_dimension_numbers<[1], [0], [0], [1], [0, 0, 1, 1], [], []>} : vector<2x128xf32>, vector<128x128xf32>, vector<2x128xf32> -> vector<2x128xf32>
    %296 = arith.negf %295 : vector<2x128xf32>
    %297 = math.exp %296 : vector<2x128xf32>
    %cst_192 = arith.constant 1.000000e+00 : f32
    %298 = vector.broadcast %cst_192 : f32 to vector<2x128xf32>
    %299 = arith.addf %298, %297 : vector<2x128xf32>
    %300 = arith.divf %298, %299 : vector<2x128xf32>
    %301 = math.tanh %295 : vector<2x128xf32>
    %302 = vector.extract_strided_slice %300 {offsets = [0, 32], sizes = [2, 32], strides = [1, 1]} : vector<2x128xf32> to vector<2x32xf32>
    %c0_193 = arith.constant 0 : index
    %c0_194 = arith.constant 0 : index
    %303 = vector.load %arg15[%c0_193, %c0_194] : memref<2x32xf32, #tpu.memory_space<vmem>>, vector<2x32xf32>
    %304 = arith.mulf %302, %303 : vector<2x32xf32>
    %305 = vector.extract_strided_slice %300 {offsets = [0, 0], sizes = [2, 32], strides = [1, 1]} : vector<2x128xf32> to vector<2x32xf32>
    %306 = vector.extract_strided_slice %301 {offsets = [0, 64], sizes = [2, 32], strides = [1, 1]} : vector<2x128xf32> to vector<2x32xf32>
    %307 = arith.mulf %305, %306 : vector<2x32xf32>
    %308 = arith.addf %304, %307 : vector<2x32xf32>
    %309 = vector.extract_strided_slice %300 {offsets = [0, 96], sizes = [2, 32], strides = [1, 1]} : vector<2x128xf32> to vector<2x32xf32>
    %310 = math.tanh %308 : vector<2x32xf32>
    %311 = arith.mulf %309, %310 : vector<2x32xf32>
    %c0_195 = arith.constant 0 : index
    %c0_196 = arith.constant 0 : index
    %312 = vector.load %arg15[%c0_195, %c0_196] : memref<2x32xf32, #tpu.memory_space<vmem>>, vector<2x32xf32>
    tpu.vector_store %arg15[%c0_195, %c0_196], %308 {strides = array<i32>} : memref<2x32xf32, #tpu.memory_space<vmem>>, vector<2x32xf32>,
    %c0_197 = arith.constant 0 : index
    %c80_198 = arith.constant 80 : index
    %313 = vector.load %arg13[%c0_197, %c80_198] : memref<2x128xf32, #tpu.memory_space<vmem>>, vector<2x32xf32>
    tpu.vector_store %arg13[%c0_197, %c80_198], %311 {strides = array<i32>} : memref<2x128xf32, #tpu.memory_space<vmem>>, vector<2x32xf32>,
    %c0_199 = arith.constant 0 : index
    %c0_200 = arith.constant 0 : index
    %314 = vector.load %arg13[%c0_199, %c0_200] : memref<2x128xf32, #tpu.memory_space<vmem>>, vector<2x128xf32>
    %c6 = arith.constant 6 : index
    %c0_201 = arith.constant 0 : index
    %315 = vector.load %arg16[%c6, %c0_201] : memref<8x128xf32, #tpu.memory_space<vmem>>, vector<2x128xf32>
    tpu.vector_store %arg16[%c6, %c0_201], %314 {strides = array<i32>} : memref<8x128xf32, #tpu.memory_space<vmem>>, vector<2x128xf32>,
    %c0_202 = arith.constant 0 : index
    %c0_203 = arith.constant 0 : index
    %316 = vector.load %arg16[%c0_202, %c0_203] : memref<8x128xf32, #tpu.memory_space<vmem>>, vector<8x128xf32>
    %c0_204 = arith.constant 0 : index
    %c0_205 = arith.constant 0 : index
    %317 = vector.load %arg11[%c0_204, %c0_205] : memref<128x128xf32, #tpu.memory_space<vmem>>, vector<128x128xf32>
    %cst_206 = arith.constant dense<0.000000e+00> : vector<8x128xf32>
    %318 = tpu.matmul %316, %317, %cst_206 {dimension_numbers = #tpu.dot_dimension_numbers<[1], [0], [0], [1], [0, 0, 1, 1], [], []>} : vector<8x128xf32>, vector<128x128xf32>, vector<8x128xf32> -> vector<8x128xf32>
    %c0_207 = arith.constant 0 : index
    %c0_208 = arith.constant 0 : index
    %319 = vector.load %arg12[%c0_207, %c0_208] : memref<8x128xf32, #tpu.memory_space<vmem>>, vector<8x128xf32>
    tpu.vector_store %arg12[%c0_207, %c0_208], %318 {strides = array<i32>} : memref<8x128xf32, #tpu.memory_space<vmem>>, vector<8x128xf32>,
    return
  }
  func.func @transform_0(%arg0: i32) -> (i32, i32) {
    %c0_i32 = arith.constant 0 : i32
    %c0_i32_0 = arith.constant 0 : i32
    %c0_i32_1 = arith.constant 0 : i32
    return %c0_i32, %c0_i32_0 : i32, i32
  }
  func.func @transform_1(%arg0: i32) -> (i32, i32, i32) {
    %c0_i32 = arith.constant 0 : i32
    %c0_i32_0 = arith.constant 0 : i32
    %c0_i32_1 = arith.constant 0 : i32
    %c0_i32_2 = arith.constant 0 : i32
    return %c0_i32, %c0_i32_0, %c0_i32_1 : i32, i32, i32
  }
  func.func @transform_2(%arg0: i32) -> (i32, i32) {
    %c0_i32 = arith.constant 0 : i32
    %c0_i32_0 = arith.constant 0 : i32
    %c0_i32_1 = arith.constant 0 : i32
    return %c0_i32, %c0_i32_0 : i32, i32
  }
  func.func @transform_3(%arg0: i32) -> (i32, i32) {
    %c0_i32 = arith.constant 0 : i32
    %c0_i32_0 = arith.constant 0 : i32
    %c0_i32_1 = arith.constant 0 : i32
    return %c0_i32, %c0_i32_0 : i32, i32
  }
  func.func @transform_4(%arg0: i32) -> (i32, i32) {
    %c0_i32 = arith.constant 0 : i32
    %c0_i32_0 = arith.constant 0 : i32
    %c0_i32_1 = arith.constant 0 : i32
    return %c0_i32, %c0_i32_0 : i32, i32
  }
  func.func @transform_5(%arg0: i32) -> (i32, i32) {
    %c0_i32 = arith.constant 0 : i32
    %c0_i32_0 = arith.constant 0 : i32
    %c0_i32_1 = arith.constant 0 : i32
    return %c0_i32, %c0_i32_0 : i32, i32
  }
  func.func @transform_6(%arg0: i32) -> (i32, i32) {
    %c0_i32 = arith.constant 0 : i32
    %c0_i32_0 = arith.constant 0 : i32
    %c0_i32_1 = arith.constant 0 : i32
    return %c0_i32, %c0_i32_0 : i32, i32
  }
  func.func @transform_7(%arg0: i32) -> (i32, i32) {
    %c0_i32 = arith.constant 0 : i32
    %c0_i32_0 = arith.constant 0 : i32
    %c0_i32_1 = arith.constant 0 : i32
    return %c0_i32, %c0_i32_0 : i32, i32
  }
  func.func @transform_8(%arg0: i32) -> (i32, i32) {
    %c0_i32 = arith.constant 0 : i32
    %c0_i32_0 = arith.constant 0 : i32
    %c0_i32_1 = arith.constant 0 : i32
    return %c0_i32, %c0_i32_0 : i32, i32
  }
  func.func @transform_9(%arg0: i32) -> (i32, i32) {
    %c0_i32 = arith.constant 0 : i32
    %c0_i32_0 = arith.constant 0 : i32
    %c0_i32_1 = arith.constant 0 : i32
    return %c0_i32, %c0_i32_0 : i32, i32
  }
  func.func @transform_10(%arg0: i32) -> (i32, i32) {
    %c0_i32 = arith.constant 0 : i32
    %c0_i32_0 = arith.constant 0 : i32
    %c0_i32_1 = arith.constant 0 : i32
    return %c0_i32, %c0_i32_0 : i32, i32
  }
  func.func @transform_11(%arg0: i32) -> (i32, i32) {
    %c0_i32 = arith.constant 0 : i32
    %c0_i32_0 = arith.constant 0 : i32
    %c0_i32_1 = arith.constant 0 : i32
    return %c0_i32, %c0_i32_0 : i32, i32
  }
}

</mosaic_0001>

<bundles_post_ra>
// kernel: tpu_custom_call.1
= control target key start
LH: loop header
LB: loop body
LE: loop exit
PB: predicated region body
PF: predicated region fallthrough
CT: control target
= control target key end

     0   :  { %16 = vsyncpa [#allocation7], 0  ;;  %s4887_s0 = inlined_call_operand.vmem [shape: f32[8,16], index: 0, kind: input, shape index: {}]   ;;  %s4888_s1 = inlined_call_operand.vmem [shape: f32[2,8,32], index: 1, kind: input, shape index: {}]   ;;  %s4889_s2 = inlined_call_operand.vmem [shape: f32[2,128], index: 2, kind: input, shape index: {}]   ;;  %s4890_s3 = inlined_call_operand.vmem [shape: f32[32,16], index: 3, kind: input, shape index: {}]   ;;  %s4891_s4 = inlined_call_operand.vmem [shape: f32[16,128], index: 4, kind: input, shape index: {}]   ;;  %s4892_s5 = inlined_call_operand.vmem [shape: f32[3,128], index: 5, kind: input, shape index: {}]   ;;  %s4893_s6 = inlined_call_operand.vmem [shape: f32[128,128], index: 6, kind: input, shape index: {}]   ;;  %s4894_s7 = inlined_call_operand.hbm [shape: f32[128,128], index: 7, kind: input, shape index: {}]   ;;  %s4895_s8 = inlined_call_operand.vmem [shape: f32[128,8], index: 8, kind: input, shape index: {}]   ;;  %s4896_s9 = inlined_call_operand.hbm [shape: f32[128,128], index: 9, kind: input, shape index: {}]   ;;  %s4897_s10 = inlined_call_operand.hbm [shape: f32[128,128], index: 10, kind: input, shape index: {}]   ;;  %s4898_s11 = inlined_call_operand.hbm [shape: f32[8,128], index: 11, kind: output, shape index: {}]  }
   0x1   :  { %17 = vsyncpa [#allocation10], 0 }
   0x2   :  { %18 = vsyncpa [#allocation8], 0  ;;  %s3525_s17 = smov [#allocation9]   ;;  %s3526_s19 = smov [#allocation6]  }
   0x3   :  { %s52_s18 = sshll.u32 %s3525_s17, 4  ;;  %s38_s20 = sshll.u32 %s3526_s19, 4  ;;  %s53_s18 = int_to_ptr.vmem [resolvable:$true] %s52_s18  ;;  %s39_s20 = int_to_ptr.vmem [resolvable:$true] %s38_s20 }
   0x4   :  { %s3447_s21 = scalar_lea.vmem %s53_s18, 2048  ;;  %p3452_p1 = scmp.lt.s32.totalorder %s53_s18, %s53_s18 }
   0x5   :  { %p3448_p0 = scmp.ne.s32.totalorder %s53_s18, %s3447_s21  ;;  %p3453_p2 = scmp.lt.s32.totalorder %s3447_s21, %s3447_s21 }
   0x7   :  { %p3454_p3 = por %p3453_p2, %p3452_p1 }
   0x9   :  { %p3455_p4 = pnand %p3454_p3, %p3448_p0 }
   0xb   :  { %3458 = shalt.err (!%p3455_p4)
}
   0xc   :  { %s3527_s22 = smov 128   ;;  %s3528_s23 = smov 8  }
   0xd   :  { %58 = dma.hbm_to_vmem [thread:$0]  %s4896_s9, 2048, %s53_s18, [#allocation10], %s3527_s22, %s3527_s22, %s3528_s23  }
   0xe   :  { %s3467_s26 = scalar_lea.vmem %s39_s20, 2048  ;;  %p3472_p6 = scmp.lt.s32.totalorder %s39_s20, %s39_s20 }
   0xf   :  { %p3468_p5 = scmp.ne.s32.totalorder %s39_s20, %s3467_s26  ;;  %p3473_p7 = scmp.lt.s32.totalorder %s3467_s26, %s3467_s26 }
  0x11   :  { %p3474_p8 = por %p3473_p7, %p3472_p6 }
  0x13   :  { %p3475_p9 = pnand %p3474_p8, %p3468_p5 }
  0x15   :  { %3478 = shalt.err (!%p3475_p9)
}
  0x16   :  { %44 = dma.hbm_to_vmem [thread:$0]  %s4894_s7, 2048, %s39_s20, [#allocation7], %s3527_s22, %s3527_s22, %s3528_s23  }
  0x17   :  { %s3529_s29 = smov [#allocation11]  }
  0x18   :  { %s64_s30 = sshll.u32 %s3529_s29, 4  ;;  %s65_s30 = int_to_ptr.vmem [resolvable:$true] %s64_s30 }
  0x19   :  { %s3487_s12 = scalar_lea.vmem %s65_s30, 2048  ;;  %p3492_p11 = scmp.lt.s32.totalorder %s65_s30, %s65_s30 }
  0x1a   :  { %p3488_p10 = scmp.ne.s32.totalorder %s65_s30, %s3487_s12  ;;  %p3493_p12 = scmp.lt.s32.totalorder %s3487_s12, %s3487_s12 }
  0x1c   :  { %p3494_p13 = por %p3493_p12, %p3492_p11 }
  0x1e   :  { %p3495_p0 = pnand %p3494_p13, %p3488_p10 }
  0x20   :  { %3498 = shalt.err (!%p3495_p0)
}
  0x21   :  { %70 = dma.hbm_to_vmem [thread:$0]  %s4897_s10, 2048, %s65_s30, [#allocation10], %s3527_s22, %s3527_s22, %s3528_s23  }
  0x22   :  { %3519 = dma.done.wait [#allocation7], 2048  }
  0x23   :  { %3520 = vsyncadd [#allocation7], 4294965248 }
  0x24   :  { %3521 = dma.done.wait [#allocation10], 4096  }
  0x25   :  { %3522 = vsyncadd [#allocation10], 4294963200  ;;  %v4899_v0 = vmov 0.0   ;;  %vm3531_vm0 = vmmov 0   ;;  %v85_v1 = vld [vmem:[%s4890_s3 + $0x8] sm:$0xff]  ;;  %v84_v2 = vld [vmem:[%s4890_s3] sm:$0xff]  ;;  %v327_v24 = vlaneseq }
  0x26   :  { %2718 = vmatprep.subr.mxu0 %v4899_v0  ;;  %2722 = vmatprep.mubr.msk.f32.mxu0 %vm3531_vm0, %v4899_v0  ;;  %v83_v3 = vld [vmem:[%s4887_s0] sm:$0xff]  ;;  %vm90_vm1 = vcmask 130048   ;;  %v166_v4 = vld [vmem:[%s4890_s3 + $0x18] sm:$0xff]  ;;  %v165_v5 = vld [vmem:[%s4890_s3 + $0x10] sm:$0xff]  ;;  %vm333_vm3 = vcmask 254976   ;;  %s3532_s17 = smov 64  }
  0x27   :  { %2739 = vmatprep.subr.mxu1 %v4899_v0  ;;  %2771 = vmatprep.mubr.msk.f32.mxu1 %vm3531_vm0, %v4899_v0  ;;  %v3641_v6 = vld [vmem:[%s4893_s6 + $0x78] sm:$0xff]  ;;  %v3646_v7 = vld [vmem:[%s4893_s6 + $0x70] sm:$0xff]  ;;  %v3654_v8 = vld [vmem:[%s4893_s6 + $0x68] sm:$0xff]  ;;  %v328_v25 = vand.u32 127, %v327_v24  ;;  %334 = vst.msk [vmem:[#allocation3] sm:$0x3] %vm333_vm3, %v4899_v0 }
  0x28   :  { %2719 = vmatpush3.msra.mxu0 %v85_v1  ;;  %2740 = vmatpush3.msra.mxu1 %v3641_v6  ;;  %v3661_v9 = vld [vmem:[%s4893_s6 + $0x60] sm:$0xff]  ;;  %v3668_v10 = vld [vmem:[%s4893_s6 + $0x58] sm:$0xff]  ;;  %v3675_v11 = vld [vmem:[%s4893_s6 + $0x50] sm:$0xff]  ;;  %335 = vst.msk [vmem:[#allocation4] sm:$0x3] %vm333_vm3, %v4899_v0  ;;  %s3533_s18 = smov 32  }
  0x29   :  { %2720 = vmatprep.subr.mxu0 %v4899_v0  ;;  %2741 = vmatprep.subr.mxu1 %v4899_v0  ;;  %v3682_v12 = vld [vmem:[%s4893_s6 + $0x48] sm:$0xff]  ;;  %v3689_v13 = vld [vmem:[%s4893_s6 + $0x40] sm:$0xff]  ;;  %v3696_v14 = vld [vmem:[%s4893_s6 + $0x38] sm:$0xff]  ;;  %vm329_vm2 = vcmp.eq.s32.totalorder %v328_v25, 112  ;;  %s3534_s26 = smov 80   ;;  %vm462_vm4 = vcmask 648576  }
  0x2a   :  { %2721 = vmatpush3.msra.mxu0 %v84_v2  ;;  %2742 = vmatpush3.msra.mxu1 %v3646_v7  ;;  %v3703_v15 = vld [vmem:[%s4893_s6 + $0x30] sm:$0xff]  ;;  %v3710_v16 = vld [vmem:[%s4893_s6 + $0x28] sm:$0xff]  ;;  %v3717_v17 = vld [vmem:[%s4893_s6 + $0x20] sm:$0xff]  ;;  %v2411_v26 = vsel %vm329_vm2, 1.0, %v4899_v0  ;;  %vm639_vm5 = vcmask 58368   ;;  %vm667_vm6 = vcmask 261120  }
  0x2b   :  { %2723 = vmatmul.mubr.msk.f32.vlgmr.msra.gmra.mxu0 %vm90_vm1, %v83_v3  ;;  %2725 = vmatprep.subr.mxu0 %v4899_v0  ;;  %v3724_v18 = vld [vmem:[%s4893_s6 + $0x18] sm:$0xff]  ;;  %v2405_v19 = vld [vmem:[%s4892_s5] ss:$0 sm:$0xff]  ;;  %332 = vst [vmem:[#allocation2] sm:$0x3] %v2411_v26  ;;  %v3741_v27 = vld [vmem:[%s4893_s6 + $0x10] sm:$0xff] }
  0x2c   :  { %2729 = vmatprep.mubr.msk.f32.mxu0 %vm3531_vm0, %v4899_v0  ;;  %2726 = vmatpush3.msra.mxu0 %v166_v4  ;;  %v246_v28 = vld [vmem:[%s4891_s4 + $0x8] sm:$0xff]  ;;  %v245_v30 = vld [vmem:[%s4891_s4] sm:$0xff]  ;;  %v3804_v59 = vld [vmem:[#allocation6 + $0x68] sm:$0xff]  ;;  %vm688_vm7 = vcmask 123968   ;;  %vm692_vm8 = vcmask 1041409   ;;  %s3535_s7 = smov 16  }
  0x2d   :  { %2727 = vmatprep.subr.mxu0 %v4899_v0  ;;  %2743 = vmatprep.subr.mxu1 %v4899_v0  ;;  %v3751_v29 = vld [vmem:[%s4893_s6 + $0x8] sm:$0xff]  ;;  %v3762_v31 = vld [vmem:[%s4893_s6] sm:$0xff]  ;;  %v3820_v1 = vld [vmem:[#allocation6 + $0x48] sm:$0xff]  ;;  %vm697_vm9 = vcmask 386176   ;;  %s3536_s14 = smov 96   ;;  %s3537_s4 = smov 112  }
  0x2e   :  { %2728 = vmatpush3.msra.mxu0 %v165_v5  ;;  %2744 = vmatpush3.msra.mxu1 %v3654_v8  ;;  %v2407_v33 = vld [vmem:[%s4892_s5 + $0x1] ss:$0 sm:$0xff]  ;;  %v2409_v40 = vld [vmem:[%s4892_s5 + $0x2] ss:$0 sm:$0xff]  ;;  %v3798_v57 = vld [vmem:[#allocation6 + $0x78] sm:$0xff]  ;;  %vm824_vm10 = vcmask 910976  }
  0x2f   :  { %2732 = vmatprep.subr.mxu0 %v4899_v0  ;;  %2745 = vmatprep.subr.mxu1 %v4899_v0  ;;  %v431_v46 = vld [vmem:[#allocation3] sm:$0x3]  ;;  %v3808_v60 = vld [vmem:[#allocation6 + $0x60] sm:$0xff]  ;;  %v3812_v61 = vld [vmem:[#allocation6 + $0x58] sm:$0xff]  ;;  %vm959_vm11 = vcmask 650626   ;;  %vm953_vm12 = vcmask 257026  }
  0x30   :  { %2746 = vmatpush3.msra.mxu1 %v3661_v9  ;;  %v3800_v58 = vld [vmem:[#allocation6 + $0x70] sm:$0xff]  ;;  %v3825_v2 = vld [vmem:[#allocation6 + $0x40] sm:$0xff]  ;;  %v3829_v3 = vld [vmem:[#allocation6 + $0x38] sm:$0xff]  ;;  %vm1450_vm13 = vcmask 652676   ;;  %vm1444_vm14 = vcmask 259076   ;;  %vm1941_vm15 = vcmask 654726  }
  0x31   :  { %2747 = vmatprep.subr.mxu1 %v4899_v0  ;;  %v3816_v62 = vld [vmem:[#allocation6 + $0x50] sm:$0xff]  ;;  %v3837_v5 = vld [vmem:[#allocation6 + $0x28] sm:$0xff] }
  0x32   :  { %2748 = vmatpush3.msra.mxu1 %v3668_v10  ;;  %v3765_v32 = vld [vmem:[#allocation2] sm:$0x3]  ;;  %v3865_v25 = vld [vmem:[%s4895_s8 + $0x78] sm:$0xff]  ;;  %v3870_v26 = vld [vmem:[%s4895_s8 + $0x70] sm:$0xff] }
  0x33   :  { %2749 = vmatprep.subr.mxu1 %v4899_v0  ;;  %v3833_v4 = vld [vmem:[#allocation6 + $0x30] sm:$0xff] }
  0x34   :  { %2750 = vmatpush3.msra.mxu1 %v3675_v11 }
  0x35   :  { %2751 = vmatprep.subr.mxu1 %v4899_v0 }
  0x36   :  { %2752 = vmatpush3.msra.mxu1 %v3682_v12 }
  0x37   :  { %2753 = vmatprep.subr.mxu1 %v4899_v0 }
  0x38   :  { %2754 = vmatpush3.msra.mxu1 %v3689_v13 }
  0x39   :  { %2755 = vmatprep.subr.mxu1 %v4899_v0 }
  0x3a   :  { %2756 = vmatpush3.msra.mxu1 %v3696_v14 }
  0x3b   :  { %2757 = vmatprep.subr.mxu1 %v4899_v0 }
  0x3c   :  { %2758 = vmatpush3.msra.mxu1 %v3703_v15 }
  0x3d   :  { %2759 = vmatprep.subr.mxu1 %v4899_v0 }
  0x3e   :  { %2760 = vmatpush3.msra.mxu1 %v3710_v16 }
  0x3f   :  { %2761 = vmatprep.subr.mxu1 %v4899_v0 }
  0x40   :  { %2762 = vmatpush3.msra.mxu1 %v3717_v17 }
  0x41   :  { %2763 = vmatprep.subr.mxu1 %v4899_v0 }
  0x42   :  { %2764 = vmatpush3.msra.mxu1 %v3724_v18 }
  0x43   :  { %2765 = vmatprep.subr.mxu1 %v4899_v0 }
  0x44   :  { %2766 = vmatpush3.msra.mxu1 %v3741_v27 }
  0x45   :  { %2767 = vmatprep.subr.mxu1 %v4899_v0 }
  0x46   :  { %2768 = vmatpush3.msra.mxu1 %v3751_v29 }
  0x47   :  { %2769 = vmatprep.subr.mxu1 %v4899_v0 }
  0x48   :  { %2770 = vmatpush3.msra.mxu1 %v3762_v31 }
  0x49   :  { %2772 = vmatmul.mubr.f32.vlgmr.msra.gmra.mxu1 %v3765_v32  ;;  %2809 = vmatprep.subr.mxu1 %v4899_v0 }
  0x4a   :  { %2841 = vmatprep.mubr.msk.f32.mxu1 %vm3531_vm0, %v4899_v0  ;;  %2810 = vmatpush3.msra.mxu1 %v3865_v25 }
  0x4b   :  { %2811 = vmatprep.subr.mxu1 %v4899_v0 }
  0x4c   :  { %2812 = vmatpush3.msra.mxu1 %v3870_v26 }
  0x4d   :  { %2813 = vmatprep.subr.mxu1 %v4899_v0 }
  0xeb   :  { %v160_v20 = vpop.f32.mrf.mxu0 }
  0xec   :  { %v161_v21 = vadd.f32 %v2405_v19, %v160_v20  ;;  %v3841_v19 = vld [vmem:[#allocation6 + $0x20] sm:$0xff]  ;;  %v3847_v20 = vld [vmem:[#allocation6 + $0x18] sm:$0xff] }
  0xed   :  { %v2724_v22 = vpop.f32.mrf.mxu0 }
  0xee   :  { %v164_v23 = vmax.f32 %v161_v21, 0.0  ;;  %v3851_v21 = vld [vmem:[#allocation6 + $0x10] sm:$0xff]  ;;  %v3855_v22 = vld [vmem:[#allocation6 + $0x8] sm:$0xff] }
  0xf0   :  { %2730 = vmatmul.mubr.msk.f32.vlgmr.msra.gmra.mxu0 %vm90_vm1, %v164_v23  ;;  %v3859_v23 = vld [vmem:[#allocation6] sm:$0xff] }
  0xf1   :  { %2736 = vmatprep.mubr.msk.f32.mxu0 %vm3531_vm0, %v4899_v0  ;;  %2733 = vmatpush3.msra.mxu0 %v246_v28 }
  0xf2   :  { %2734 = vmatprep.subr.mxu0 %v4899_v0 }
  0xf3   :  { %2735 = vmatpush3.msra.mxu0 %v245_v30  ;;  %v3878_v30 = vld [vmem:[%s4895_s8 + $0x68] sm:$0xff] }
  0xf4   :  { %2774 = vmatprep.subr.mxu0 %v4899_v0  ;;  %2814 = vmatpush3.msra.mxu1 %v3878_v30 }
  0xf5   :  { %2815 = vmatprep.subr.mxu1 %v4899_v0 }
 0x109   :  { %v419_v38 = vpop.f32.mrf.mxu1 }
 0x10b   :  { %v2773_v39 = vpop.f32.mrf.mxu1 }
 0x1b0   :  { %v240_v34 = vpop.f32.mrf.mxu0 }
 0x1b1   :  { %v241_v35 = vadd.f32 %v2407_v33, %v240_v34  ;;  %v3886_v34 = vld [vmem:[%s4895_s8 + $0x60] sm:$0xff] }
 0x1b2   :  { %v2731_v36 = vpop.f32.mrf.mxu0  ;;  %2816 = vmatpush3.msra.mxu1 %v3886_v34 }
 0x1b3   :  { %v244_v37 = vmax.f32 %v241_v35, 0.0  ;;  %v3894_v35 = vld [vmem:[%s4895_s8 + $0x58] sm:$0xff]  ;;  %2817 = vmatprep.subr.mxu1 %v4899_v0  ;;  %v3901_v36 = vld [vmem:[%s4895_s8 + $0x50] sm:$0xff] }
 0x1b4   :  { %2818 = vmatpush3.msra.mxu1 %v3894_v35 }
 0x1b5   :  { %2737 = vmatmul.mubr.msk.f32.vlgmr.msra.gmra.mxu0 %vm90_vm1, %v244_v37  ;;  %2819 = vmatprep.subr.mxu1 %v4899_v0  ;;  %v3908_v37 = vld [vmem:[%s4895_s8 + $0x48] sm:$0xff] }
 0x1b6   :  { %2806 = vmatprep.mubr.msk.f32.mxu0 %vm3531_vm0, %v4899_v0  ;;  %2775 = vmatpush3.msra.mxu0 %v3798_v57 }
 0x1b7   :  { %2776 = vmatprep.subr.mxu0 %v4899_v0  ;;  %2820 = vmatpush3.msra.mxu1 %v3901_v36 }
 0x1b8   :  { %2777 = vmatpush3.msra.mxu0 %v3800_v58  ;;  %2821 = vmatprep.subr.mxu1 %v4899_v0 }
 0x1b9   :  { %2778 = vmatprep.subr.mxu0 %v4899_v0  ;;  %2822 = vmatpush3.msra.mxu1 %v3908_v37 }
 0x1ba   :  { %2779 = vmatpush3.msra.mxu0 %v3804_v59  ;;  %2823 = vmatprep.subr.mxu1 %v4899_v0 }
 0x1bb   :  { %2780 = vmatprep.subr.mxu0 %v4899_v0 }
 0x1bc   :  { %2781 = vmatpush3.msra.mxu0 %v3808_v60 }
 0x1bd   :  { %2782 = vmatprep.subr.mxu0 %v4899_v0 }
 0x1be   :  { %2783 = vmatpush3.msra.mxu0 %v3812_v61 }
 0x1bf   :  { %2784 = vmatprep.subr.mxu0 %v4899_v0 }
 0x1c0   :  { %2785 = vmatpush3.msra.mxu0 %v3816_v62 }
 0x1c1   :  { %2786 = vmatprep.subr.mxu0 %v4899_v0 }
 0x1c2   :  { %2787 = vmatpush3.msra.mxu0 %v3820_v1 }
 0x1c3   :  { %2788 = vmatprep.subr.mxu0 %v4899_v0 }
 0x1c4   :  { %2789 = vmatpush3.msra.mxu0 %v3825_v2 }
 0x1c5   :  { %2790 = vmatprep.subr.mxu0 %v4899_v0 }
 0x1c6   :  { %2791 = vmatpush3.msra.mxu0 %v3829_v3 }
 0x1c7   :  { %2792 = vmatprep.subr.mxu0 %v4899_v0 }
 0x1c8   :  { %2793 = vmatpush3.msra.mxu0 %v3833_v4 }
 0x1c9   :  { %2794 = vmatprep.subr.mxu0 %v4899_v0 }
 0x1ca   :  { %2795 = vmatpush3.msra.mxu0 %v3837_v5 }
 0x1cb   :  { %2796 = vmatprep.subr.mxu0 %v4899_v0 }
 0x1cc   :  { %2797 = vmatpush3.msra.mxu0 %v3841_v19 }
 0x1cd   :  { %2798 = vmatprep.subr.mxu0 %v4899_v0 }
 0x1ce   :  { %2799 = vmatpush3.msra.mxu0 %v3847_v20 }
 0x1cf   :  { %2800 = vmatprep.subr.mxu0 %v4899_v0 }
 0x1d0   :  { %2801 = vmatpush3.msra.mxu0 %v3851_v21 }
 0x1d1   :  { %2802 = vmatprep.subr.mxu0 %v4899_v0 }
 0x1d2   :  { %2803 = vmatpush3.msra.mxu0 %v3855_v22 }
 0x1d3   :  { %2804 = vmatprep.subr.mxu0 %v4899_v0 }
 0x1d4   :  { %2805 = vmatpush3.msra.mxu0 %v3859_v23 }
 0x1d5   :  { %2844 = vmatprep.subr.mxu0 %v4899_v0 }
 0x275   :  { %v320_v41 = vpop.f32.mrf.mxu0 }
 0x276   :  { %v3785_v42 = vadd.f32 %v2409_v40, %v320_v41  ;;  %v3919_v40 = vld [vmem:[%s4895_s8 + $0x40] sm:$0xff]  ;;  %v3926_v41 = vld [vmem:[%s4895_s8 + $0x38] sm:$0xff] }
 0x277   :  { %v2738_v43 = vpop.f32.mrf.mxu0  ;;  %2824 = vmatpush3.msra.mxu1 %v3919_v40 }
 0x278   :  { %v423_v44 = vadd.f32 %v419_v38, %v3785_v42  ;;  %2825 = vmatprep.subr.mxu1 %v4899_v0  ;;  %v3933_v43 = vld [vmem:[%s4895_s8 + $0x30] sm:$0xff] }
 0x279   :  { %2826 = vmatpush3.msra.mxu1 %v3926_v41 }
 0x27a   :  { %3348 = vtanh.f32 %v423_v44  ;;  %v2412_v47 = vmul.f32 -1.442695, %v423_v44  ;;  %2827 = vmatprep.subr.mxu1 %v4899_v0  ;;  %v3938_v44 = vld [vmem:[%s4895_s8 + $0x28] sm:$0xff] }
 0x27b   :  { %2828 = vmatpush3.msra.mxu1 %v3933_v43 }
 0x27c   :  { %3350 = vpow2.f32 %v2412_v47  ;;  %2829 = vmatprep.subr.mxu1 %v4899_v0  ;;  %v3959_v47 = vld [vmem:[%s4895_s8 + $0x10] sm:$0xff] }
 0x27d   :  { %2830 = vmatpush3.msra.mxu1 %v3938_v44 }
 0x27e   :  { %2831 = vmatprep.subr.mxu1 %v4899_v0 }
 0x287   :  { %v3349_v45 = vpop.eup %3348 }
 0x288   :  { %438 = vrot.lane.b32.xlu0 %v3349_v45, %s3532_s17  ;;  %v3945_v45 = vld [vmem:[%s4895_s8 + $0x20] sm:$0xff] }
 0x289   :  { %v3351_v48 = vpop.eup %3350  ;;  %2832 = vmatpush3.msra.mxu1 %v3945_v45 }
 0x28a   :  { %v427_v49 = vadd.f32 1.0, %v3351_v48  ;;  %2833 = vmatprep.subr.mxu1 %v4899_v0  ;;  %v3966_v48 = vld [vmem:[%s4895_s8 + $0x8] sm:$0xff] }
 0x28c   :  { %433 = vrot.lane.b32.xlu0 %v431_v46, %s3533_s18  ;;  %3352 = vrcp.f32 %v427_v49  ;;  %v3952_v46 = vld [vmem:[%s4895_s8 + $0x18] sm:$0xff]  ;;  %v3973_v49 = vld [vmem:[%s4895_s8] sm:$0xff] }
 0x28d   :  { %2834 = vmatpush3.msra.mxu1 %v3952_v46 }
 0x28e   :  { %2835 = vmatprep.subr.mxu1 %v4899_v0 }
 0x28f   :  { %2836 = vmatpush3.msra.mxu1 %v3959_v47 }
 0x290   :  { %2837 = vmatprep.subr.mxu1 %v4899_v0 }
 0x291   :  { %2838 = vmatpush3.msra.mxu1 %v3966_v48 }
 0x292   :  { %2839 = vmatprep.subr.mxu1 %v4899_v0 }
 0x293   :  { %2840 = vmatpush3.msra.mxu1 %v3973_v49 }
 0x294   :  { %2879 = vmatprep.subr.mxu1 %v4899_v0 }
 0x299   :  { %v3790_v50 = vpop.eup %3352 }
 0x2fa   :  { %v439_v51 = vpop.permute.xlu0 %438 }
 0x2fb   :  { %v441_v52 = vmul.f32 %v3790_v50, %v439_v51 }
 0x2fd   :  { %443 = vrot.lane.b32.xlu1 %v441_v52, %s3533_s18 }
 0x2fe   :  { %v434_v53 = vpop.permute.xlu0 %433 }
 0x2ff   :  { %v436_v54 = vmul.f32 %v3790_v50, %v434_v53 }
 0x36f   :  { %v444_v55 = vpop.permute.xlu1 %443 }
 0x370   :  { %v3795_v56 = vadd.f32 %v444_v55, %v436_v54  ;;  %v4029_v55 = vld [vmem:[#allocation9 + $0x78] sm:$0xff] }
 0x372   :  { %3354 = vtanh.f32 %v3795_v56 }
 0x37f   :  { %v3355_v63 = vpop.eup %3354 }
 0x380   :  { %449 = vrot.lane.b32.xlu1 %v3355_v63, %s3532_s17  ;;  %v4031_v63 = vld [vmem:[#allocation9 + $0x70] sm:$0xff] }
 0x3f2   :  { %v450_v28 = vpop.permute.xlu1 %449 }
 0x3f3   :  { %v452_v33 = vmul.f32 %v3790_v50, %v450_v28  ;;  %v3982_v50 = vld [vmem:[%s4889_s2] sm:$0x3]  ;;  %v4040_v28 = vld [vmem:[#allocation9 + $0x60] sm:$0xff] }
 0x3f5   :  { %459 = vrot.lane.b32.xlu0 %v452_v33, %s3534_s26  ;;  %v4044_v33 = vld [vmem:[#allocation9 + $0x58] sm:$0xff] }
 0x467   :  { %v460_v38 = vpop.permute.xlu0 %459 }
 0x468   :  { %463 = vst.msk [vmem:[#allocation2] sm:$0x3] %vm462_vm4, %v460_v38  ;;  %v4048_v38 = vld [vmem:[#allocation9 + $0x50] sm:$0xff] }
 0x46f   :  { %v464_v39 = vld [vmem:[#allocation2] sm:$0x3] }
 0x470   :  { %2807 = vmatmul.mubr.f32.vlgmr.msra.gmra.mxu0 %v464_v39  ;;  %v4052_v39 = vld [vmem:[#allocation9 + $0x48] sm:$0xff] }
 0x471   :  { %2876 = vmatprep.mubr.msk.f32.mxu0 %vm3531_vm0, %v4899_v0  ;;  %2845 = vmatpush3.msra.mxu0 %v4029_v55 }
 0x472   :  { %2846 = vmatprep.subr.mxu0 %v4899_v0 }
 0x473   :  { %2847 = vmatpush3.msra.mxu0 %v4031_v63 }
 0x474   :  { %2848 = vmatprep.subr.mxu0 %v4899_v0 }
 0x530   :  { %v547_v51 = vpop.f32.mrf.mxu0 }
 0x531   :  { %v551_v52 = vadd.f32 %v547_v51, %v3982_v50  ;;  %v4056_v51 = vld [vmem:[#allocation9 + $0x40] sm:$0xff] }
 0x532   :  { %v2808_v53 = vpop.f32.mrf.mxu0 }
 0x533   :  { %3356 = vtanh.f32 %v551_v52  ;;  %v4060_v52 = vld [vmem:[#allocation9 + $0x38] sm:$0xff]  ;;  %v4064_v53 = vld [vmem:[#allocation9 + $0x30] sm:$0xff] }
 0x540   :  { %v3357_v54 = vpop.eup %3356 }
 0x541   :  { %2842 = vmatmul.mubr.f32.vlgmr.msra.gmra.mxu1 %v3357_v54  ;;  %v4068_v54 = vld [vmem:[#allocation9 + $0x28] sm:$0xff] }
 0x542   :  { %2880 = vmatpush3.msra.mxu1 %v3641_v6  ;;  %2911 = vmatprep.mubr.msk.f32.mxu1 %vm3531_vm0, %v4899_v0 }
 0x543   :  { %2881 = vmatprep.subr.mxu1 %v4899_v0 }
 0x544   :  { %2882 = vmatpush3.msra.mxu1 %v3646_v7 }
 0x545   :  { %2883 = vmatprep.subr.mxu1 %v4899_v0 }
 0x546   :  { %2884 = vmatpush3.msra.mxu1 %v3654_v8 }
 0x547   :  { %2885 = vmatprep.subr.mxu1 %v4899_v0 }
 0x548   :  { %2886 = vmatpush3.msra.mxu1 %v3661_v9 }
 0x549   :  { %2887 = vmatprep.subr.mxu1 %v4899_v0 }
 0x54a   :  { %2888 = vmatpush3.msra.mxu1 %v3668_v10 }
 0x54b   :  { %2889 = vmatprep.subr.mxu1 %v4899_v0 }
 0x54c   :  { %2890 = vmatpush3.msra.mxu1 %v3675_v11 }
 0x54d   :  { %2891 = vmatprep.subr.mxu1 %v4899_v0 }
 0x54e   :  { %2892 = vmatpush3.msra.mxu1 %v3682_v12 }
 0x54f   :  { %2893 = vmatprep.subr.mxu1 %v4899_v0 }
 0x550   :  { %2894 = vmatpush3.msra.mxu1 %v3689_v13 }
 0x551   :  { %2895 = vmatprep.subr.mxu1 %v4899_v0 }
 0x552   :  { %2896 = vmatpush3.msra.mxu1 %v3696_v14 }
 0x553   :  { %2897 = vmatprep.subr.mxu1 %v4899_v0 }
 0x554   :  { %2898 = vmatpush3.msra.mxu1 %v3703_v15  ;;  %v652_v15 = vshrl.u32 %v327_v24, 7  ;;  %v4036_v24 = vld [vmem:[#allocation9 + $0x68] sm:$0xff] }
 0x555   :  { %2899 = vmatprep.subr.mxu1 %v4899_v0  ;;  %2849 = vmatpush3.msra.mxu0 %v4036_v24 }
 0x556   :  { %2900 = vmatpush3.msra.mxu1 %v3710_v16  ;;  %v4022_v16 = vsub.s32 1, %v652_v15  ;;  %2850 = vmatprep.subr.mxu0 %v4899_v0 }
 0x557   :  { %2901 = vmatprep.subr.mxu1 %v4899_v0  ;;  %2851 = vmatpush3.msra.mxu0 %v4040_v28 }
 0x558   :  { %2902 = vmatpush3.msra.mxu1 %v3717_v17  ;;  %4911 = vst [vmem:[#allocation16_spill] sm:$0xff] %v4022_v16  ;;  %v4024_v17 = vsub.s32 0, %v652_v15  ;;  %2852 = vmatprep.subr.mxu0 %v4899_v0 }
 0x559   :  { %2903 = vmatprep.subr.mxu1 %v4899_v0  ;;  %2853 = vmatpush3.msra.mxu0 %v4044_v33 }
 0x55a   :  { %2904 = vmatpush3.msra.mxu1 %v3724_v18  ;;  %4912 = vst [vmem:[#allocation17_spill] sm:$0xff] %v4024_v17  ;;  %2854 = vmatprep.subr.mxu0 %v4899_v0 }
 0x55b   :  { %2905 = vmatprep.subr.mxu1 %v4899_v0  ;;  %2855 = vmatpush3.msra.mxu0 %v4048_v38 }
 0x55c   :  { %2906 = vmatpush3.msra.mxu1 %v3741_v27  ;;  %2856 = vmatprep.subr.mxu0 %v4899_v0 }
 0x55d   :  { %2907 = vmatprep.subr.mxu1 %v4899_v0  ;;  %2857 = vmatpush3.msra.mxu0 %v4052_v39 }
 0x55e   :  { %2908 = vmatpush3.msra.mxu1 %v3751_v29  ;;  %2858 = vmatprep.subr.mxu0 %v4899_v0 }
 0x55f   :  { %2909 = vmatprep.subr.mxu1 %v4899_v0  ;;  %2859 = vmatpush3.msra.mxu0 %v4056_v51 }
 0x560   :  { %2910 = vmatpush3.msra.mxu1 %v3762_v31  ;;  %2860 = vmatprep.subr.mxu0 %v4899_v0 }
 0x561   :  { %2949 = vmatprep.subr.mxu1 %v4899_v0  ;;  %2861 = vmatpush3.msra.mxu0 %v4060_v52 }
 0x562   :  { %2862 = vmatprep.subr.mxu0 %v4899_v0 }
 0x563   :  { %2863 = vmatpush3.msra.mxu0 %v4064_v53 }
 0x564   :  { %2864 = vmatprep.subr.mxu0 %v4899_v0 }
 0x565   :  { %2865 = vmatpush3.msra.mxu0 %v4068_v54 }
 0x566   :  { %2866 = vmatprep.subr.mxu0 %v4899_v0 }
 0x601   :  { %v635_v6 = vpop.f32.mrf.mxu1 }
 0x602   :  { %v640_v7 = vsel %vm639_vm5, %v635_v6, -inf }
 0x603   :  { %641 = vmax.xlane.f32.xlu1 %v640_v7  ;;  %v2843_v8 = vpop.f32.mrf.mxu1  ;;  %v4081_v7 = vld [vmem:[%s4888_s1 + $0x8] sm:$0xff] }
 0x604   :  { %v4086_v8 = vld [vmem:[%s4888_s1] sm:$0xff] }
 0x605   :  { %4913 = vst [vmem:[#allocation18_spill] sm:$0xff] %v4086_v8 }
 0x68c   :  { %v642_v9 = vpop.xlane.xlu1 %641 }
 0x68d   :  { %v643_v10 = vsub.f32 %v635_v6, %v642_v9  ;;  %v4072_v6 = vld [vmem:[#allocation9 + $0x20] sm:$0xff] }
 0x68e   :  { %2867 = vmatpush3.msra.mxu0 %v4072_v6 }
 0x68f   :  { %v644_v11 = vmul.f32 1.442695, %v643_v10  ;;  %2868 = vmatprep.subr.mxu0 %v4899_v0 }
 0x691   :  { %3358 = vpow2.f32 %v644_v11 }
 0x69e   :  { %v3359_v12 = vpop.eup %3358 }
 0x69f   :  { %v646_v13 = vsel %vm639_vm5, %v3359_v12, 0.0 }
 0x6a0   :  { %647 = vadd.xlane.f32.xlu0 %v646_v13 }
 0x729   :  { %v648_v14 = vpop.xlane.xlu0 %647 }
 0x72a   :  { %3360 = vrcp.f32 %v648_v14 }
 0x737   :  { %v3361_v18 = vpop.eup %3360 }
 0x738   :  { %v650_v27 = vmul.f32 %v3361_v18, %v3359_v12 }
 0x73a   :  { %v661_v29 = vrot.slane %v650_v27, %v4022_v16  ;;  %682 = vst.msk [vmem:[#allocation2] sm:$0x3] %vm639_vm5, %v650_v27  ;;  %v654_v31 = vrot.slane %v650_v27, %v4024_v17  ;;  %v4914_v16 = vmov 0.0  }
 0x73c   :  { %663 = vbcast.lane.b32.xlu1 %v661_v29, 256  ;;  %656 = vbcast.lane.b32.xlu0 %v654_v31, 256  ;;  %v4092_v29 = vld [vmem:[#allocation9 + $0x18] sm:$0xff] }
 0x73d   :  { %2869 = vmatpush3.msra.mxu0 %v4092_v29 }
 0x73e   :  { %2870 = vmatprep.subr.mxu0 %v4914_v16 }
 0x740   :  { %684 = vrot.lane.b32.xlu1 %v650_v27, %s3528_s23 }
 0x7ae   :  { %v664_v9 = vpop.permute.xlu1 %663  ;;  %v657_v10 = vpop.permute.xlu0 %656 }
 0x7af   :  { %v666_v11 = vmul.f32 %v664_v9, %v4081_v7  ;;  %v665_v12 = vmul.f32 %v657_v10, %v4086_v8  ;;  %v4097_v9 = vld [vmem:[#allocation9 + $0x10] sm:$0xff] }
 0x7b0   :  { %2871 = vmatpush3.msra.mxu0 %v4097_v9 }
 0x7b1   :  { %v675_v13 = vsel %vm667_vm6, %v666_v11, 0.0  ;;  %v668_v14 = vsel %vm667_vm6, %v665_v12, 0.0  ;;  %2872 = vmatprep.subr.mxu0 %v4914_v16  ;;  %v4102_v12 = vld [vmem:[#allocation9 + $0x8] sm:$0xff] }
 0x7b2   :  { %v676_v15 = vrot.slane %v675_v13, 4  ;;  %v669_v18 = vrot.slane %v668_v14, 4  ;;  %v685_v27 = vpop.permute.xlu1 %684  ;;  %2873 = vmatpush3.msra.mxu0 %v4102_v12 }
 0x7b3   :  { %v687_v31 = vadd.f32 %v685_v27, %v3765_v32  ;;  %2874 = vmatprep.subr.mxu0 %v4914_v16 }
 0x7b4   :  { %v677_v0 = vadd.f32 %v676_v15, %v675_v13  ;;  %v670_v17 = vadd.f32 %v669_v18, %v668_v14  ;;  %v4106_v13 = vld [vmem:[#allocation9] sm:$0xff] }
 0x7b5   :  { %689 = vst.msk [vmem:[#allocation2] sm:$0x3] %vm688_vm7, %v687_v31  ;;  %2875 = vmatpush3.msra.mxu0 %v4106_v13 }
 0x7b6   :  { %v678_v10 = vrot.slane %v677_v0, 2  ;;  %v671_v11 = vrot.slane %v670_v17, 2  ;;  %2914 = vmatprep.subr.mxu0 %v4914_v16 }
 0x7b8   :  { %v679_v32 = vadd.f32 %v678_v10, %v677_v0  ;;  %v672_v27 = vadd.f32 %v671_v11, %v670_v17  ;;  %v793_v0 = vld [vmem:[#allocation4] sm:$0x3] }
 0x7ba   :  { %v680_v14 = vrot.slane %v679_v32, 1  ;;  %v673_v15 = vrot.slane %v672_v27, 1 }
 0x7bc   :  { %v674_v18 = vadd.f32 %v673_v15, %v672_v27  ;;  %v681_v31 = vadd.f32 %v680_v14, %v679_v32 }
 0x7be   :  { %v693_v8 = vsel %vm692_vm8, %v681_v31, %v674_v18 }
 0x7bf   :  { %694 = vrot.lane.b32.xlu0 %v693_v8, %s3535_s7 }
 0x7c3   :  { %795 = vrot.lane.b32.xlu0 %v793_v0, %s3533_s18 }
 0x831   :  { %v695_v17 = vpop.permute.xlu0 %694 }
 0x832   :  { %698 = vst.msk [vmem:[#allocation2] sm:$0x3] %vm697_vm9, %v695_v17  ;;  %v4916_v17 = vld [vmem:[#allocation17_spill] sm:$0xff] }
 0x839   :  { %v699_v10 = vld [vmem:[#allocation2] sm:$0x3] }
 0x83a   :  { %2877 = vmatmul.mubr.f32.vlgmr.msra.gmra.mxu0 %v699_v10 }
 0x83b   :  { %2915 = vmatpush3.msra.mxu0 %v3798_v57  ;;  %2946 = vmatprep.mubr.msk.f32.mxu0 %vm3531_vm0, %v4914_v16 }
 0x83c   :  { %2916 = vmatprep.subr.mxu0 %v4914_v16 }
 0x83d   :  { %2917 = vmatpush3.msra.mxu0 %v3800_v58 }
 0x83e   :  { %2918 = vmatprep.subr.mxu0 %v4914_v16 }
 0x83f   :  { %2919 = vmatpush3.msra.mxu0 %v3804_v59 }
 0x840   :  { %2920 = vmatprep.subr.mxu0 %v4914_v16 }
 0x841   :  { %2921 = vmatpush3.msra.mxu0 %v3808_v60 }
 0x842   :  { %2922 = vmatprep.subr.mxu0 %v4914_v16 }
 0x843   :  { %2923 = vmatpush3.msra.mxu0 %v3812_v61 }
 0x844   :  { %2924 = vmatprep.subr.mxu0 %v4914_v16 }
 0x845   :  { %2925 = vmatpush3.msra.mxu0 %v3816_v62 }
 0x846   :  { %2926 = vmatprep.subr.mxu0 %v4914_v16 }
 0x847   :  { %2927 = vmatpush3.msra.mxu0 %v3820_v1 }
 0x848   :  { %2928 = vmatprep.subr.mxu0 %v4914_v16 }
 0x849   :  { %2929 = vmatpush3.msra.mxu0 %v3825_v2 }
 0x84a   :  { %2930 = vmatprep.subr.mxu0 %v4914_v16 }
 0x84b   :  { %2931 = vmatpush3.msra.mxu0 %v3829_v3 }
 0x84c   :  { %2932 = vmatprep.subr.mxu0 %v4914_v16 }
 0x84d   :  { %2933 = vmatpush3.msra.mxu0 %v3833_v4  ;;  %v796_v4 = vpop.permute.xlu0 %795 }
 0x84e   :  { %2934 = vmatprep.subr.mxu0 %v4914_v16 }
 0x84f   :  { %2935 = vmatpush3.msra.mxu0 %v3837_v5 }
 0x850   :  { %2936 = vmatprep.subr.mxu0 %v4914_v16 }
 0x851   :  { %2937 = vmatpush3.msra.mxu0 %v3841_v19 }
 0x852   :  { %2938 = vmatprep.subr.mxu0 %v4914_v16 }
 0x853   :  { %2939 = vmatpush3.msra.mxu0 %v3847_v20 }
 0x854   :  { %2940 = vmatprep.subr.mxu0 %v4914_v16 }
 0x855   :  { %2941 = vmatpush3.msra.mxu0 %v3851_v21 }
 0x856   :  { %2942 = vmatprep.subr.mxu0 %v4914_v16 }
 0x857   :  { %2943 = vmatpush3.msra.mxu0 %v3855_v22 }
 0x858   :  { %2944 = vmatprep.subr.mxu0 %v4914_v16 }
 0x859   :  { %2945 = vmatpush3.msra.mxu0 %v3859_v23 }
 0x85a   :  { %2984 = vmatprep.subr.mxu0 %v4914_v16 }
 0x8fa   :  { %v782_v57 = vpop.f32.mrf.mxu0 }
 0x8fb   :  { %3362 = vtanh.f32 %v782_v57  ;;  %v2413_v60 = vmul.f32 -1.442695, %v782_v57 }
 0x8fc   :  { %v2878_v58 = vpop.f32.mrf.mxu0 }
 0x8fd   :  { %3364 = vpow2.f32 %v2413_v60  ;;  %v4917_v60 = vld [vmem:[#allocation18_spill] sm:$0xff] }
 0x908   :  { %v3363_v59 = vpop.eup %3362 }
 0x909   :  { %800 = vrot.lane.b32.xlu1 %v3363_v59, %s3532_s17 }
 0x90a   :  { %v3365_v61 = vpop.eup %3364 }
 0x90b   :  { %v789_v62 = vadd.f32 1.0, %v3365_v61 }
 0x90d   :  { %3366 = vrcp.f32 %v789_v62 }
 0x91a   :  { %v3367_v1 = vpop.eup %3366 }
 0x91b   :  { %v798_v5 = vmul.f32 %v3367_v1, %v796_v4 }
 0x97b   :  { %v801_v2 = vpop.permute.xlu1 %800 }
 0x97c   :  { %v803_v3 = vmul.f32 %v3367_v1, %v801_v2 }
 0x97e   :  { %805 = vrot.lane.b32.xlu1 %v803_v3, %s3533_s18 }
 0x9f0   :  { %v806_v19 = vpop.permute.xlu1 %805 }
 0x9f1   :  { %v4150_v20 = vadd.f32 %v806_v19, %v798_v5 }
 0x9f3   :  { %3368 = vtanh.f32 %v4150_v20 }
 0xa00   :  { %v3369_v21 = vpop.eup %3368 }
 0xa01   :  { %811 = vrot.lane.b32.xlu0 %v3369_v21, %s3532_s17 }
 0xa05   :  { %454 = vrot.lane.b32.xlu0 %v3795_v56, %s3536_s14 }
 0xa73   :  { %v812_v22 = vpop.permute.xlu0 %811 }
 0xa74   :  { %v814_v23 = vmul.f32 %v3367_v1, %v812_v22 }
 0xa76   :  { %821 = vrot.lane.b32.xlu1 %v814_v23, %s3537_s4 }
 0xa77   :  { %v455_v8 = vpop.permute.xlu0 %454 }
 0xa78   :  { %457 = vst.msk [vmem:[#allocation3] sm:$0x3] %vm333_vm3, %v455_v8 }
 0xa7f   :  { %v926_v11 = vld [vmem:[#allocation3] sm:$0x3] }
 0xa80   :  { %v928_v32 = vrot.slane %v926_v11, 6 }
 0xa82   :  { %929 = vrot.lane.b32.xlu0 %v928_v32, %s3533_s18 }
 0xae8   :  { %v822_v27 = vpop.permute.xlu1 %821 }
 0xae9   :  { %825 = vst.msk [vmem:[#allocation2] sm:$0x3] %vm824_vm10, %v822_v27 }
 0xaf0   :  { %v826_v14 = vld [vmem:[#allocation2] sm:$0x3] }
 0xaf1   :  { %v4160_v15 = vld [vmem:[#allocation2] sm:$0x3]  ;;  %827 = vst [vmem:[#allocation5] sm:$0x3] %v826_v14 }
 0xaf2   :  { %2912 = vmatmul.mubr.f32.vlgmr.msra.gmra.mxu1 %v4160_v15 }
 0xaf3   :  { %2950 = vmatpush3.msra.mxu1 %v3865_v25  ;;  %2981 = vmatprep.mubr.msk.f32.mxu1 %vm3531_vm0, %v4914_v16 }
 0xaf4   :  { %2951 = vmatprep.subr.mxu1 %v4914_v16 }
 0xaf5   :  { %2952 = vmatpush3.msra.mxu1 %v3870_v26 }
 0xaf6   :  { %2953 = vmatprep.subr.mxu1 %v4914_v16 }
 0xaf7   :  { %2954 = vmatpush3.msra.mxu1 %v3878_v30 }
 0xaf8   :  { %2955 = vmatprep.subr.mxu1 %v4914_v16 }
 0xaf9   :  { %2956 = vmatpush3.msra.mxu1 %v3886_v34 }
 0xafa   :  { %2957 = vmatprep.subr.mxu1 %v4914_v16 }
 0xafb   :  { %2958 = vmatpush3.msra.mxu1 %v3894_v35 }
 0xafc   :  { %2959 = vmatprep.subr.mxu1 %v4914_v16 }
 0xafd   :  { %2960 = vmatpush3.msra.mxu1 %v3901_v36 }
 0xafe   :  { %2961 = vmatprep.subr.mxu1 %v4914_v16 }
 0xaff   :  { %2962 = vmatpush3.msra.mxu1 %v3908_v37 }
 0xb00   :  { %2963 = vmatprep.subr.mxu1 %v4914_v16 }
 0xb01   :  { %2964 = vmatpush3.msra.mxu1 %v3919_v40 }
 0xb02   :  { %2965 = vmatprep.subr.mxu1 %v4914_v16 }
 0xb03   :  { %2966 = vmatpush3.msra.mxu1 %v3926_v41 }
 0xb04   :  { %2967 = vmatprep.subr.mxu1 %v4914_v16 }
 0xb05   :  { %2968 = vmatpush3.msra.mxu1 %v3933_v43 }
 0xb06   :  { %2969 = vmatprep.subr.mxu1 %v4914_v16 }
 0xb07   :  { %2970 = vmatpush3.msra.mxu1 %v3938_v44  ;;  %v930_v44 = vpop.permute.xlu0 %929 }
 0xb08   :  { %2971 = vmatprep.subr.mxu1 %v4914_v16 }
 0xb09   :  { %2972 = vmatpush3.msra.mxu1 %v3945_v45 }
 0xb0a   :  { %2973 = vmatprep.subr.mxu1 %v4914_v16 }
 0xb0b   :  { %2974 = vmatpush3.msra.mxu1 %v3952_v46 }
 0xb0c   :  { %2975 = vmatprep.subr.mxu1 %v4914_v16 }
 0xb0d   :  { %2976 = vmatpush3.msra.mxu1 %v3959_v47 }
 0xb0e   :  { %2977 = vmatprep.subr.mxu1 %v4914_v16 }
 0xb0f   :  { %2978 = vmatpush3.msra.mxu1 %v3966_v48 }
 0xb10   :  { %2979 = vmatprep.subr.mxu1 %v4914_v16 }
 0xb11   :  { %2980 = vmatpush3.msra.mxu1 %v3973_v49 }
 0xb12   :  { %3019 = vmatprep.subr.mxu1 %v4914_v16 }
 0xbb2   :  { %v911_v56 = vpop.f32.mrf.mxu1 }
 0xbb3   :  { %v916_v25 = vrot.slane %v911_v56, 6 }
 0xbb4   :  { %v2913_v26 = vpop.f32.mrf.mxu1 }
 0xbb5   :  { %v918_v30 = vadd.f32 %v916_v25, %v3785_v42 }
 0xbb7   :  { %3370 = vtanh.f32 %v918_v30  ;;  %v2414_v35 = vmul.f32 -1.442695, %v918_v30 }
 0xbb9   :  { %3372 = vpow2.f32 %v2414_v35 }
 0xbc4   :  { %v3371_v34 = vpop.eup %3370 }
 0xbc5   :  { %934 = vrot.lane.b32.xlu1 %v3371_v34, %s3532_s17 }
 0xbc6   :  { %v3373_v36 = vpop.eup %3372 }
 0xbc7   :  { %v922_v37 = vadd.f32 1.0, %v3373_v36 }
 0xbc9   :  { %3374 = vrcp.f32 %v922_v37 }
 0xbd6   :  { %v3375_v40 = vpop.eup %3374 }
 0xbd7   :  { %v932_v45 = vmul.f32 %v3375_v40, %v930_v44 }
 0xc37   :  { %v935_v41 = vpop.permute.xlu1 %934 }
 0xc38   :  { %v937_v43 = vmul.f32 %v3375_v40, %v935_v41 }
 0xc3a   :  { %939 = vrot.lane.b32.xlu1 %v937_v43, %s3533_s18 }
 0xcac   :  { %v940_v46 = vpop.permute.xlu1 %939 }
 0xcad   :  { %v4200_v47 = vadd.f32 %v940_v46, %v932_v45 }
 0xcaf   :  { %3376 = vtanh.f32 %v4200_v47 }
 0xcbc   :  { %v3377_v48 = vpop.eup %3376 }
 0xcbd   :  { %945 = vrot.lane.b32.xlu0 %v3377_v48, %s3532_s17 }
 0xd2f   :  { %v946_v49 = vpop.permute.xlu0 %945 }
 0xd30   :  { %v948_v18 = vmul.f32 %v3375_v40, %v946_v49 }
 0xd32   :  { %956 = vrot.lane.b32.xlu1 %v948_v18, %s3534_s26 }
 0xda4   :  { %v957_v31 = vpop.permute.xlu1 %956 }
 0xda5   :  { %960 = vst.msk [vmem:[#allocation2 - $0x2] sm:$0xc] %vm959_vm11, %v957_v31  ;;  %v4272_v31 = vld [vmem:[%s4893_s6 + $0x78] sm:$0xff] }
 0xdac   :  { %v961_v0 = vld [vmem:[#allocation2] sm:$0x3] }
 0xdad   :  { %2947 = vmatmul.mubr.f32.vlgmr.msra.gmra.mxu0 %v961_v0  ;;  %v4277_v0 = vld [vmem:[%s4893_s6 + $0x70] sm:$0xff] }
 0xdae   :  { %2985 = vmatpush3.msra.mxu0 %v4029_v55  ;;  %3016 = vmatprep.mubr.msk.f32.mxu0 %vm3531_vm0, %v4914_v16 }
 0xdaf   :  { %2986 = vmatprep.subr.mxu0 %v4914_v16 }
 0xdb0   :  { %2987 = vmatpush3.msra.mxu0 %v4031_v63 }
 0xdb1   :  { %2988 = vmatprep.subr.mxu0 %v4914_v16 }
 0xdb2   :  { %2989 = vmatpush3.msra.mxu0 %v4036_v24 }
 0xdb3   :  { %2990 = vmatprep.subr.mxu0 %v4914_v16 }
 0xdb4   :  { %2991 = vmatpush3.msra.mxu0 %v4040_v28 }
 0xdb5   :  { %2992 = vmatprep.subr.mxu0 %v4914_v16 }
 0xdb6   :  { %2993 = vmatpush3.msra.mxu0 %v4044_v33 }
 0xdb7   :  { %2994 = vmatprep.subr.mxu0 %v4914_v16 }
 0xdb8   :  { %2995 = vmatpush3.msra.mxu0 %v4048_v38 }
 0xdb9   :  { %2996 = vmatprep.subr.mxu0 %v4914_v16 }
 0xdba   :  { %2997 = vmatpush3.msra.mxu0 %v4052_v39 }
 0xdbb   :  { %2998 = vmatprep.subr.mxu0 %v4914_v16 }
 0xdbc   :  { %2999 = vmatpush3.msra.mxu0 %v4056_v51 }
 0xdbd   :  { %3000 = vmatprep.subr.mxu0 %v4914_v16 }
 0xdbe   :  { %3001 = vmatpush3.msra.mxu0 %v4060_v52 }
 0xdbf   :  { %3002 = vmatprep.subr.mxu0 %v4914_v16 }
 0xdc0   :  { %3003 = vmatpush3.msra.mxu0 %v4064_v53 }
 0xdc1   :  { %3004 = vmatprep.subr.mxu0 %v4914_v16 }
 0xdc2   :  { %3005 = vmatpush3.msra.mxu0 %v4068_v54 }
 0xdc3   :  { %3006 = vmatprep.subr.mxu0 %v4914_v16 }
 0xdc4   :  { %3007 = vmatpush3.msra.mxu0 %v4072_v6 }
 0xdc5   :  { %3008 = vmatprep.subr.mxu0 %v4914_v16 }
 0xdc6   :  { %3009 = vmatpush3.msra.mxu0 %v4092_v29 }
 0xdc7   :  { %3010 = vmatprep.subr.mxu0 %v4914_v16 }
 0xdc8   :  { %3011 = vmatpush3.msra.mxu0 %v4097_v9 }
 0xdc9   :  { %3012 = vmatprep.subr.mxu0 %v4914_v16 }
 0xdca   :  { %3013 = vmatpush3.msra.mxu0 %v4102_v12  ;;  %v4915_v12 = vld [vmem:[#allocation16_spill] sm:$0xff] }
 0xdcb   :  { %3014 = vmatprep.subr.mxu0 %v4914_v16 }
 0xdcc   :  { %3015 = vmatpush3.msra.mxu0 %v4106_v13 }
 0xdcd   :  { %3054 = vmatprep.subr.mxu0 %v4914_v16 }
 0xe6d   :  { %v1044_v55 = vpop.f32.mrf.mxu0 }
 0xe6e   :  { %v1048_v63 = vadd.f32 %v1044_v55, %v3982_v50  ;;  %v4284_v55 = vld [vmem:[%s4893_s6 + $0x68] sm:$0xff] }
 0xe6f   :  { %v2948_v24 = vpop.f32.mrf.mxu0 }
 0xe70   :  { %3378 = vtanh.f32 %v1048_v63  ;;  %v4293_v63 = vld [vmem:[%s4893_s6 + $0x60] sm:$0xff]  ;;  %v4300_v24 = vld [vmem:[%s4893_s6 + $0x58] sm:$0xff] }
 0xe7d   :  { %v3379_v28 = vpop.eup %3378 }
 0xe7e   :  { %2982 = vmatmul.mubr.f32.vlgmr.msra.gmra.mxu1 %v3379_v28  ;;  %v4314_v28 = vld [vmem:[%s4893_s6 + $0x48] sm:$0xff] }
 0xe7f   :  { %3051 = vmatprep.mubr.msk.f32.mxu1 %vm3531_vm0, %v4914_v16  ;;  %3020 = vmatpush3.msra.mxu1 %v4272_v31 }
 0xe80   :  { %3021 = vmatprep.subr.mxu1 %v4914_v16 }
 0xe81   :  { %3022 = vmatpush3.msra.mxu1 %v4277_v0 }
 0xe82   :  { %3023 = vmatprep.subr.mxu1 %v4914_v16 }
 0xe83   :  { %3024 = vmatpush3.msra.mxu1 %v4284_v55 }
 0xe84   :  { %3025 = vmatprep.subr.mxu1 %v4914_v16 }
 0xe85   :  { %3026 = vmatpush3.msra.mxu1 %v4293_v63 }
 0xe86   :  { %3027 = vmatprep.subr.mxu1 %v4914_v16 }
 0xe87   :  { %3028 = vmatpush3.msra.mxu1 %v4300_v24 }
 0xe88   :  { %3029 = vmatprep.subr.mxu1 %v4914_v16 }
 0xf3e   :  { %v1132_v33 = vpop.f32.mrf.mxu1 }
 0xf3f   :  { %v1136_v38 = vsel %vm639_vm5, %v1132_v33, -inf }
 0xf40   :  { %1137 = vmax.xlane.f32.xlu0 %v1136_v38  ;;  %v2983_v39 = vpop.f32.mrf.mxu1  ;;  %v4328_v38 = vld [vmem:[%s4893_s6 + $0x38] sm:$0xff] }
 0xf41   :  { %v4335_v39 = vld [vmem:[%s4893_s6 + $0x30] sm:$0xff] }
 0xfc9   :  { %v1138_v51 = vpop.xlane.xlu0 %1137 }
 0xfca   :  { %v1139_v52 = vsub.f32 %v1132_v33, %v1138_v51  ;;  %v4321_v33 = vld [vmem:[%s4893_s6 + $0x40] sm:$0xff]  ;;  %v4342_v51 = vld [vmem:[%s4893_s6 + $0x28] sm:$0xff] }
 0xfcc   :  { %v1140_v53 = vmul.f32 1.442695, %v1139_v52  ;;  %v4349_v52 = vld [vmem:[%s4893_s6 + $0x20] sm:$0xff] }
 0xfce   :  { %3380 = vpow2.f32 %v1140_v53  ;;  %v4358_v53 = vld [vmem:[%s4893_s6 + $0x18] sm:$0xff] }
 0xfdb   :  { %v3381_v54 = vpop.eup %3380 }
 0xfdc   :  { %v1142_v6 = vsel %vm639_vm5, %v3381_v54, 0.0 }
 0xfdd   :  { %1143 = vadd.xlane.f32.xlu1 %v1142_v6  ;;  %v4372_v6 = vld [vmem:[%s4893_s6 + $0x8] sm:$0xff] }
0x1066   :  { %v1144_v50 = vpop.xlane.xlu1 %1143 }
0x1067   :  { %3382 = vrcp.f32 %v1144_v50  ;;  %v4379_v50 = vld [vmem:[%s4893_s6] sm:$0xff] }
0x1074   :  { %v3383_v29 = vpop.eup %3382 }
0x1075   :  { %v1146_v9 = vmul.f32 %v3383_v29, %v3381_v54  ;;  %v4365_v54 = vld [vmem:[%s4893_s6 + $0x10] sm:$0xff] }
0x1077   :  { %v1157_v13 = vrot.slane %v1146_v9, %v4915_v12  ;;  %1177 = vst.msk [vmem:[#allocation2] sm:$0x3] %vm639_vm5, %v1146_v9  ;;  %v1150_v10 = vrot.slane %v1146_v9, %v4916_v17 }
0x1079   :  { %1159 = vbcast.lane.b32.xlu1 %v1157_v13, 256  ;;  %1152 = vbcast.lane.b32.xlu0 %v1150_v10, 256 }
0x107d   :  { %1179 = vrot.lane.b32.xlu0 %v1146_v9, %s3528_s23 }
0x1081   :  { %816 = vrot.lane.b32.xlu0 %v4150_v20, %s3536_s14 }
0x10eb   :  { %v1160_v57 = vpop.permute.xlu1 %1159  ;;  %v1153_v58 = vpop.permute.xlu0 %1152 }
0x10ec   :  { %v1162_v59 = vmul.f32 %v1160_v57, %v4081_v7  ;;  %v1161_v61 = vmul.f32 %v1153_v58, %v4917_v60 }
0x10ee   :  { %v1170_v62 = vsel %vm667_vm6, %v1162_v59, 0.0  ;;  %v1163_v1 = vsel %vm667_vm6, %v1161_v61, 0.0 }
0x10ef   :  { %v1171_v2 = vrot.slane %v1170_v62, 4  ;;  %v1164_v3 = vrot.slane %v1163_v1, 4  ;;  %v1180_v4 = vpop.permute.xlu0 %1179 }
0x10f0   :  { %v1182_v5 = vadd.f32 %v1180_v4, %v4160_v15 }
0x10f1   :  { %v1172_v19 = vadd.f32 %v1171_v2, %v1170_v62  ;;  %v1165_v21 = vadd.f32 %v1164_v3, %v1163_v1 }
0x10f2   :  { %1183 = vst.msk [vmem:[#allocation2] sm:$0x3] %vm688_vm7, %v1182_v5 }
0x10f3   :  { %v1173_v20 = vrot.slane %v1172_v19, 2  ;;  %v1166_v22 = vrot.slane %v1165_v21, 2  ;;  %v817_v23 = vpop.permute.xlu0 %816 }
0x10f4   :  { %819 = vst.msk [vmem:[#allocation4] sm:$0x3] %vm333_vm3, %v817_v23 }
0x10f5   :  { %v1174_v7 = vadd.f32 %v1173_v20, %v1172_v19  ;;  %v1167_v8 = vadd.f32 %v1166_v22, %v1165_v21 }
0x10f7   :  { %v1175_v11 = vrot.slane %v1174_v7, 1  ;;  %v1168_v32 = vrot.slane %v1167_v8, 1 }
0x10f9   :  { %v1169_v27 = vadd.f32 %v1168_v32, %v1167_v8  ;;  %v1176_v14 = vadd.f32 %v1175_v11, %v1174_v7  ;;  %v4401_v32 = vld [vmem:[#allocation6 + $0x78] sm:$0xff] }
0x10fb   :  { %v1186_v56 = vsel %vm692_vm8, %v1176_v14, %v1169_v27  ;;  %v1285_v25 = vld [vmem:[#allocation4] sm:$0x3]  ;;  %v4407_v14 = vld [vmem:[#allocation6 + $0x68] sm:$0xff] }
0x10fc   :  { %1187 = vrot.lane.b32.xlu1 %v1186_v56, %s3535_s7  ;;  %1287 = vrot.lane.b32.xlu0 %v1285_v25, %s3533_s18  ;;  %v4403_v27 = vld [vmem:[#allocation6 + $0x70] sm:$0xff]  ;;  %v4411_v56 = vld [vmem:[#allocation6 + $0x60] sm:$0xff]  ;;  %v4415_v25 = vld [vmem:[#allocation6 + $0x58] sm:$0xff] }
0x116e   :  { %v1188_v15 = vpop.permute.xlu1 %1187  ;;  %v1288_v45 = vpop.permute.xlu0 %1287 }
0x116f   :  { %1190 = vst.msk [vmem:[#allocation2] sm:$0x3] %vm697_vm9, %v1188_v15  ;;  %v4419_v15 = vld [vmem:[#allocation6 + $0x50] sm:$0xff] }
0x1176   :  { %v1191_v26 = vld [vmem:[#allocation2] sm:$0x3] }
0x1177   :  { %3017 = vmatmul.mubr.f32.vlgmr.msra.gmra.mxu0 %v1191_v26 }
0x1178   :  { %3086 = vmatprep.mubr.msk.f32.mxu0 %vm3531_vm0, %v4914_v16  ;;  %3055 = vmatpush3.msra.mxu0 %v4401_v32 }
0x1179   :  { %3056 = vmatprep.subr.mxu0 %v4914_v16 }
0x117a   :  { %3057 = vmatpush3.msra.mxu0 %v4403_v27 }
0x117b   :  { %3058 = vmatprep.subr.mxu0 %v4914_v16 }
0x117c   :  { %3059 = vmatpush3.msra.mxu0 %v4407_v14 }
0x117d   :  { %3060 = vmatprep.subr.mxu0 %v4914_v16 }
0x117e   :  { %3061 = vmatpush3.msra.mxu0 %v4411_v56 }
0x117f   :  { %3062 = vmatprep.subr.mxu0 %v4914_v16 }
0x1180   :  { %3063 = vmatpush3.msra.mxu0 %v4415_v25 }
0x1181   :  { %3064 = vmatprep.subr.mxu0 %v4914_v16 }
0x1182   :  { %3065 = vmatpush3.msra.mxu0 %v4419_v15 }
0x1183   :  { %3066 = vmatprep.subr.mxu0 %v4914_v16 }
0x1237   :  { %v1274_v30 = vpop.f32.mrf.mxu0 }
0x1238   :  { %3384 = vtanh.f32 %v1274_v30  ;;  %v2415_v36 = vmul.f32 -1.442695, %v1274_v30  ;;  %v4423_v30 = vld [vmem:[#allocation6 + $0x48] sm:$0xff] }
0x1239   :  { %v3018_v34 = vpop.f32.mrf.mxu0  ;;  %3067 = vmatpush3.msra.mxu0 %v4423_v30 }
0x123a   :  { %3386 = vpow2.f32 %v2415_v36  ;;  %v4428_v34 = vld [vmem:[#allocation6 + $0x40] sm:$0xff]  ;;  %3068 = vmatprep.subr.mxu0 %v4914_v16  ;;  %v4436_v36 = vld [vmem:[#allocation6 + $0x30] sm:$0xff] }
0x123b   :  { %3069 = vmatpush3.msra.mxu0 %v4428_v34 }
0x123c   :  { %3070 = vmatprep.subr.mxu0 %v4914_v16 }
0x1245   :  { %v3385_v35 = vpop.eup %3384 }
0x1246   :  { %1292 = vrot.lane.b32.xlu1 %v3385_v35, %s3532_s17  ;;  %v4432_v35 = vld [vmem:[#allocation6 + $0x38] sm:$0xff] }
0x1247   :  { %v3387_v37 = vpop.eup %3386  ;;  %3071 = vmatpush3.msra.mxu0 %v4432_v35 }
0x1248   :  { %v1281_v40 = vadd.f32 1.0, %v3387_v37  ;;  %3072 = vmatprep.subr.mxu0 %v4914_v16  ;;  %v4440_v37 = vld [vmem:[#allocation6 + $0x28] sm:$0xff] }
0x1249   :  { %3073 = vmatpush3.msra.mxu0 %v4436_v36 }
0x124a   :  { %3388 = vrcp.f32 %v1281_v40  ;;  %3074 = vmatprep.subr.mxu0 %v4914_v16  ;;  %v4444_v40 = vld [vmem:[#allocation6 + $0x20] sm:$0xff] }
0x124b   :  { %3075 = vmatpush3.msra.mxu0 %v4440_v37 }
0x124c   :  { %3076 = vmatprep.subr.mxu0 %v4914_v16 }
0x124d   :  { %3077 = vmatpush3.msra.mxu0 %v4444_v40 }
0x124e   :  { %3078 = vmatprep.subr.mxu0 %v4914_v16 }
0x1257   :  { %v3389_v41 = vpop.eup %3388 }
0x1258   :  { %v1290_v46 = vmul.f32 %v3389_v41, %v1288_v45  ;;  %v4460_v45 = vld [vmem:[#allocation6] sm:$0xff] }
0x12b8   :  { %v1293_v43 = vpop.permute.xlu1 %1292 }
0x12b9   :  { %v1295_v44 = vmul.f32 %v3389_v41, %v1293_v43  ;;  %v4452_v43 = vld [vmem:[#allocation6 + $0x10] sm:$0xff] }
0x12bb   :  { %1297 = vrot.lane.b32.xlu1 %v1295_v44, %s3533_s18  ;;  %v4456_v44 = vld [vmem:[#allocation6 + $0x8] sm:$0xff] }
0x132d   :  { %v1298_v48 = vpop.permute.xlu1 %1297 }
0x132e   :  { %v4265_v49 = vadd.f32 %v1298_v48, %v1290_v46  ;;  %v4468_v46 = vld [vmem:[%s4895_s8 + $0x78] sm:$0xff]  ;;  %v4473_v48 = vld [vmem:[%s4895_s8 + $0x70] sm:$0xff] }
0x1330   :  { %3390 = vtanh.f32 %v4265_v49 }
0x133d   :  { %v3391_v18 = vpop.eup %3390 }
0x133e   :  { %1303 = vrot.lane.b32.xlu0 %v3391_v18, %s3532_s17 }
0x1342   :  { %950 = vrot.lane.b32.xlu0 %v4200_v47, %s3536_s14  ;;  %v4307_v47 = vld [vmem:[%s4893_s6 + $0x50] sm:$0xff] }
0x1343   :  { %3030 = vmatpush3.msra.mxu1 %v4307_v47 }
0x1344   :  { %3031 = vmatprep.subr.mxu1 %v4914_v16 }
0x1345   :  { %3032 = vmatpush3.msra.mxu1 %v4314_v28 }
0x1346   :  { %3033 = vmatprep.subr.mxu1 %v4914_v16 }
0x1347   :  { %3034 = vmatpush3.msra.mxu1 %v4321_v33 }
0x1348   :  { %3035 = vmatprep.subr.mxu1 %v4914_v16 }
0x1349   :  { %3036 = vmatpush3.msra.mxu1 %v4328_v38 }
0x134a   :  { %3037 = vmatprep.subr.mxu1 %v4914_v16 }
0x134b   :  { %3038 = vmatpush3.msra.mxu1 %v4335_v39 }
0x134c   :  { %3039 = vmatprep.subr.mxu1 %v4914_v16 }
0x134d   :  { %3040 = vmatpush3.msra.mxu1 %v4342_v51 }
0x134e   :  { %3041 = vmatprep.subr.mxu1 %v4914_v16 }
0x134f   :  { %3042 = vmatpush3.msra.mxu1 %v4349_v52 }
0x1350   :  { %3043 = vmatprep.subr.mxu1 %v4914_v16 }
0x1351   :  { %3044 = vmatpush3.msra.mxu1 %v4358_v53 }
0x1352   :  { %3045 = vmatprep.subr.mxu1 %v4914_v16 }
0x1353   :  { %3046 = vmatpush3.msra.mxu1 %v4365_v54 }
0x1354   :  { %3047 = vmatprep.subr.mxu1 %v4914_v16 }
0x1355   :  { %3048 = vmatpush3.msra.mxu1 %v4372_v6 }
0x1356   :  { %3049 = vmatprep.subr.mxu1 %v4914_v16 }
0x1357   :  { %3050 = vmatpush3.msra.mxu1 %v4379_v50 }
0x1358   :  { %3089 = vmatprep.subr.mxu1 %v4914_v16 }
0x13b0   :  { %v1304_v29 = vpop.permute.xlu0 %1303 }
0x13b1   :  { %v1306_v9 = vmul.f32 %v3389_v41, %v1304_v29  ;;  %v4450_v41 = vld [vmem:[#allocation6 + $0x18] sm:$0xff] }
0x13b2   :  { %3079 = vmatpush3.msra.mxu0 %v4450_v41  ;;  %v4481_v29 = vld [vmem:[%s4895_s8 + $0x68] sm:$0xff] }
0x13b3   :  { %1313 = vrot.lane.b32.xlu1 %v1306_v9, %s3537_s4  ;;  %3080 = vmatprep.subr.mxu0 %v4914_v16 }
0x13b4   :  { %v951_v13 = vpop.permute.xlu0 %950  ;;  %3081 = vmatpush3.msra.mxu0 %v4452_v43 }
0x13b5   :  { %954 = vst.msk [vmem:[#allocation3 - $0x2] sm:$0xc] %vm953_vm12, %v951_v13  ;;  %3082 = vmatprep.subr.mxu0 %v4914_v16  ;;  %v4489_v13 = vld [vmem:[%s4895_s8 + $0x60] sm:$0xff] }
0x13b6   :  { %3083 = vmatpush3.msra.mxu0 %v4456_v44 }
0x13b7   :  { %3084 = vmatprep.subr.mxu0 %v4914_v16 }
0x13b8   :  { %3085 = vmatpush3.msra.mxu0 %v4460_v45 }
0x13b9   :  { %3124 = vmatprep.subr.mxu0 %v4914_v16 }
0x13bc   :  { %v1417_v10 = vld [vmem:[#allocation3] sm:$0x3] }
0x13bd   :  { %v1419_v57 = vrot.slane %v1417_v10, 4  ;;  %v4497_v10 = vld [vmem:[%s4895_s8 + $0x58] sm:$0xff] }
0x13bf   :  { %1420 = vrot.lane.b32.xlu0 %v1419_v57, %s3533_s18  ;;  %v4504_v57 = vld [vmem:[%s4895_s8 + $0x50] sm:$0xff] }
0x1425   :  { %v1314_v58 = vpop.permute.xlu1 %1313 }
0x1426   :  { %1316 = vst.msk [vmem:[#allocation2] sm:$0x3] %vm824_vm10, %v1314_v58  ;;  %v4511_v58 = vld [vmem:[%s4895_s8 + $0x48] sm:$0xff] }
0x142d   :  { %v1317_v59 = vld [vmem:[#allocation2] sm:$0x3] }
0x142e   :  { %v4386_v60 = vld [vmem:[#allocation2] sm:$0x3]  ;;  %1318 = vst [vmem:[#allocation5 + $0x2] sm:$0x3] %v1317_v59 }
0x142f   :  { %3052 = vmatmul.mubr.f32.vlgmr.msra.gmra.mxu1 %v4386_v60 }
0x1430   :  { %3121 = vmatprep.mubr.msk.f32.mxu1 %vm3531_vm0, %v4914_v16  ;;  %3090 = vmatpush3.msra.mxu1 %v4468_v46 }
0x1431   :  { %v1421_v23 = vpop.permute.xlu0 %1420  ;;  %3091 = vmatprep.subr.mxu1 %v4914_v16 }
0x1432   :  { %3092 = vmatpush3.msra.mxu1 %v4473_v48 }
0x1433   :  { %3093 = vmatprep.subr.mxu1 %v4914_v16 }
0x1434   :  { %3094 = vmatpush3.msra.mxu1 %v4481_v29 }
0x1435   :  { %3095 = vmatprep.subr.mxu1 %v4914_v16 }
0x1436   :  { %3096 = vmatpush3.msra.mxu1 %v4489_v13 }
0x1437   :  { %3097 = vmatprep.subr.mxu1 %v4914_v16 }
0x1438   :  { %3098 = vmatpush3.msra.mxu1 %v4497_v10 }
0x1439   :  { %3099 = vmatprep.subr.mxu1 %v4914_v16 }
0x143a   :  { %3100 = vmatpush3.msra.mxu1 %v4504_v57 }
0x143b   :  { %3101 = vmatprep.subr.mxu1 %v4914_v16 }
0x143c   :  { %3102 = vmatpush3.msra.mxu1 %v4511_v58 }
0x143d   :  { %3103 = vmatprep.subr.mxu1 %v4914_v16 }
0x14ef   :  { %v1402_v61 = vpop.f32.mrf.mxu1 }
0x14f0   :  { %v1407_v62 = vrot.slane %v1402_v61, 4 }
0x14f1   :  { %v3053_v1 = vpop.f32.mrf.mxu1 }
0x14f2   :  { %v1409_v2 = vadd.f32 %v1407_v62, %v3785_v42  ;;  %v4522_v62 = vld [vmem:[%s4895_s8 + $0x40] sm:$0xff]  ;;  %v4529_v1 = vld [vmem:[%s4895_s8 + $0x38] sm:$0xff] }
0x14f3   :  { %3104 = vmatpush3.msra.mxu1 %v4522_v62 }
0x14f4   :  { %3392 = vtanh.f32 %v1409_v2  ;;  %v2416_v4 = vmul.f32 -1.442695, %v1409_v2  ;;  %3105 = vmatprep.subr.mxu1 %v4914_v16  ;;  %v4536_v2 = vld [vmem:[%s4895_s8 + $0x30] sm:$0xff] }
0x14f5   :  { %3106 = vmatpush3.msra.mxu1 %v4529_v1 }
0x14f6   :  { %3394 = vpow2.f32 %v2416_v4  ;;  %3107 = vmatprep.subr.mxu1 %v4914_v16  ;;  %v4548_v4 = vld [vmem:[%s4895_s8 + $0x20] sm:$0xff] }
0x14f7   :  { %3108 = vmatpush3.msra.mxu1 %v4536_v2 }
0x14f8   :  { %3109 = vmatprep.subr.mxu1 %v4914_v16 }
0x1501   :  { %v3393_v3 = vpop.eup %3392 }
0x1502   :  { %1425 = vrot.lane.b32.xlu1 %v3393_v3, %s3532_s17  ;;  %v4541_v3 = vld [vmem:[%s4895_s8 + $0x28] sm:$0xff] }
0x1503   :  { %v3395_v5 = vpop.eup %3394  ;;  %3110 = vmatpush3.msra.mxu1 %v4541_v3 }
0x1504   :  { %v1413_v19 = vadd.f32 1.0, %v3395_v5  ;;  %3111 = vmatprep.subr.mxu1 %v4914_v16  ;;  %v4555_v5 = vld [vmem:[%s4895_s8 + $0x18] sm:$0xff] }
0x1505   :  { %3112 = vmatpush3.msra.mxu1 %v4548_v4 }
0x1506   :  { %3396 = vrcp.f32 %v1413_v19  ;;  %3113 = vmatprep.subr.mxu1 %v4914_v16  ;;  %v4562_v19 = vld [vmem:[%s4895_s8 + $0x10] sm:$0xff] }
0x1507   :  { %3114 = vmatpush3.msra.mxu1 %v4555_v5 }
0x1508   :  { %3115 = vmatprep.subr.mxu1 %v4914_v16 }
0x1509   :  { %3116 = vmatpush3.msra.mxu1 %v4562_v19 }
0x150a   :  { %3117 = vmatprep.subr.mxu1 %v4914_v16 }
0x1513   :  { %v4393_v21 = vpop.eup %3396 }
0x1514   :  { %v1423_v7 = vmul.f32 %v4393_v21, %v1421_v23  ;;  %v4585_v23 = vld [vmem:[%s4889_s2] sm:$0x3] }
0x1515   :  { %4918 = vst [vmem:[#allocation18_spill] sm:$0xff] %v4585_v23 }
0x1574   :  { %v1426_v20 = vpop.permute.xlu1 %1425 }
0x1575   :  { %v1428_v22 = vmul.f32 %v4393_v21, %v1426_v20  ;;  %v4576_v20 = vld [vmem:[%s4895_s8] sm:$0xff] }
0x1577   :  { %1430 = vrot.lane.b32.xlu1 %v1428_v22, %s3533_s18 }
0x15e9   :  { %v1431_v8 = vpop.permute.xlu1 %1430 }
0x15ea   :  { %v4398_v11 = vadd.f32 %v1431_v8, %v1423_v7 }
0x15ec   :  { %3398 = vtanh.f32 %v4398_v11 }
0x15f9   :  { %v3399_v26 = vpop.eup %3398 }
0x15fa   :  { %1436 = vrot.lane.b32.xlu0 %v3399_v26, %s3532_s17 }
0x166c   :  { %v1437_v18 = vpop.permute.xlu0 %1436 }
0x166d   :  { %v1439_v9 = vmul.f32 %v4393_v21, %v1437_v18  ;;  %v4569_v21 = vld [vmem:[%s4895_s8 + $0x8] sm:$0xff] }
0x166e   :  { %3118 = vmatpush3.msra.mxu1 %v4569_v21  ;;  %v4638_v18 = vld [vmem:[#allocation9 + $0x60] sm:$0xff] }
0x166f   :  { %1447 = vrot.lane.b32.xlu1 %v1439_v9, %s3534_s26  ;;  %3119 = vmatprep.subr.mxu1 %v4914_v16  ;;  %v4644_v9 = vld [vmem:[#allocation9 + $0x58] sm:$0xff] }
0x1670   :  { %3120 = vmatpush3.msra.mxu1 %v4576_v20 }
0x1671   :  { %3159 = vmatprep.subr.mxu1 %v4914_v16 }
0x16e1   :  { %v1448_v59 = vpop.permute.xlu1 %1447 }
0x16e2   :  { %1451 = vst.msk [vmem:[#allocation2 - $0x4] sm:$0x30] %vm1450_vm13, %v1448_v59  ;;  %v4648_v59 = vld [vmem:[#allocation9 + $0x50] sm:$0xff] }
0x16e9   :  { %v1452_v61 = vld [vmem:[#allocation2] sm:$0x3] }
0x16ea   :  { %3087 = vmatmul.mubr.f32.vlgmr.msra.gmra.mxu0 %v1452_v61  ;;  %v4652_v61 = vld [vmem:[#allocation9 + $0x48] sm:$0xff] }
0x16eb   :  { %3156 = vmatprep.mubr.msk.f32.mxu0 %vm3531_vm0, %v4914_v16 }
0x17aa   :  { %v1535_v22 = vpop.f32.mrf.mxu0 }
0x17ab   :  { %v1539_v7 = vadd.f32 %v4585_v23, %v1535_v22  ;;  %v4660_v22 = vld [vmem:[#allocation9 + $0x38] sm:$0xff] }
0x17ac   :  { %v3088_v8 = vpop.f32.mrf.mxu0 }
0x17ad   :  { %3400 = vtanh.f32 %v1539_v7  ;;  %v4664_v7 = vld [vmem:[#allocation9 + $0x30] sm:$0xff]  ;;  %v4668_v8 = vld [vmem:[#allocation9 + $0x28] sm:$0xff] }
0x17ba   :  { %v3401_v26 = vpop.eup %3400 }
0x17bb   :  { %3122 = vmatmul.mubr.f32.vlgmr.msra.gmra.mxu1 %v3401_v26  ;;  %v4672_v26 = vld [vmem:[#allocation9 + $0x20] sm:$0xff] }
0x17bc   :  { %3160 = vmatpush3.msra.mxu1 %v4272_v31  ;;  %3191 = vmatprep.mubr.msk.f32.mxu1 %vm3531_vm0, %v4914_v16 }
0x17bd   :  { %3161 = vmatprep.subr.mxu1 %v4914_v16 }
0x17be   :  { %3162 = vmatpush3.msra.mxu1 %v4277_v0 }
0x17bf   :  { %3163 = vmatprep.subr.mxu1 %v4914_v16 }
0x17c0   :  { %3164 = vmatpush3.msra.mxu1 %v4284_v55 }
0x17c1   :  { %3165 = vmatprep.subr.mxu1 %v4914_v16 }
0x17c2   :  { %3166 = vmatpush3.msra.mxu1 %v4293_v63 }
0x17c3   :  { %3167 = vmatprep.subr.mxu1 %v4914_v16 }
0x17c4   :  { %3168 = vmatpush3.msra.mxu1 %v4300_v24 }
0x17c5   :  { %3169 = vmatprep.subr.mxu1 %v4914_v16 }
0x17c6   :  { %3170 = vmatpush3.msra.mxu1 %v4307_v47 }
0x17c7   :  { %3171 = vmatprep.subr.mxu1 %v4914_v16 }
0x17c8   :  { %3172 = vmatpush3.msra.mxu1 %v4314_v28 }
0x17c9   :  { %3173 = vmatprep.subr.mxu1 %v4914_v16 }
0x17ca   :  { %3174 = vmatpush3.msra.mxu1 %v4321_v33 }
0x17cb   :  { %3175 = vmatprep.subr.mxu1 %v4914_v16 }
0x17cc   :  { %3176 = vmatpush3.msra.mxu1 %v4328_v38 }
0x17cd   :  { %3177 = vmatprep.subr.mxu1 %v4914_v16 }
0x17ce   :  { %3178 = vmatpush3.msra.mxu1 %v4335_v39 }
0x17cf   :  { %3179 = vmatprep.subr.mxu1 %v4914_v16 }
0x17d0   :  { %3180 = vmatpush3.msra.mxu1 %v4342_v51 }
0x17d1   :  { %3181 = vmatprep.subr.mxu1 %v4914_v16 }
0x17d2   :  { %3182 = vmatpush3.msra.mxu1 %v4349_v52 }
0x17d3   :  { %3183 = vmatprep.subr.mxu1 %v4914_v16 }
0x17d4   :  { %3184 = vmatpush3.msra.mxu1 %v4358_v53 }
0x17d5   :  { %3185 = vmatprep.subr.mxu1 %v4914_v16 }
0x17d6   :  { %3186 = vmatpush3.msra.mxu1 %v4365_v54  ;;  %v4627_v54 = vld [vmem:[#allocation9 + $0x78] sm:$0xff] }
0x17d7   :  { %3187 = vmatprep.subr.mxu1 %v4914_v16  ;;  %3125 = vmatpush3.msra.mxu0 %v4627_v54 }
0x17d8   :  { %3188 = vmatpush3.msra.mxu1 %v4372_v6  ;;  %v4629_v6 = vld [vmem:[#allocation9 + $0x70] sm:$0xff]  ;;  %3126 = vmatprep.subr.mxu0 %v4914_v16 }
0x17d9   :  { %3189 = vmatprep.subr.mxu1 %v4914_v16  ;;  %3127 = vmatpush3.msra.mxu0 %v4629_v6 }
0x17da   :  { %3190 = vmatpush3.msra.mxu1 %v4379_v50  ;;  %v4634_v50 = vld [vmem:[#allocation9 + $0x68] sm:$0xff]  ;;  %3128 = vmatprep.subr.mxu0 %v4914_v16 }
0x17db   :  { %3229 = vmatprep.subr.mxu1 %v4914_v16  ;;  %3129 = vmatpush3.msra.mxu0 %v4634_v50 }
0x17dc   :  { %3130 = vmatprep.subr.mxu0 %v4914_v16 }
0x17dd   :  { %3131 = vmatpush3.msra.mxu0 %v4638_v18 }
0x17de   :  { %3132 = vmatprep.subr.mxu0 %v4914_v16 }
0x17df   :  { %3133 = vmatpush3.msra.mxu0 %v4644_v9 }
0x17e0   :  { %3134 = vmatprep.subr.mxu0 %v4914_v16 }
0x17e1   :  { %3135 = vmatpush3.msra.mxu0 %v4648_v59 }
0x17e2   :  { %3136 = vmatprep.subr.mxu0 %v4914_v16 }
0x17e3   :  { %3137 = vmatpush3.msra.mxu0 %v4652_v61 }
0x17e4   :  { %3138 = vmatprep.subr.mxu0 %v4914_v16 }
0x187b   :  { %v1623_v31 = vpop.f32.mrf.mxu1 }
0x187c   :  { %v1627_v0 = vsel %vm639_vm5, %v1623_v31, -inf }
0x187d   :  { %1628 = vmax.xlane.f32.xlu0 %v1627_v0  ;;  %v3123_v55 = vpop.f32.mrf.mxu1 }
0x187e   :  { %v4681_v55 = vld [vmem:[%s4888_s1 + $0x8] sm:$0xff] }
0x187f   :  { %4919 = vst [vmem:[#allocation19_spill] sm:$0xff] %v4681_v55 }
0x1906   :  { %v1629_v63 = vpop.xlane.xlu0 %1628 }
0x1907   :  { %v1630_v24 = vsub.f32 %v1623_v31, %v1629_v63 }
0x1909   :  { %v1631_v47 = vmul.f32 1.442695, %v1630_v24  ;;  %v4687_v24 = vld [vmem:[%s4888_s1] sm:$0xff]  ;;  %s3538_s1 = smov [#allocation12]  }
0x190a   :  { %4920 = vst [vmem:[#allocation20_spill] sm:$0xff] %v4687_v24 }
0x190b   :  { %3402 = vpow2.f32 %v1631_v47 }
0x1918   :  { %v3403_v28 = vpop.eup %3402 }
0x1919   :  { %v1633_v33 = vsel %vm639_vm5, %v3403_v28, 0.0 }
0x191a   :  { %1634 = vadd.xlane.f32.xlu1 %v1633_v33 }
0x19a3   :  { %v1635_v38 = vpop.xlane.xlu1 %1634 }
0x19a4   :  { %3404 = vrcp.f32 %v1635_v38 }
0x19b1   :  { %v3405_v39 = vpop.eup %3404 }
0x19b2   :  { %v1637_v51 = vmul.f32 %v3405_v39, %v3403_v28 }
0x19b4   :  { %v1648_v52 = vrot.slane %v1637_v51, %v4915_v12  ;;  %1668 = vst.msk [vmem:[#allocation2] sm:$0x3] %vm639_vm5, %v1637_v51  ;;  %v1641_v53 = vrot.slane %v1637_v51, %v4916_v17  ;;  %v4704_v12 = vld [vmem:[#allocation9] sm:$0xff] }
0x19b6   :  { %1650 = vbcast.lane.b32.xlu1 %v1648_v52, 256  ;;  %1643 = vbcast.lane.b32.xlu0 %v1641_v53, 256  ;;  %v4692_v52 = vld [vmem:[#allocation9 + $0x18] sm:$0xff]  ;;  %v4694_v53 = vld [vmem:[#allocation9 + $0x10] sm:$0xff] }
0x19ba   :  { %1670 = vrot.lane.b32.xlu0 %v1637_v51, %s3528_s23 }
0x19be   :  { %1308 = vrot.lane.b32.xlu0 %v4265_v49, %s3536_s14  ;;  %v4656_v49 = vld [vmem:[#allocation9 + $0x40] sm:$0xff] }
0x19bf   :  { %3139 = vmatpush3.msra.mxu0 %v4656_v49 }
0x19c0   :  { %3140 = vmatprep.subr.mxu0 %v4914_v16 }
0x19c1   :  { %3141 = vmatpush3.msra.mxu0 %v4660_v22 }
0x19c2   :  { %3142 = vmatprep.subr.mxu0 %v4914_v16 }
0x19c3   :  { %3143 = vmatpush3.msra.mxu0 %v4664_v7 }
0x19c4   :  { %3144 = vmatprep.subr.mxu0 %v4914_v16 }
0x19c5   :  { %3145 = vmatpush3.msra.mxu0 %v4668_v8 }
0x19c6   :  { %3146 = vmatprep.subr.mxu0 %v4914_v16 }
0x19c7   :  { %3147 = vmatpush3.msra.mxu0 %v4672_v26 }
0x19c8   :  { %3148 = vmatprep.subr.mxu0 %v4914_v16 }
0x19c9   :  { %3149 = vmatpush3.msra.mxu0 %v4692_v52 }
0x19ca   :  { %3150 = vmatprep.subr.mxu0 %v4914_v16 }
0x19cb   :  { %3151 = vmatpush3.msra.mxu0 %v4694_v53 }
0x19cc   :  { %3152 = vmatprep.subr.mxu0 %v4914_v16 }
0x1a28   :  { %v1651_v31 = vpop.permute.xlu1 %1650  ;;  %v1644_v0 = vpop.permute.xlu0 %1643 }
0x1a29   :  { %v1653_v63 = vmul.f32 %v4681_v55, %v1651_v31  ;;  %v1652_v47 = vmul.f32 %v4687_v24, %v1644_v0  ;;  %v4699_v0 = vld [vmem:[#allocation9 + $0x8] sm:$0xff] }
0x1a2a   :  { %3153 = vmatpush3.msra.mxu0 %v4699_v0 }
0x1a2b   :  { %v1661_v28 = vsel %vm667_vm6, %v1653_v63, 0.0  ;;  %v1654_v33 = vsel %vm667_vm6, %v1652_v47, 0.0  ;;  %3154 = vmatprep.subr.mxu0 %v4914_v16 }
0x1a2c   :  { %v1662_v38 = vrot.slane %v1661_v28, 4  ;;  %v1655_v39 = vrot.slane %v1654_v33, 4  ;;  %v1671_v51 = vpop.permute.xlu0 %1670  ;;  %3155 = vmatpush3.msra.mxu0 %v4704_v12 }
0x1a2d   :  { %v1673_v31 = vadd.f32 %v1671_v51, %v4386_v60  ;;  %3194 = vmatprep.subr.mxu0 %v4914_v16 }
0x1a2e   :  { %v1663_v55 = vadd.f32 %v1662_v38, %v1661_v28  ;;  %v1656_v17 = vadd.f32 %v1655_v39, %v1654_v33 }
0x1a2f   :  { %1674 = vst.msk [vmem:[#allocation2] sm:$0x3] %vm688_vm7, %v1673_v31 }
0x1a30   :  { %v1664_v63 = vrot.slane %v1663_v55, 2  ;;  %v1657_v47 = vrot.slane %v1656_v17, 2  ;;  %v1309_v24 = vpop.permute.xlu0 %1308 }
0x1a31   :  { %1311 = vst.msk [vmem:[#allocation4] sm:$0x3] %vm333_vm3, %v1309_v24 }
0x1a32   :  { %v1665_v60 = vadd.f32 %v1664_v63, %v1663_v55  ;;  %v1658_v28 = vadd.f32 %v1657_v47, %v1656_v17 }
0x1a34   :  { %v1666_v33 = vrot.slane %v1665_v60, 1  ;;  %v1659_v38 = vrot.slane %v1658_v28, 1 }
0x1a36   :  { %v1660_v39 = vadd.f32 %v1659_v38, %v1658_v28  ;;  %v1667_v51 = vadd.f32 %v1666_v33, %v1665_v60 }
0x1a38   :  { %v1677_v31 = vsel %vm692_vm8, %v1667_v51, %v1660_v39  ;;  %v1776_v23 = vld [vmem:[#allocation4] sm:$0x3]  ;;  %v4922_v39 = vld [vmem:[#allocation16_spill] sm:$0xff] }
0x1a39   :  { %1678 = vrot.lane.b32.xlu1 %v1677_v31, %s3535_s7  ;;  %1778 = vrot.lane.b32.xlu0 %v1776_v23, %s3533_s18  ;;  %v4923_v31 = vld [vmem:[#allocation17_spill] sm:$0xff] }
0x1aab   :  { %v1679_v24 = vpop.permute.xlu1 %1678 }
0x1aac   :  { %1681 = vst.msk [vmem:[#allocation2] sm:$0x3] %vm697_vm9, %v1679_v24 }
0x1ab3   :  { %v1682_v17 = vld [vmem:[#allocation2] sm:$0x3] }
0x1ab4   :  { %3157 = vmatmul.mubr.f32.vlgmr.msra.gmra.mxu0 %v1682_v17 }
0x1ab5   :  { %3195 = vmatpush3.msra.mxu0 %v4401_v32  ;;  %3226 = vmatprep.mubr.msk.f32.mxu0 %vm3531_vm0, %v4914_v16 }
0x1ab6   :  { %3196 = vmatprep.subr.mxu0 %v4914_v16 }
0x1ab7   :  { %3197 = vmatpush3.msra.mxu0 %v4403_v27 }
0x1ab8   :  { %3198 = vmatprep.subr.mxu0 %v4914_v16 }
0x1ab9   :  { %3199 = vmatpush3.msra.mxu0 %v4407_v14 }
0x1aba   :  { %3200 = vmatprep.subr.mxu0 %v4914_v16 }
0x1abb   :  { %3201 = vmatpush3.msra.mxu0 %v4411_v56 }
0x1abc   :  { %3202 = vmatprep.subr.mxu0 %v4914_v16 }
0x1abd   :  { %3203 = vmatpush3.msra.mxu0 %v4415_v25 }
0x1abe   :  { %3204 = vmatprep.subr.mxu0 %v4914_v16 }
0x1abf   :  { %3205 = vmatpush3.msra.mxu0 %v4419_v15 }
0x1ac0   :  { %3206 = vmatprep.subr.mxu0 %v4914_v16 }
0x1ac1   :  { %3207 = vmatpush3.msra.mxu0 %v4423_v30 }
0x1ac2   :  { %3208 = vmatprep.subr.mxu0 %v4914_v16 }
0x1ac3   :  { %3209 = vmatpush3.msra.mxu0 %v4428_v34 }
0x1ac4   :  { %3210 = vmatprep.subr.mxu0 %v4914_v16 }
0x1ac5   :  { %3211 = vmatpush3.msra.mxu0 %v4432_v35 }
0x1ac6   :  { %3212 = vmatprep.subr.mxu0 %v4914_v16 }
0x1ac7   :  { %3213 = vmatpush3.msra.mxu0 %v4436_v36  ;;  %v1779_v36 = vpop.permute.xlu0 %1778 }
0x1ac8   :  { %3214 = vmatprep.subr.mxu0 %v4914_v16 }
0x1ac9   :  { %3215 = vmatpush3.msra.mxu0 %v4440_v37 }
0x1aca   :  { %3216 = vmatprep.subr.mxu0 %v4914_v16 }
0x1acb   :  { %3217 = vmatpush3.msra.mxu0 %v4444_v40 }
0x1acc   :  { %3218 = vmatprep.subr.mxu0 %v4914_v16 }
0x1acd   :  { %3219 = vmatpush3.msra.mxu0 %v4450_v41 }
0x1ace   :  { %3220 = vmatprep.subr.mxu0 %v4914_v16 }
0x1acf   :  { %3221 = vmatpush3.msra.mxu0 %v4452_v43 }
0x1ad0   :  { %3222 = vmatprep.subr.mxu0 %v4914_v16 }
0x1ad1   :  { %3223 = vmatpush3.msra.mxu0 %v4456_v44 }
0x1ad2   :  { %3224 = vmatprep.subr.mxu0 %v4914_v16 }
0x1ad3   :  { %3225 = vmatpush3.msra.mxu0 %v4460_v45 }
0x1ad4   :  { %3264 = vmatprep.subr.mxu0 %v4914_v16 }
0x1b74   :  { %v1765_v32 = vpop.f32.mrf.mxu0 }
0x1b75   :  { %3406 = vtanh.f32 %v1765_v32  ;;  %v2417_v56 = vmul.f32 -1.442695, %v1765_v32 }
0x1b76   :  { %v3158_v27 = vpop.f32.mrf.mxu0 }
0x1b77   :  { %3408 = vpow2.f32 %v2417_v56  ;;  %v4924_v27 = vld [vmem:[#allocation19_spill] sm:$0xff]  ;;  %v4925_v56 = vld [vmem:[#allocation20_spill] sm:$0xff] }
0x1b82   :  { %v3407_v14 = vpop.eup %3406 }
0x1b83   :  { %1783 = vrot.lane.b32.xlu1 %v3407_v14, %s3532_s17 }
0x1b84   :  { %v3409_v25 = vpop.eup %3408 }
0x1b85   :  { %v1772_v15 = vadd.f32 1.0, %v3409_v25 }
0x1b87   :  { %3410 = vrcp.f32 %v1772_v15 }
0x1b94   :  { %v3411_v30 = vpop.eup %3410 }
0x1b95   :  { %v1781_v37 = vmul.f32 %v3411_v30, %v1779_v36 }
0x1bf5   :  { %v1784_v34 = vpop.permute.xlu1 %1783 }
0x1bf6   :  { %v1786_v35 = vmul.f32 %v3411_v30, %v1784_v34 }
0x1bf8   :  { %1788 = vrot.lane.b32.xlu1 %v1786_v35, %s3533_s18 }
0x1c6a   :  { %v1789_v40 = vpop.permute.xlu1 %1788 }
0x1c6b   :  { %v4751_v41 = vadd.f32 %v1789_v40, %v1781_v37 }
0x1c6d   :  { %3412 = vtanh.f32 %v4751_v41 }
0x1c7a   :  { %v3413_v43 = vpop.eup %3412 }
0x1c7b   :  { %1794 = vrot.lane.b32.xlu0 %v3413_v43, %s3532_s17 }
0x1c7f   :  { %1441 = vrot.lane.b32.xlu0 %v4398_v11, %s3536_s14 }
0x1ced   :  { %v1795_v44 = vpop.permute.xlu0 %1794 }
0x1cee   :  { %v1797_v45 = vmul.f32 %v3411_v30, %v1795_v44 }
0x1cf0   :  { %1804 = vrot.lane.b32.xlu1 %v1797_v45, %s3537_s4 }
0x1cf1   :  { %v1442_v23 = vpop.permute.xlu0 %1441 }
0x1cf2   :  { %1445 = vst.msk [vmem:[#allocation3 - $0x4] sm:$0x30] %vm1444_vm14, %v1442_v23 }
0x1cf9   :  { %v1908_v55 = vld [vmem:[#allocation3] sm:$0x3] }
0x1cfa   :  { %v1910_v63 = vrot.slane %v1908_v55, 2 }
0x1cfc   :  { %1911 = vrot.lane.b32.xlu0 %v1910_v63, %s3533_s18 }
0x1d62   :  { %v1805_v47 = vpop.permute.xlu1 %1804 }
0x1d63   :  { %1807 = vst.msk [vmem:[#allocation2] sm:$0x3] %vm824_vm10, %v1805_v47 }
0x1d6a   :  { %v1808_v60 = vld [vmem:[#allocation2] sm:$0x3] }
0x1d6b   :  { %v4760_v28 = vld [vmem:[#allocation2] sm:$0x3]  ;;  %1809 = vst [vmem:[#allocation5 + $0x4] sm:$0x3] %v1808_v60 }
0x1d6c   :  { %3192 = vmatmul.mubr.f32.vlgmr.msra.gmra.mxu1 %v4760_v28 }
0x1d6d   :  { %3230 = vmatpush3.msra.mxu1 %v4468_v46  ;;  %3261 = vmatprep.mubr.msk.f32.mxu1 %vm3531_vm0, %v4914_v16 }
0x1d6e   :  { %3231 = vmatprep.subr.mxu1 %v4914_v16 }
0x1d6f   :  { %3232 = vmatpush3.msra.mxu1 %v4473_v48 }
0x1d70   :  { %3233 = vmatprep.subr.mxu1 %v4914_v16 }
0x1d71   :  { %3234 = vmatpush3.msra.mxu1 %v4481_v29 }
0x1d72   :  { %3235 = vmatprep.subr.mxu1 %v4914_v16 }
0x1d73   :  { %3236 = vmatpush3.msra.mxu1 %v4489_v13 }
0x1d74   :  { %3237 = vmatprep.subr.mxu1 %v4914_v16 }
0x1d75   :  { %3238 = vmatpush3.msra.mxu1 %v4497_v10 }
0x1d76   :  { %3239 = vmatprep.subr.mxu1 %v4914_v16 }
0x1d77   :  { %3240 = vmatpush3.msra.mxu1 %v4504_v57 }
0x1d78   :  { %3241 = vmatprep.subr.mxu1 %v4914_v16 }
0x1d79   :  { %3242 = vmatpush3.msra.mxu1 %v4511_v58 }
0x1d7a   :  { %3243 = vmatprep.subr.mxu1 %v4914_v16 }
0x1d7b   :  { %3244 = vmatpush3.msra.mxu1 %v4522_v62 }
0x1d7c   :  { %3245 = vmatprep.subr.mxu1 %v4914_v16 }
0x1d7d   :  { %3246 = vmatpush3.msra.mxu1 %v4529_v1 }
0x1d7e   :  { %3247 = vmatprep.subr.mxu1 %v4914_v16 }
0x1d7f   :  { %3248 = vmatpush3.msra.mxu1 %v4536_v2 }
0x1d80   :  { %3249 = vmatprep.subr.mxu1 %v4914_v16 }
0x1d81   :  { %3250 = vmatpush3.msra.mxu1 %v4541_v3  ;;  %v1912_v3 = vpop.permute.xlu0 %1911 }
0x1d82   :  { %3251 = vmatprep.subr.mxu1 %v4914_v16 }
0x1d83   :  { %3252 = vmatpush3.msra.mxu1 %v4548_v4 }
0x1d84   :  { %3253 = vmatprep.subr.mxu1 %v4914_v16 }
0x1d85   :  { %3254 = vmatpush3.msra.mxu1 %v4555_v5 }
0x1d86   :  { %3255 = vmatprep.subr.mxu1 %v4914_v16 }
0x1d87   :  { %3256 = vmatpush3.msra.mxu1 %v4562_v19 }
0x1d88   :  { %3257 = vmatprep.subr.mxu1 %v4914_v16 }
0x1d89   :  { %3258 = vmatpush3.msra.mxu1 %v4569_v21 }
0x1d8a   :  { %3259 = vmatprep.subr.mxu1 %v4914_v16 }
0x1d8b   :  { %3260 = vmatpush3.msra.mxu1 %v4576_v20 }
0x1d8c   :  { %3299 = vmatprep.subr.mxu1 %v4914_v16 }
0x1e2c   :  { %v1893_v11 = vpop.f32.mrf.mxu1 }
0x1e2d   :  { %v1898_v46 = vrot.slane %v1893_v11, 2 }
0x1e2e   :  { %v3193_v48 = vpop.f32.mrf.mxu1 }
0x1e2f   :  { %v1900_v29 = vadd.f32 %v1898_v46, %v3785_v42 }
0x1e31   :  { %3414 = vtanh.f32 %v1900_v29  ;;  %v2418_v10 = vmul.f32 -1.442695, %v1900_v29 }
0x1e33   :  { %3416 = vpow2.f32 %v2418_v10 }
0x1e3e   :  { %v3415_v13 = vpop.eup %3414 }
0x1e3f   :  { %1916 = vrot.lane.b32.xlu1 %v3415_v13, %s3532_s17 }
0x1e40   :  { %v3417_v57 = vpop.eup %3416 }
0x1e41   :  { %v1904_v58 = vadd.f32 1.0, %v3417_v57 }
0x1e43   :  { %3418 = vrcp.f32 %v1904_v58 }
0x1e50   :  { %v3419_v62 = vpop.eup %3418 }
0x1e51   :  { %v1914_v4 = vmul.f32 %v3419_v62, %v1912_v3 }
0x1eb1   :  { %v1917_v1 = vpop.permute.xlu1 %1916 }
0x1eb2   :  { %v1919_v2 = vmul.f32 %v3419_v62, %v1917_v1 }
0x1eb4   :  { %1921 = vrot.lane.b32.xlu1 %v1919_v2, %s3533_s18 }
0x1f26   :  { %v1922_v5 = vpop.permute.xlu1 %1921 }
0x1f27   :  { %v4800_v19 = vadd.f32 %v1922_v5, %v1914_v4 }
0x1f29   :  { %3420 = vtanh.f32 %v4800_v19 }
0x1f36   :  { %v3421_v42 = vpop.eup %3420 }
0x1f37   :  { %1927 = vrot.lane.b32.xlu0 %v3421_v42, %s3532_s17 }
0x1fa9   :  { %v1928_v21 = vpop.permute.xlu0 %1927 }
0x1faa   :  { %v1930_v20 = vmul.f32 %v3419_v62, %v1928_v21 }
0x1fac   :  { %1938 = vrot.lane.b32.xlu1 %v1930_v20, %s3534_s26 }
0x201e   :  { %v1939_v33 = vpop.permute.xlu1 %1938 }
0x201f   :  { %1942 = vst.msk [vmem:[#allocation2 - $0x6] sm:$0xc0] %vm1941_vm15, %v1939_v33  ;;  %v2317_v33 = vld [vmem:[#allocation11 + $0x78] sm:$0xff] }
0x2026   :  { %v1943_v38 = vld [vmem:[#allocation2] sm:$0x3] }
0x2027   :  { %3227 = vmatmul.mubr.f32.vlgmr.msra.gmra.mxu0 %v1943_v38  ;;  %v2316_v38 = vld [vmem:[#allocation11 + $0x70] sm:$0xff] }
0x2028   :  { %3265 = vmatpush3.msra.mxu0 %v4627_v54  ;;  %3296 = vmatprep.mubr.msk.f32.mxu0 %vm3531_vm0, %v4914_v16 }
0x2029   :  { %3266 = vmatprep.subr.mxu0 %v4914_v16 }
0x202a   :  { %3267 = vmatpush3.msra.mxu0 %v4629_v6  ;;  %v4921_v6 = vld [vmem:[#allocation18_spill] sm:$0xff] }
0x202b   :  { %3268 = vmatprep.subr.mxu0 %v4914_v16 }
0x202c   :  { %3269 = vmatpush3.msra.mxu0 %v4634_v50 }
0x202d   :  { %3270 = vmatprep.subr.mxu0 %v4914_v16 }
0x202e   :  { %3271 = vmatpush3.msra.mxu0 %v4638_v18 }
0x202f   :  { %3272 = vmatprep.subr.mxu0 %v4914_v16 }
0x2030   :  { %3273 = vmatpush3.msra.mxu0 %v4644_v9 }
0x2031   :  { %3274 = vmatprep.subr.mxu0 %v4914_v16 }
0x2032   :  { %3275 = vmatpush3.msra.mxu0 %v4648_v59 }
0x2033   :  { %3276 = vmatprep.subr.mxu0 %v4914_v16 }
0x2034   :  { %3277 = vmatpush3.msra.mxu0 %v4652_v61 }
0x2035   :  { %3278 = vmatprep.subr.mxu0 %v4914_v16 }
0x2036   :  { %3279 = vmatpush3.msra.mxu0 %v4656_v49 }
0x2037   :  { %3280 = vmatprep.subr.mxu0 %v4914_v16 }
0x2038   :  { %3281 = vmatpush3.msra.mxu0 %v4660_v22 }
0x2039   :  { %3282 = vmatprep.subr.mxu0 %v4914_v16 }
0x203a   :  { %3283 = vmatpush3.msra.mxu0 %v4664_v7 }
0x203b   :  { %3284 = vmatprep.subr.mxu0 %v4914_v16 }
0x203c   :  { %3285 = vmatpush3.msra.mxu0 %v4668_v8 }
0x203d   :  { %3286 = vmatprep.subr.mxu0 %v4914_v16 }
0x203e   :  { %3287 = vmatpush3.msra.mxu0 %v4672_v26 }
0x203f   :  { %3288 = vmatprep.subr.mxu0 %v4914_v16 }
0x2040   :  { %3289 = vmatpush3.msra.mxu0 %v4692_v52 }
0x2041   :  { %3290 = vmatprep.subr.mxu0 %v4914_v16 }
0x2042   :  { %3291 = vmatpush3.msra.mxu0 %v4694_v53 }
0x2043   :  { %3292 = vmatprep.subr.mxu0 %v4914_v16 }
0x2044   :  { %3293 = vmatpush3.msra.mxu0 %v4699_v0 }
0x2045   :  { %3294 = vmatprep.subr.mxu0 %v4914_v16 }
0x2046   :  { %3295 = vmatpush3.msra.mxu0 %v4704_v12 }
0x20e7   :  { %v2026_v54 = vpop.f32.mrf.mxu0 }
0x20e8   :  { %v2030_v50 = vadd.f32 %v4921_v6, %v2026_v54  ;;  %v2315_v54 = vld [vmem:[#allocation11 + $0x68] sm:$0xff]  ;;  %v2314_v6 = vld [vmem:[#allocation11 + $0x60] sm:$0xff] }
0x20e9   :  { %v3228_v18 = vpop.f32.mrf.mxu0 }
0x20ea   :  { %3422 = vtanh.f32 %v2030_v50  ;;  %v2313_v18 = vld [vmem:[#allocation11 + $0x58] sm:$0xff] }
0x20f7   :  { %v3423_v9 = vpop.eup %3422 }
0x20f8   :  { %3262 = vmatmul.mubr.f32.vlgmr.msra.gmra.mxu1 %v3423_v9  ;;  %v2312_v9 = vld [vmem:[#allocation11 + $0x50] sm:$0xff] }
0x20f9   :  { %3331 = vmatprep.mubr.msk.f32.mxu1 %vm3531_vm0, %v4914_v16  ;;  %3300 = vmatpush3.msra.mxu1 %v2317_v33  ;;  %vm1935_vm0 = vcmask 261126  }
0x20fa   :  { %3301 = vmatprep.subr.mxu1 %v4914_v16 }
0x20fb   :  { %3302 = vmatpush3.msra.mxu1 %v2316_v38 }
0x20fc   :  { %3303 = vmatprep.subr.mxu1 %v4914_v16 }
0x20fd   :  { %3304 = vmatpush3.msra.mxu1 %v2315_v54 }
0x20fe   :  { %3305 = vmatprep.subr.mxu1 %v4914_v16 }
0x20ff   :  { %3306 = vmatpush3.msra.mxu1 %v2314_v6 }
0x2100   :  { %3307 = vmatprep.subr.mxu1 %v4914_v16 }
0x2101   :  { %3308 = vmatpush3.msra.mxu1 %v2313_v18 }
0x2102   :  { %3309 = vmatprep.subr.mxu1 %v4914_v16 }
0x2103   :  { %3310 = vmatpush3.msra.mxu1 %v2312_v9 }
0x2104   :  { %3311 = vmatprep.subr.mxu1 %v4914_v16 }
0x21b8   :  { %v2114_v59 = vpop.f32.mrf.mxu1 }
0x21b9   :  { %v2118_v61 = vsel %vm639_vm5, %v2114_v59, -inf }
0x21ba   :  { %2119 = vmax.xlane.f32.xlu0 %v2118_v61  ;;  %v3263_v49 = vpop.f32.mrf.mxu1  ;;  %v2310_v61 = vld [vmem:[#allocation11 + $0x40] sm:$0xff] }
0x21bb   :  { %v2309_v49 = vld [vmem:[#allocation11 + $0x38] sm:$0xff] }
0x2243   :  { %v2120_v22 = vpop.xlane.xlu0 %2119 }
0x2244   :  { %v2121_v7 = vsub.f32 %v2114_v59, %v2120_v22  ;;  %v2311_v59 = vld [vmem:[#allocation11 + $0x48] sm:$0xff]  ;;  %v2308_v22 = vld [vmem:[#allocation11 + $0x30] sm:$0xff] }
0x2245   :  { %3312 = vmatpush3.msra.mxu1 %v2311_v59 }
0x2246   :  { %v2122_v8 = vmul.f32 1.442695, %v2121_v7  ;;  %3313 = vmatprep.subr.mxu1 %v4914_v16  ;;  %v2307_v7 = vld [vmem:[#allocation11 + $0x28] sm:$0xff] }
0x2247   :  { %3314 = vmatpush3.msra.mxu1 %v2310_v61 }
0x2248   :  { %3424 = vpow2.f32 %v2122_v8  ;;  %3315 = vmatprep.subr.mxu1 %v4914_v16  ;;  %v2305_v8 = vld [vmem:[#allocation11 + $0x18] sm:$0xff] }
0x2249   :  { %3316 = vmatpush3.msra.mxu1 %v2309_v49 }
0x224a   :  { %3317 = vmatprep.subr.mxu1 %v4914_v16 }
0x224b   :  { %3318 = vmatpush3.msra.mxu1 %v2308_v22 }
0x224c   :  { %3319 = vmatprep.subr.mxu1 %v4914_v16 }
0x224d   :  { %3320 = vmatpush3.msra.mxu1 %v2307_v7 }
0x224e   :  { %3321 = vmatprep.subr.mxu1 %v4914_v16 }
0x2255   :  { %v3425_v12 = vpop.eup %3424 }
0x2256   :  { %v2124_v26 = vsel %vm639_vm5, %v3425_v12, 0.0 }
0x2257   :  { %2125 = vadd.xlane.f32.xlu1 %v2124_v26 }
0x22e0   :  { %v2126_v52 = vpop.xlane.xlu1 %2125 }
0x22e1   :  { %3426 = vrcp.f32 %v2126_v52  ;;  %v2303_v52 = vld [vmem:[#allocation11 + $0x8] sm:$0xff] }
0x22ee   :  { %v3427_v53 = vpop.eup %3426 }
0x22ef   :  { %v2128_v0 = vmul.f32 %v3427_v53, %v3425_v12  ;;  %v2304_v12 = vld [vmem:[#allocation11 + $0x10] sm:$0xff] }
0x22f1   :  { %v2139_v51 = vrot.slane %v2128_v0, %v4922_v39  ;;  %2159 = vst.msk [vmem:[#allocation2] sm:$0x3] %vm639_vm5, %v2128_v0  ;;  %v2132_v24 = vrot.slane %v2128_v0, %v4923_v31 }
0x22f3   :  { %2141 = vbcast.lane.b32.xlu1 %v2139_v51, 256  ;;  %2134 = vbcast.lane.b32.xlu0 %v2132_v24, 256 }
0x22f7   :  { %2161 = vrot.lane.b32.xlu0 %v2128_v0, %s3528_s23  ;;  %v2302_v0 = vld [vmem:[#allocation11] sm:$0xff]  ;;  %s2395_s23 = sshll.u32 %s3538_s1, 4  ;;  %s2396_s23 = int_to_ptr.vmem [resolvable:$true] %s2395_s23 }
0x22f8   :  { %p3504_p2 = scmp.lt.s32.totalorder %s2396_s23, %s2396_s23 }
0x22fb   :  { %1799 = vrot.lane.b32.xlu0 %v4751_v41, %s3536_s14 }
0x2365   :  { %v2142_v17 = vpop.permute.xlu1 %2141  ;;  %v2135_v32 = vpop.permute.xlu0 %2134 }
0x2366   :  { %v2144_v14 = vmul.f32 %v4924_v27, %v2142_v17  ;;  %v2143_v25 = vmul.f32 %v4925_v56, %v2135_v32 }
0x2368   :  { %v2152_v15 = vsel %vm667_vm6, %v2144_v14, 0.0  ;;  %v2145_v30 = vsel %vm667_vm6, %v2143_v25, 0.0 }
0x2369   :  { %v2153_v34 = vrot.slane %v2152_v15, 4  ;;  %v2146_v35 = vrot.slane %v2145_v30, 4  ;;  %v2162_v36 = vpop.permute.xlu0 %2161 }
0x236a   :  { %v2164_v37 = vadd.f32 %v2162_v36, %v4760_v28 }
0x236b   :  { %v2154_v40 = vadd.f32 %v2153_v34, %v2152_v15  ;;  %v2147_v43 = vadd.f32 %v2146_v35, %v2145_v30 }
0x236c   :  { %2165 = vst.msk [vmem:[#allocation2] sm:$0x3] %vm688_vm7, %v2164_v37 }
0x236d   :  { %v2155_v41 = vrot.slane %v2154_v40, 2  ;;  %v2148_v44 = vrot.slane %v2147_v43, 2  ;;  %v1800_v45 = vpop.permute.xlu0 %1799 }
0x236e   :  { %1802 = vst.msk [vmem:[#allocation4] sm:$0x3] %vm333_vm3, %v1800_v45 }
0x236f   :  { %v2156_v23 = vadd.f32 %v2155_v41, %v2154_v40  ;;  %v2149_v55 = vadd.f32 %v2148_v44, %v2147_v43 }
0x2371   :  { %v2157_v63 = vrot.slane %v2156_v23, 1  ;;  %v2150_v47 = vrot.slane %v2149_v55, 1 }
0x2373   :  { %v2151_v60 = vadd.f32 %v2150_v47, %v2149_v55  ;;  %v2158_v11 = vadd.f32 %v2157_v63, %v2156_v23 }
0x2375   :  { %v2168_v46 = vsel %vm692_vm8, %v2158_v11, %v2151_v60  ;;  %v2267_v48 = vld [vmem:[#allocation4] sm:$0x3] }
0x2376   :  { %2169 = vrot.lane.b32.xlu1 %v2168_v46, %s3535_s7  ;;  %2269 = vrot.lane.b32.xlu0 %v2267_v48, %s3533_s18 }
0x23e8   :  { %v2170_v28 = vpop.permute.xlu1 %2169  ;;  %v2270_v5 = vpop.permute.xlu0 %2269 }
0x23e9   :  { %2172 = vst.msk [vmem:[#allocation2] sm:$0x3] %vm697_vm9, %v2170_v28 }
0x23f0   :  { %v2173_v29 = vld [vmem:[#allocation2] sm:$0x3] }
0x23f1   :  { %3297 = vmatmul.mubr.f32.vlgmr.msra.gmra.mxu0 %v2173_v29 }
0x24b1   :  { %v2256_v13 = vpop.f32.mrf.mxu0 }
0x24b2   :  { %3428 = vtanh.f32 %v2256_v13  ;;  %v2419_v58 = vmul.f32 -1.442695, %v2256_v13 }
0x24b3   :  { %v3298_v10 = vpop.f32.mrf.mxu0 }
0x24b4   :  { %3430 = vpow2.f32 %v2419_v58 }
0x24bf   :  { %v3429_v57 = vpop.eup %3428 }
0x24c0   :  { %2274 = vrot.lane.b32.xlu1 %v3429_v57, %s3532_s17 }
0x24c1   :  { %v3431_v62 = vpop.eup %3430 }
0x24c2   :  { %v2263_v1 = vadd.f32 1.0, %v3431_v62 }
0x24c4   :  { %3432 = vrcp.f32 %v2263_v1 }
0x24d1   :  { %v3433_v2 = vpop.eup %3432 }
0x24d2   :  { %v2272_v42 = vmul.f32 %v3433_v2, %v2270_v5 }
0x2532   :  { %v2275_v3 = vpop.permute.xlu1 %2274 }
0x2533   :  { %v2277_v4 = vmul.f32 %v3433_v2, %v2275_v3 }
0x2535   :  { %2279 = vrot.lane.b32.xlu1 %v2277_v4, %s3533_s18 }
0x25a7   :  { %v2280_v21 = vpop.permute.xlu1 %2279 }
0x25a8   :  { %v2282_v20 = vadd.f32 %v2280_v21, %v2272_v42 }
0x25aa   :  { %3434 = vtanh.f32 %v2282_v20 }
0x25b7   :  { %v3435_v50 = vpop.eup %3434 }
0x25b8   :  { %2285 = vrot.lane.b32.xlu0 %v3435_v50, %s3532_s17  ;;  %s3499_s17 = scalar_lea.vmem %s2396_s23, 128 }
0x25b9   :  { %p3500_p1 = scmp.ne.s32.totalorder %s2396_s23, %s3499_s17  ;;  %p3505_p3 = scmp.lt.s32.totalorder %s3499_s17, %s3499_s17 }
0x25bb   :  { %p3506_p4 = por %p3505_p3, %p3504_p2 }
0x25bc   :  { %1932 = vrot.lane.b32.xlu0 %v4800_v19, %s3536_s14  ;;  %v2306_v19 = vld [vmem:[#allocation11 + $0x20] sm:$0xff] }
0x25bd   :  { %3322 = vmatpush3.msra.mxu1 %v2306_v19  ;;  %p3507_p5 = pnand %p3506_p4, %p3500_p1 }
0x25be   :  { %3323 = vmatprep.subr.mxu1 %v4914_v16 }
0x25bf   :  { %3324 = vmatpush3.msra.mxu1 %v2305_v8 }
0x25c0   :  { %3325 = vmatprep.subr.mxu1 %v4914_v16 }
0x25c1   :  { %3326 = vmatpush3.msra.mxu1 %v2304_v12 }
0x25c2   :  { %3327 = vmatprep.subr.mxu1 %v4914_v16 }
0x25c3   :  { %3328 = vmatpush3.msra.mxu1 %v2303_v52 }
0x25c4   :  { %3329 = vmatprep.subr.mxu1 %v4914_v16 }
0x25c5   :  { %3330 = vmatpush3.msra.mxu1 %v2302_v0 }
0x262a   :  { %v2286_v26 = vpop.permute.xlu0 %2285 }
0x262b   :  { %v2288_v53 = vmul.f32 %v3433_v2, %v2286_v26 }
0x262d   :  { %2295 = vrot.lane.b32.xlu1 %v2288_v53, %s3537_s4 }
0x262e   :  { %v1933_v39 = vpop.permute.xlu0 %1932 }
0x262f   :  { %1936 = vst.msk [vmem:[#allocation3 - $0x6] sm:$0xc0] %vm1935_vm0, %v1933_v39 }
0x2631   :  { %2290 = vrot.lane.b32.xlu1 %v2282_v20, %s3536_s14 }
0x269f   :  { %v2296_v51 = vpop.permute.xlu1 %2295 }
0x26a0   :  { %2298 = vst.msk [vmem:[#allocation2] sm:$0x3] %vm824_vm10, %v2296_v51 }
0x26a3   :  { %v2291_v31 = vpop.permute.xlu1 %2290 }
0x26a4   :  { %2293 = vst.msk [vmem:[#allocation4] sm:$0x3] %vm333_vm3, %v2291_v31 }
0x26a7   :  { %v2299_v24 = vld [vmem:[#allocation2] sm:$0x3] }
0x26a8   :  { %2300 = vst [vmem:[#allocation5 + $0x6] sm:$0x3] %v2299_v24 }
0x26af   :  { %v2301_v17 = vld [vmem:[#allocation5] sm:$0xff] }
0x26b0   :  { %3332 = vmatmul.mubr.f32.vlgmr.msra.gmra.mxu1 %v2301_v17 }
0x2770   :  { %v2384_v32 = vpop.f32.mrf.mxu1 }
0x2771   :  { %2388 = vst [vmem:[#allocation12] sm:$0xff] %v2384_v32 }
0x2772   :  { %v3333_v16 = vpop.f32.mrf.mxu1 }
0x2773   :  { %3510 = shalt.err (!%p3507_p5)
}
0x2774   :  { %2398 = dma.vmem_to_hbm [thread:$0]  %s2396_s23, 128, %s4898_s11, [#allocation8]  }
0x2775   :  { %3523 = dma.done.wait [#allocation8], 128  }
0x2776   :  { %3524 = vsyncadd [#allocation8], 4294967168 }
0x2777   :  { %2402 = vsyncpa [#allocation7], 1 }
0x2778   :  { %2403 = vsyncpa [#allocation10], 1 }
0x2779   :  { %2404 = vsyncpa [#allocation8], 1 }

</bundles_post_ra>
